<compile_context>
chip_gen: v7x
topology: tpu7x:2x2x1
jax: 0.10.0
libtpu: 0.0.40
codegen_flags: <defaults>
</compile_context>

<pallas_src>
import functools
import math

import jax
import jax.numpy as jnp
from jax.experimental import pallas as pl
from jax.experimental.pallas import tpu as pltpu

_EPS = 1e-5
_LEFT_HALO = 8   # interior starts at a sublane-aligned W offset (8) instead of 1


# ----------------------------- Pallas kernel --------------------------------

def _taps_matmul(xp_ref, w_ref, *, K, stride, B, Ho, Wo, off_h, off_w):
    """Conv over a zero-padded VMEM scratch as ONE packed MXU matmul.

    The K*K shifted (strided) views of the padded scratch are packed along the
    channel axis -> (B*Ho*Wo, K*K*Cin) @ (K*K*Cin, Cout), f32 accumulation.
    (off_h, off_w) is the tap origin inside the padded scratch."""
    Cin = xp_ref.shape[-1]
    taps = []
    for ki in range(K):
        for kj in range(K):
            si = (pl.ds(off_h + ki, Ho, stride) if stride > 1
                  else pl.ds(off_h + ki, Ho))
            sj = (pl.ds(off_w + kj, Wo, stride) if stride > 1
                  else pl.ds(off_w + kj, Wo))
            taps.append(xp_ref[:, si, sj, :].reshape(B * Ho * Wo, Cin))
    lhs = taps[0] if len(taps) == 1 else jnp.concatenate(taps, axis=-1)
    if lhs.dtype != w_ref.dtype:           # only the strided f32 scratch path
        lhs = lhs.astype(w_ref.dtype)
    return jnp.dot(lhs, w_ref[...], preferred_element_type=jnp.float32)


def _basic_block_kernel(x_ref, s1_ref, t1_ref, w1_ref, s2_ref, t2_ref, w2_ref,
                        *rest, H, W, Ho, Wo, stride, equal_in_out):
    """Whole pre-activation BasicBlock for a block of B images, fused in VMEM."""
    if equal_in_out:
        o_ref, xp1_ref, xp2_ref = rest
    else:
        ws_ref, o_ref, xp1_ref, xp2_ref = rest

    B = x_ref.shape[0]
    Cin = x_ref.shape[-1]
    Cmid = w1_ref.shape[-1]
    Cout = w2_ref.shape[-1]
    LH = _LEFT_HALO

    # Zero the padded scratches ONCE: only the halo needs the zeros (the
    # interior is fully overwritten every step) and the scratch persists across
    # grid iterations (grid axis is marked "arbitrary" -> sequential on 1 core).
    @pl.when(pl.program_id(0) == 0)
    def _():
        xp1_ref[...] = jnp.zeros(xp1_ref.shape, xp1_ref.dtype)
        xp2_ref[...] = jnp.zeros(xp2_ref.shape, xp2_ref.dtype)

    # ---- BN1 + ReLU (f32 on the VPU) -> padded VMEM scratch (MXU dtype);
    #      neither the activated nor the padded tensor ever touches HBM. ----
    x = x_ref[...].astype(jnp.float32)                          # (B, H, W, Cin)
    a1 = jnp.maximum(x * s1_ref[...] + t1_ref[...], 0.0)
    xp1_ref[:, 1:1 + H, LH:LH + W, :] = a1.astype(xp1_ref.dtype)

    # ---- conv1: 3x3/stride as one packed (B*Ho*Wo, 9*Cin)@(9*Cin, Cmid) ----
    h = _taps_matmul(xp1_ref, w1_ref, K=3, stride=stride, B=B, Ho=Ho, Wo=Wo,
                     off_h=0, off_w=LH - 1)                     # f32

    # ---- BN2 + ReLU -> second padded scratch (h never leaves VMEM) ----
    a2 = jnp.maximum(h * s2_ref[...] + t2_ref[...], 0.0)
    xp2_ref[:, 1:1 + Ho, LH:LH + Wo, :] = (
        a2.reshape(B, Ho, Wo, Cmid).astype(xp2_ref.dtype))
    # TODO(synk): F.dropout (dropRate > 0, training mode) not implemented; the
    # module's default dropRate=0.0 / eval path is reproduced exactly.

    # ---- conv2: 3x3, stride 1 ----
    out = _taps_matmul(xp2_ref, w2_ref, K=3, stride=1, B=B, Ho=Ho, Wo=Wo,
                       off_h=0, off_w=LH - 1)                   # (B*Ho*Wo, Cout)

    # ---- shortcut: identity (raw x, f32) or fused 1x1 strided conv over a1 ---
    if equal_in_out:
        res = x.reshape(B * Ho * Wo, Cin)
    else:
        res = _taps_matmul(xp1_ref, ws_ref, K=1, stride=stride, B=B, Ho=Ho,
                           Wo=Wo, off_h=1, off_w=LH)
    o_ref[...] = (out + res).astype(o_ref.dtype).reshape(B, Ho * Wo, Cout)


# ------------------------------ op wrappers ----------------------------------

def _pick_block_n(N, HoWo, per_image_vmem_bytes, target_rows=256,
                  scratch_budget=8 << 20):
    """Largest divisor of N that fills the MXU M dim (~>=256 rows) while keeping
    the per-step scratch/block footprint under a modest VMEM budget."""
    want = -(-target_rows // HoWo)                                  # ceil
    want = min(want, max(1, scratch_budget // max(per_image_vmem_bytes, 1)))
    b = 1
    for d in range(1, N + 1):
        if N % d == 0 and d <= want:
            b = d
    return b


def basic_block_forward(x, p, stride, mxu_dtype=jnp.bfloat16, out_dtype=None):
    """WideResNet pre-activation BasicBlock. x: (N,H,W,Cin) NHWC -> (N,Ho,Wo,Cout)."""
    N, H, W, Cin = x.shape
    Cmid = p["w1"].shape[-1]
    Cout = p["w2"].shape[-1]
    Ho = (H + 2 - 3) // stride + 1
    Wo = (W + 2 - 3) // stride + 1
    equal = p["equal_in_out"]
    out_dtype = x.dtype if out_dtype is None else out_dtype
    if equal:
        assert stride == 1 and Cin == Cout, "identity shortcut requires matching shapes"

    LH = _LEFT_HALO
    Wp1, Wp2 = LH + W + 1, LH + Wo + 1
    # xp1 is read with strided sublane slices when stride > 1; keep it f32 there
    # (avoids packed-dtype strided-load lowering), bf16/MXU dtype otherwise.
    xp1_dtype = mxu_dtype if stride == 1 else jnp.float32
    xp2_dtype = mxu_dtype
    isz = lambda dt: jnp.dtype(dt).itemsize

    per_image = ((H + 2) * Wp1 * Cin * isz(xp1_dtype)
                 + (Ho + 2) * Wp2 * Cmid * isz(xp2_dtype)
                 + H * W * Cin * isz(x.dtype)
                 + Ho * Wo * Cout * isz(out_dtype))
    B = _pick_block_n(N, Ho * Wo, per_image)

    # Host-side glue: free reshapes + ONE-TIME weight cast to the MXU dtype.
    w1f = p["w1"].reshape(9 * Cin, Cmid).astype(mxu_dtype)
    w2f = p["w2"].reshape(9 * Cmid, Cout).astype(mxu_dtype)
    s1 = p["bn1_scale"].reshape(1, Cin).astype(jnp.float32)
    t1 = p["bn1_shift"].reshape(1, Cin).astype(jnp.float32)
    s2 = p["bn2_scale"].reshape(1, Cmid).astype(jnp.float32)
    t2 = p["bn2_shift"].reshape(1, Cmid).astype(jnp.float32)

    in_specs = [
        pl.BlockSpec((B, H, W, Cin), lambda n: (n, 0, 0, 0)),
        pl.BlockSpec((1, Cin), lambda n: (0, 0)),
        pl.BlockSpec((1, Cin), lambda n: (0, 0)),
        pl.BlockSpec((9 * Cin, Cmid), lambda n: (0, 0)),    # weights stay resident
        pl.BlockSpec((1, Cmid), lambda n: (0, 0)),
        pl.BlockSpec((1, Cmid), lambda n: (0, 0)),
        pl.BlockSpec((9 * Cmid, Cout), lambda n: (0, 0)),
    ]
    args = [x, s1, t1, w1f, s2, t2, w2f]
    if not equal:
        in_specs.append(pl.BlockSpec((Cin, Cout), lambda n: (0, 0)))
        args.append(p["ws"].reshape(Cin, Cout).astype(mxu_dtype))

    scratch_shapes = [pltpu.VMEM((B, H + 2, Wp1, Cin), xp1_dtype),
                      pltpu.VMEM((B, Ho + 2, Wp2, Cmid), xp2_dtype)]

    # Rough VMEM budget: double-buffered in/out blocks + resident weights + scratch.
    est = (2 * B * H * W * Cin * isz(x.dtype)
           + 2 * B * Ho * Wo * Cout * isz(out_dtype)
           + 2 * (9 * Cin * Cmid + 9 * Cmid * Cout
                  + (0 if equal else Cin * Cout)) * isz(mxu_dtype)
           + B * (H + 2) * Wp1 * Cin * isz(xp1_dtype)
           + B * (Ho + 2) * Wp2 * Cmid * isz(xp2_dtype))
    vmem_limit = int(min(64 << 20, max(32 << 20, 2 * est)))

    kernel = functools.partial(_basic_block_kernel, H=H, W=W, Ho=Ho, Wo=Wo,
                               stride=stride, equal_in_out=equal)

    out = pl.pallas_call(
        kernel,
        out_shape=jax.ShapeDtypeStruct((N, Ho * Wo, Cout), out_dtype),
        grid=(N // B,),
        in_specs=in_specs,
        out_specs=pl.BlockSpec((B, Ho * Wo, Cout), lambda n: (n, 0, 0)),
        scratch_shapes=scratch_shapes,
        compiler_params=pltpu.CompilerParams(
            # "arbitrary": the one-time halo zeroing (program_id==0) relies on
            # the scratch persisting across a sequential grid on one core.
            dimension_semantics=("arbitrary",),
            vmem_limit_bytes=vmem_limit),
    )(*args)
    return out.reshape(N, Ho, Wo, Cout)


# ----------------------------- model forward ---------------------------------

def network_block_forward(x_nchw, params, stride, mxu_dtype=jnp.bfloat16):
    x = jnp.transpose(x_nchw, (0, 2, 3, 1))   # NCHW -> NHWC
    final_dtype = x.dtype
    last = len(params) - 1
    for i, p in enumerate(params):
        # bf16 inter-block activations halve the HBM round-trip between the
        # per-BasicBlock pallas_calls; the last block restores the input dtype.
        od = mxu_dtype if (i < last and mxu_dtype != jnp.float32) else final_dtype
        x = basic_block_forward(x, p, stride if i == 0 else 1,
                                mxu_dtype=mxu_dtype, out_dtype=od)
    return jnp.transpose(x, (0, 3, 1, 2))     # NHWC -> NCHW


# ----------------------------- param init ------------------------------------

def _fold_bn(gamma, beta, mean, var):
    scale = gamma / jnp.sqrt(var + _EPS)
    shift = beta - mean * scale
    return scale, shift


def init_network_block(key, nb_layers, in_planes, out_planes, stride):
    params = []
    for i in range(nb_layers):
        in_c = in_planes if i == 0 else out_planes
        ks = jax.random.split(jax.random.fold_in(key, i), 11)
        g1 = jax.random.uniform(ks[0], (in_c,), jnp.float32, 0.5, 1.5)
        b1 = 0.1 * jax.random.normal(ks[1], (in_c,), jnp.float32)
        m1 = 0.1 * jax.random.normal(ks[2], (in_c,), jnp.float32)
        v1 = jax.random.uniform(ks[3], (in_c,), jnp.float32, 0.5, 1.5)
        s1, t1 = _fold_bn(g1, b1, m1, v1)
        w1 = jax.random.normal(ks[4], (3, 3, in_c, out_planes), jnp.float32) \
            * math.sqrt(2.0 / (9 * out_planes))
        g2 = jax.random.uniform(ks[5], (out_planes,), jnp.float32, 0.5, 1.5)
        b2 = 0.1 * jax.random.normal(ks[6], (out_planes,), jnp.float32)
        m2 = 0.1 * jax.random.normal(ks[7], (out_planes,), jnp.float32)
        v2 = jax.random.uniform(ks[8], (out_planes,), jnp.float32, 0.5, 1.5)
        s2, t2 = _fold_bn(g2, b2, m2, v2)
        w2 = jax.random.normal(ks[9], (3, 3, out_planes, out_planes), jnp.float32) \
            * math.sqrt(2.0 / (9 * out_planes))
        equal = (in_c == out_planes)   # PyTorch: equalInOut = in_planes == out_planes
        p = dict(bn1_scale=s1, bn1_shift=t1, w1=w1,
                 bn2_scale=s2, bn2_shift=t2, w2=w2,
                 equal_in_out=equal)
        if not equal:
            p["ws"] = jax.random.normal(ks[10], (1, 1, in_c, out_planes), jnp.float32) \
                * math.sqrt(2.0 / out_planes)
        params.append(p)
    return params


# --------------------------- plain-JAX reference ------------------------------

def _ref_conv(x, w, stride):
    K = w.shape[0]
    pad = (K - 1) // 2
    return jax.lax.conv_general_dilated(
        x, w, window_strides=(stride, stride),
        padding=((pad, pad), (pad, pad)),
        dimension_numbers=("NHWC", "HWIO", "NHWC"))


def _ref_block(x, p, stride):
    a1 = jnp.maximum(x * p["bn1_scale"] + p["bn1_shift"], 0.0)
    h = _ref_conv(a1, p["w1"], stride)
    h = jnp.maximum(h * p["bn2_scale"] + p["bn2_shift"], 0.0)
    h = _ref_conv(h, p["w2"], 1)
    sc = x if p["equal_in_out"] else _ref_conv(a1, p["ws"], stride)
    return sc + h


def _ref_forward(x_nchw, params, stride):
    x = jnp.transpose(x_nchw, (0, 2, 3, 1))
    for i, p in enumerate(params):
        x = _ref_block(x, p, stride if i == 0 else 1)
    return jnp.transpose(x, (0, 3, 1, 2))


if __name__ == "__main__":
    key = jax.random.PRNGKey(0)
    k_x, k_p = jax.random.split(key)

    # NetworkBlock(builder, nb_layers=2, in_planes=4, out_planes=8,
    #              block=BasicBlock, stride=2, dropRate=0.0)
    nb_layers, in_planes, out_planes, stride = 2, 4, 8, 2
    x = jax.random.normal(k_x, (2, in_planes, 16, 16), jnp.float32)   # NCHW input
    params = init_network_block(k_p, nb_layers, in_planes, out_planes, stride)

    ref = jax.block_until_ready(_ref_forward(x, params, stride))

    # Exact-semantics path: f32 MXU operands / f32 scratches (matches PyTorch).
    fwd_f32 = jax.jit(lambda inp: network_block_forward(inp, params, stride,
                                                        mxu_dtype=jnp.float32))
    out_f32 = jax.block_until_ready(fwd_f32(x))
    assert out_f32.shape == (2, out_planes, 8, 8), out_f32.shape
    assert jnp.allclose(out_f32, ref, rtol=1e-3, atol=1e-3), \
        float(jnp.max(jnp.abs(out_f32 - ref)))

    # Fast path: bf16 MXU operands / scratches / inter-block activations,
    # f32 accumulation (looser tolerance: operands rounded at matmul boundary).
    fwd_bf16 = jax.jit(lambda inp: network_block_forward(inp, params, stride,
                                                         mxu_dtype=jnp.bfloat16))
    out_bf16 = jax.block_until_ready(fwd_bf16(x))
    assert out_bf16.shape == (2, out_planes, 8, 8), out_bf16.shape
    assert jnp.allclose(out_bf16, ref, rtol=5e-2, atol=5e-2), \
        float(jnp.max(jnp.abs(out_bf16 - ref)))

    print("KERNEL_OK")
</pallas_src>

<mosaic_0001>
module attributes {stable_mosaic.version = 11 : i64} {
  func.func @_basic_block_kernel(%arg0: i32, %arg1: memref<2x16x16x4xf32, #tpu.memory_space<vmem>>, %arg2: memref<1x4xf32, #tpu.memory_space<vmem>>, %arg3: memref<1x4xf32, #tpu.memory_space<vmem>>, %arg4: memref<36x8xf32, #tpu.memory_space<vmem>>, %arg5: memref<1x8xf32, #tpu.memory_space<vmem>>, %arg6: memref<1x8xf32, #tpu.memory_space<vmem>>, %arg7: memref<72x8xf32, #tpu.memory_space<vmem>>, %arg8: memref<4x8xf32, #tpu.memory_space<vmem>>, %arg9: memref<2x64x8xf32, #tpu.memory_space<vmem>>, %arg10: memref<2x18x25x4xf32, #tpu.memory_space<vmem>>, %arg11: memref<2x10x17x8xf32, #tpu.memory_space<vmem>>) attributes {dimension_semantics = [#tpu.dimension_semantics<arbitrary>], iteration_bounds = array<i64: 1>, scalar_prefetch = 0 : i64, scratch_operands = 2 : i64, tpu.core_type = #tpu.core_type<tc>, window_params = [{transform_indices = @transform_0, window_bounds = array<i64: 2, 16, 16, 4>}, {pipeline_mode = #tpu.pipeline_mode<synchronous>, transform_indices = @transform_1, window_bounds = array<i64: 1, 4>}, {pipeline_mode = #tpu.pipeline_mode<synchronous>, transform_indices = @transform_2, window_bounds = array<i64: 1, 4>}, {pipeline_mode = #tpu.pipeline_mode<synchronous>, transform_indices = @transform_3, window_bounds = array<i64: 36, 8>}, {pipeline_mode = #tpu.pipeline_mode<synchronous>, transform_indices = @transform_4, window_bounds = array<i64: 1, 8>}, {pipeline_mode = #tpu.pipeline_mode<synchronous>, transform_indices = @transform_5, window_bounds = array<i64: 1, 8>}, {pipeline_mode = #tpu.pipeline_mode<synchronous>, transform_indices = @transform_6, window_bounds = array<i64: 72, 8>}, {pipeline_mode = #tpu.pipeline_mode<synchronous>, transform_indices = @transform_7, window_bounds = array<i64: 4, 8>}, {transform_indices = @transform_8, window_bounds = array<i64: 2, 64, 8>}]} {
    %c0_i32 = arith.constant 0 : i32
    %0 = arith.cmpi eq, %arg0, %c0_i32 : i32
    %1 = arith.extui %0 : i1 to i32
    %c0_i32_0 = arith.constant 0 : i32
    %2 = arith.cmpi ne, %1, %c0_i32_0 : i32
    scf.if %2 {
      %cst_104 = arith.constant 0.000000e+00 : f32
      %74 = vector.broadcast %cst_104 : f32 to vector<2x18x25x4xf32>
      %c0_105 = arith.constant 0 : index
      %c0_106 = arith.constant 0 : index
      %c0_107 = arith.constant 0 : index
      %c0_108 = arith.constant 0 : index
      %75 = vector.load %arg10[%c0_105, %c0_106, %c0_107, %c0_108] : memref<2x18x25x4xf32, #tpu.memory_space<vmem>>, vector<2x18x25x4xf32>
      tpu.vector_store %arg10[%c0_105, %c0_106, %c0_107, %c0_108], %74 {strides = array<i32>} : memref<2x18x25x4xf32, #tpu.memory_space<vmem>>, vector<2x18x25x4xf32>,
      %cst_109 = arith.constant 0.000000e+00 : f32
      %76 = vector.broadcast %cst_109 : f32 to vector<2x10x17x8xf32>
      %c0_110 = arith.constant 0 : index
      %c0_111 = arith.constant 0 : index
      %c0_112 = arith.constant 0 : index
      %c0_113 = arith.constant 0 : index
      %77 = vector.load %arg11[%c0_110, %c0_111, %c0_112, %c0_113] : memref<2x10x17x8xf32, #tpu.memory_space<vmem>>, vector<2x10x17x8xf32>
      tpu.vector_store %arg11[%c0_110, %c0_111, %c0_112, %c0_113], %76 {strides = array<i32>} : memref<2x10x17x8xf32, #tpu.memory_space<vmem>>, vector<2x10x17x8xf32>,
    } else {
    }
    %c0 = arith.constant 0 : index
    %c0_1 = arith.constant 0 : index
    %c0_2 = arith.constant 0 : index
    %c0_3 = arith.constant 0 : index
    %3 = vector.load %arg1[%c0, %c0_1, %c0_2, %c0_3] : memref<2x16x16x4xf32, #tpu.memory_space<vmem>>, vector<2x16x16x4xf32>
    %c0_4 = arith.constant 0 : index
    %c0_5 = arith.constant 0 : index
    %4 = vector.load %arg2[%c0_4, %c0_5] : memref<1x4xf32, #tpu.memory_space<vmem>>, vector<1x4xf32>
    %5 = vector.shape_cast %4 : vector<1x4xf32> to vector<1x1x1x4xf32>
    %6 = vector.broadcast %5 : vector<1x1x1x4xf32> to vector<2x16x16x4xf32>
    %7 = arith.mulf %3, %6 : vector<2x16x16x4xf32>
    %c0_6 = arith.constant 0 : index
    %c0_7 = arith.constant 0 : index
    %8 = vector.load %arg3[%c0_6, %c0_7] : memref<1x4xf32, #tpu.memory_space<vmem>>, vector<1x4xf32>
    %9 = vector.shape_cast %8 : vector<1x4xf32> to vector<1x1x1x4xf32>
    %10 = vector.broadcast %9 : vector<1x1x1x4xf32> to vector<2x16x16x4xf32>
    %11 = arith.addf %7, %10 : vector<2x16x16x4xf32>
    %cst = arith.constant 0.000000e+00 : f32
    %12 = vector.broadcast %cst : f32 to vector<2x16x16x4xf32>
    %13 = arith.maximumf %11, %12 : vector<2x16x16x4xf32>
    %c0_8 = arith.constant 0 : index
    %c1 = arith.constant 1 : index
    %c8 = arith.constant 8 : index
    %c0_9 = arith.constant 0 : index
    %14 = vector.load %arg10[%c0_8, %c1, %c8, %c0_9] : memref<2x18x25x4xf32, #tpu.memory_space<vmem>>, vector<2x16x16x4xf32>
    tpu.vector_store %arg10[%c0_8, %c1, %c8, %c0_9], %13 {strides = array<i32>} : memref<2x18x25x4xf32, #tpu.memory_space<vmem>>, vector<2x16x16x4xf32>,
    %c0_10 = arith.constant 0 : index
    %c0_11 = arith.constant 0 : index
    %c7 = arith.constant 7 : index
    %c0_12 = arith.constant 0 : index
    %15 = tpu.strided_load %arg10[%c0_10, %c0_11, %c7, %c0_12] {strides = array<i32: 1, 2, 2, 1>} : memref<2x18x25x4xf32, #tpu.memory_space<vmem>>, vector<2x8x8x4xf32>
    %16 = vector.shape_cast %15 : vector<2x8x8x4xf32> to vector<128x4xf32>
    %c0_13 = arith.constant 0 : index
    %c0_14 = arith.constant 0 : index
    %c8_15 = arith.constant 8 : index
    %c0_16 = arith.constant 0 : index
    %17 = tpu.strided_load %arg10[%c0_13, %c0_14, %c8_15, %c0_16] {strides = array<i32: 1, 2, 2, 1>} : memref<2x18x25x4xf32, #tpu.memory_space<vmem>>, vector<2x8x8x4xf32>
    %18 = vector.shape_cast %17 : vector<2x8x8x4xf32> to vector<128x4xf32>
    %c0_17 = arith.constant 0 : index
    %c0_18 = arith.constant 0 : index
    %c9 = arith.constant 9 : index
    %c0_19 = arith.constant 0 : index
    %19 = tpu.strided_load %arg10[%c0_17, %c0_18, %c9, %c0_19] {strides = array<i32: 1, 2, 2, 1>} : memref<2x18x25x4xf32, #tpu.memory_space<vmem>>, vector<2x8x8x4xf32>
    %20 = vector.shape_cast %19 : vector<2x8x8x4xf32> to vector<128x4xf32>
    %c0_20 = arith.constant 0 : index
    %c1_21 = arith.constant 1 : index
    %c7_22 = arith.constant 7 : index
    %c0_23 = arith.constant 0 : index
    %21 = tpu.strided_load %arg10[%c0_20, %c1_21, %c7_22, %c0_23] {strides = array<i32: 1, 2, 2, 1>} : memref<2x18x25x4xf32, #tpu.memory_space<vmem>>, vector<2x8x8x4xf32>
    %22 = vector.shape_cast %21 : vector<2x8x8x4xf32> to vector<128x4xf32>
    %c0_24 = arith.constant 0 : index
    %c1_25 = arith.constant 1 : index
    %c8_26 = arith.constant 8 : index
    %c0_27 = arith.constant 0 : index
    %23 = tpu.strided_load %arg10[%c0_24, %c1_25, %c8_26, %c0_27] {strides = array<i32: 1, 2, 2, 1>} : memref<2x18x25x4xf32, #tpu.memory_space<vmem>>, vector<2x8x8x4xf32>
    %24 = vector.shape_cast %23 : vector<2x8x8x4xf32> to vector<128x4xf32>
    %c0_28 = arith.constant 0 : index
    %c1_29 = arith.constant 1 : index
    %c9_30 = arith.constant 9 : index
    %c0_31 = arith.constant 0 : index
    %25 = tpu.strided_load %arg10[%c0_28, %c1_29, %c9_30, %c0_31] {strides = array<i32: 1, 2, 2, 1>} : memref<2x18x25x4xf32, #tpu.memory_space<vmem>>, vector<2x8x8x4xf32>
    %26 = vector.shape_cast %25 : vector<2x8x8x4xf32> to vector<128x4xf32>
    %c0_32 = arith.constant 0 : index
    %c2 = arith.constant 2 : index
    %c7_33 = arith.constant 7 : index
    %c0_34 = arith.constant 0 : index
    %27 = tpu.strided_load %arg10[%c0_32, %c2, %c7_33, %c0_34] {strides = array<i32: 1, 2, 2, 1>} : memref<2x18x25x4xf32, #tpu.memory_space<vmem>>, vector<2x8x8x4xf32>
    %28 = vector.shape_cast %27 : vector<2x8x8x4xf32> to vector<128x4xf32>
    %c0_35 = arith.constant 0 : index
    %c2_36 = arith.constant 2 : index
    %c8_37 = arith.constant 8 : index
    %c0_38 = arith.constant 0 : index
    %29 = tpu.strided_load %arg10[%c0_35, %c2_36, %c8_37, %c0_38] {strides = array<i32: 1, 2, 2, 1>} : memref<2x18x25x4xf32, #tpu.memory_space<vmem>>, vector<2x8x8x4xf32>
    %30 = vector.shape_cast %29 : vector<2x8x8x4xf32> to vector<128x4xf32>
    %c0_39 = arith.constant 0 : index
    %c2_40 = arith.constant 2 : index
    %c9_41 = arith.constant 9 : index
    %c0_42 = arith.constant 0 : index
    %31 = tpu.strided_load %arg10[%c0_39, %c2_40, %c9_41, %c0_42] {strides = array<i32: 1, 2, 2, 1>} : memref<2x18x25x4xf32, #tpu.memory_space<vmem>>, vector<2x8x8x4xf32>
    %32 = vector.shape_cast %31 : vector<2x8x8x4xf32> to vector<128x4xf32>
    %33 = tpu.concatenate %16, %18, %20, %22, %24, %26, %28, %30, %32 in 1 : vector<128x4xf32>, vector<128x4xf32>, vector<128x4xf32>, vector<128x4xf32>, vector<128x4xf32>, vector<128x4xf32>, vector<128x4xf32>, vector<128x4xf32>, vector<128x4xf32> -> vector<128x36xf32>
    %c0_43 = arith.constant 0 : index
    %c0_44 = arith.constant 0 : index
    %34 = vector.load %arg4[%c0_43, %c0_44] : memref<36x8xf32, #tpu.memory_space<vmem>>, vector<36x8xf32>
    %cst_45 = arith.constant dense<0.000000e+00> : vector<128x8xf32>
    %35 = tpu.matmul %33, %34, %cst_45 {dimension_numbers = #tpu.dot_dimension_numbers<[1], [0], [0], [1], [0, 0, 1, 1], [], []>} : vector<128x36xf32>, vector<36x8xf32>, vector<128x8xf32> -> vector<128x8xf32>
    %c0_46 = arith.constant 0 : index
    %c0_47 = arith.constant 0 : index
    %36 = vector.load %arg5[%c0_46, %c0_47] : memref<1x8xf32, #tpu.memory_space<vmem>>, vector<1x8xf32>
    %37 = vector.broadcast %36 : vector<1x8xf32> to vector<128x8xf32>
    %38 = arith.mulf %35, %37 : vector<128x8xf32>
    %c0_48 = arith.constant 0 : index
    %c0_49 = arith.constant 0 : index
    %39 = vector.load %arg6[%c0_48, %c0_49] : memref<1x8xf32, #tpu.memory_space<vmem>>, vector<1x8xf32>
    %40 = vector.broadcast %39 : vector<1x8xf32> to vector<128x8xf32>
    %41 = arith.addf %38, %40 : vector<128x8xf32>
    %cst_50 = arith.constant 0.000000e+00 : f32
    %42 = vector.broadcast %cst_50 : f32 to vector<128x8xf32>
    %43 = arith.maximumf %41, %42 : vector<128x8xf32>
    %44 = vector.shape_cast %43 : vector<128x8xf32> to vector<2x8x8x8xf32>
    %c0_51 = arith.constant 0 : index
    %c1_52 = arith.constant 1 : index
    %c8_53 = arith.constant 8 : index
    %c0_54 = arith.constant 0 : index
    %45 = vector.load %arg11[%c0_51, %c1_52, %c8_53, %c0_54] : memref<2x10x17x8xf32, #tpu.memory_space<vmem>>, vector<2x8x8x8xf32>
    tpu.vector_store %arg11[%c0_51, %c1_52, %c8_53, %c0_54], %44 {strides = array<i32>} : memref<2x10x17x8xf32, #tpu.memory_space<vmem>>, vector<2x8x8x8xf32>,
    %c0_55 = arith.constant 0 : index
    %c0_56 = arith.constant 0 : index
    %c7_57 = arith.constant 7 : index
    %c0_58 = arith.constant 0 : index
    %46 = vector.load %arg11[%c0_55, %c0_56, %c7_57, %c0_58] : memref<2x10x17x8xf32, #tpu.memory_space<vmem>>, vector<2x8x8x8xf32>
    %47 = vector.shape_cast %46 : vector<2x8x8x8xf32> to vector<128x8xf32>
    %c0_59 = arith.constant 0 : index
    %c0_60 = arith.constant 0 : index
    %c8_61 = arith.constant 8 : index
    %c0_62 = arith.constant 0 : index
    %48 = vector.load %arg11[%c0_59, %c0_60, %c8_61, %c0_62] : memref<2x10x17x8xf32, #tpu.memory_space<vmem>>, vector<2x8x8x8xf32>
    %49 = vector.shape_cast %48 : vector<2x8x8x8xf32> to vector<128x8xf32>
    %c0_63 = arith.constant 0 : index
    %c0_64 = arith.constant 0 : index
    %c9_65 = arith.constant 9 : index
    %c0_66 = arith.constant 0 : index
    %50 = vector.load %arg11[%c0_63, %c0_64, %c9_65, %c0_66] : memref<2x10x17x8xf32, #tpu.memory_space<vmem>>, vector<2x8x8x8xf32>
    %51 = vector.shape_cast %50 : vector<2x8x8x8xf32> to vector<128x8xf32>
    %c0_67 = arith.constant 0 : index
    %c1_68 = arith.constant 1 : index
    %c7_69 = arith.constant 7 : index
    %c0_70 = arith.constant 0 : index
    %52 = vector.load %arg11[%c0_67, %c1_68, %c7_69, %c0_70] : memref<2x10x17x8xf32, #tpu.memory_space<vmem>>, vector<2x8x8x8xf32>
    %53 = vector.shape_cast %52 : vector<2x8x8x8xf32> to vector<128x8xf32>
    %c0_71 = arith.constant 0 : index
    %c1_72 = arith.constant 1 : index
    %c8_73 = arith.constant 8 : index
    %c0_74 = arith.constant 0 : index
    %54 = vector.load %arg11[%c0_71, %c1_72, %c8_73, %c0_74] : memref<2x10x17x8xf32, #tpu.memory_space<vmem>>, vector<2x8x8x8xf32>
    %55 = vector.shape_cast %54 : vector<2x8x8x8xf32> to vector<128x8xf32>
    %c0_75 = arith.constant 0 : index
    %c1_76 = arith.constant 1 : index
    %c9_77 = arith.constant 9 : index
    %c0_78 = arith.constant 0 : index
    %56 = vector.load %arg11[%c0_75, %c1_76, %c9_77, %c0_78] : memref<2x10x17x8xf32, #tpu.memory_space<vmem>>, vector<2x8x8x8xf32>
    %57 = vector.shape_cast %56 : vector<2x8x8x8xf32> to vector<128x8xf32>
    %c0_79 = arith.constant 0 : index
    %c2_80 = arith.constant 2 : index
    %c7_81 = arith.constant 7 : index
    %c0_82 = arith.constant 0 : index
    %58 = vector.load %arg11[%c0_79, %c2_80, %c7_81, %c0_82] : memref<2x10x17x8xf32, #tpu.memory_space<vmem>>, vector<2x8x8x8xf32>
    %59 = vector.shape_cast %58 : vector<2x8x8x8xf32> to vector<128x8xf32>
    %c0_83 = arith.constant 0 : index
    %c2_84 = arith.constant 2 : index
    %c8_85 = arith.constant 8 : index
    %c0_86 = arith.constant 0 : index
    %60 = vector.load %arg11[%c0_83, %c2_84, %c8_85, %c0_86] : memref<2x10x17x8xf32, #tpu.memory_space<vmem>>, vector<2x8x8x8xf32>
    %61 = vector.shape_cast %60 : vector<2x8x8x8xf32> to vector<128x8xf32>
    %c0_87 = arith.constant 0 : index
    %c2_88 = arith.constant 2 : index
    %c9_89 = arith.constant 9 : index
    %c0_90 = arith.constant 0 : index
    %62 = vector.load %arg11[%c0_87, %c2_88, %c9_89, %c0_90] : memref<2x10x17x8xf32, #tpu.memory_space<vmem>>, vector<2x8x8x8xf32>
    %63 = vector.shape_cast %62 : vector<2x8x8x8xf32> to vector<128x8xf32>
    %64 = tpu.concatenate %47, %49, %51, %53, %55, %57, %59, %61, %63 in 1 : vector<128x8xf32>, vector<128x8xf32>, vector<128x8xf32>, vector<128x8xf32>, vector<128x8xf32>, vector<128x8xf32>, vector<128x8xf32>, vector<128x8xf32>, vector<128x8xf32> -> vector<128x72xf32>
    %c0_91 = arith.constant 0 : index
    %c0_92 = arith.constant 0 : index
    %65 = vector.load %arg7[%c0_91, %c0_92] : memref<72x8xf32, #tpu.memory_space<vmem>>, vector<72x8xf32>
    %cst_93 = arith.constant dense<0.000000e+00> : vector<128x8xf32>
    %66 = tpu.matmul %64, %65, %cst_93 {dimension_numbers = #tpu.dot_dimension_numbers<[1], [0], [0], [1], [0, 0, 1, 1], [], []>} : vector<128x72xf32>, vector<72x8xf32>, vector<128x8xf32> -> vector<128x8xf32>
    %c0_94 = arith.constant 0 : index
    %c1_95 = arith.constant 1 : index
    %c8_96 = arith.constant 8 : index
    %c0_97 = arith.constant 0 : index
    %67 = tpu.strided_load %arg10[%c0_94, %c1_95, %c8_96, %c0_97] {strides = array<i32: 1, 2, 2, 1>} : memref<2x18x25x4xf32, #tpu.memory_space<vmem>>, vector<2x8x8x4xf32>
    %68 = vector.shape_cast %67 : vector<2x8x8x4xf32> to vector<128x4xf32>
    %c0_98 = arith.constant 0 : index
    %c0_99 = arith.constant 0 : index
    %69 = vector.load %arg8[%c0_98, %c0_99] : memref<4x8xf32, #tpu.memory_space<vmem>>, vector<4x8xf32>
    %cst_100 = arith.constant dense<0.000000e+00> : vector<128x8xf32>
    %70 = tpu.matmul %68, %69, %cst_100 {dimension_numbers = #tpu.dot_dimension_numbers<[1], [0], [0], [1], [0, 0, 1, 1], [], []>} : vector<128x4xf32>, vector<4x8xf32>, vector<128x8xf32> -> vector<128x8xf32>
    %71 = arith.addf %66, %70 : vector<128x8xf32>
    %72 = vector.shape_cast %71 : vector<128x8xf32> to vector<2x64x8xf32>
    %c0_101 = arith.constant 0 : index
    %c0_102 = arith.constant 0 : index
    %c0_103 = arith.constant 0 : index
    %73 = vector.load %arg9[%c0_101, %c0_102, %c0_103] : memref<2x64x8xf32, #tpu.memory_space<vmem>>, vector<2x64x8xf32>
    tpu.vector_store %arg9[%c0_101, %c0_102, %c0_103], %72 {strides = array<i32>} : memref<2x64x8xf32, #tpu.memory_space<vmem>>, vector<2x64x8xf32>,
    return
  }
  func.func @transform_0(%arg0: i32) -> (i32, i32, i32, i32) {
    %c0_i32 = arith.constant 0 : i32
    %c0_i32_0 = arith.constant 0 : i32
    %c0_i32_1 = arith.constant 0 : i32
    %c0_i32_2 = arith.constant 0 : i32
    return %arg0, %c0_i32, %c0_i32_0, %c0_i32_1 : i32, i32, i32, i32
  }
  func.func @transform_1(%arg0: i32) -> (i32, i32) {
    %c0_i32 = arith.constant 0 : i32
    %c0_i32_0 = arith.constant 0 : i32
    %c0_i32_1 = arith.constant 0 : i32
    return %c0_i32, %c0_i32_0 : i32, i32
  }
  func.func @transform_2(%arg0: i32) -> (i32, i32) {
    %c0_i32 = arith.constant 0 : i32
    %c0_i32_0 = arith.constant 0 : i32
    %c0_i32_1 = arith.constant 0 : i32
    return %c0_i32, %c0_i32_0 : i32, i32
  }
  func.func @transform_3(%arg0: i32) -> (i32, i32) {
    %c0_i32 = arith.constant 0 : i32
    %c0_i32_0 = arith.constant 0 : i32
    %c0_i32_1 = arith.constant 0 : i32
    return %c0_i32, %c0_i32_0 : i32, i32
  }
  func.func @transform_4(%arg0: i32) -> (i32, i32) {
    %c0_i32 = arith.constant 0 : i32
    %c0_i32_0 = arith.constant 0 : i32
    %c0_i32_1 = arith.constant 0 : i32
    return %c0_i32, %c0_i32_0 : i32, i32
  }
  func.func @transform_5(%arg0: i32) -> (i32, i32) {
    %c0_i32 = arith.constant 0 : i32
    %c0_i32_0 = arith.constant 0 : i32
    %c0_i32_1 = arith.constant 0 : i32
    return %c0_i32, %c0_i32_0 : i32, i32
  }
  func.func @transform_6(%arg0: i32) -> (i32, i32) {
    %c0_i32 = arith.constant 0 : i32
    %c0_i32_0 = arith.constant 0 : i32
    %c0_i32_1 = arith.constant 0 : i32
    return %c0_i32, %c0_i32_0 : i32, i32
  }
  func.func @transform_7(%arg0: i32) -> (i32, i32) {
    %c0_i32 = arith.constant 0 : i32
    %c0_i32_0 = arith.constant 0 : i32
    %c0_i32_1 = arith.constant 0 : i32
    return %c0_i32, %c0_i32_0 : i32, i32
  }
  func.func @transform_8(%arg0: i32) -> (i32, i32, i32) {
    %c0_i32 = arith.constant 0 : i32
    %c0_i32_0 = arith.constant 0 : i32
    %c0_i32_1 = arith.constant 0 : i32
    return %arg0, %c0_i32, %c0_i32_0 : i32, i32, i32
  }
}

module attributes {stable_mosaic.version = 11 : i64} {
  func.func @_basic_block_kernel(%arg0: i32, %arg1: memref<2x8x8x8xf32, #tpu.memory_space<vmem>>, %arg2: memref<1x8xf32, #tpu.memory_space<vmem>>, %arg3: memref<1x8xf32, #tpu.memory_space<vmem>>, %arg4: memref<72x8xf32, #tpu.memory_space<vmem>>, %arg5: memref<1x8xf32, #tpu.memory_space<vmem>>, %arg6: memref<1x8xf32, #tpu.memory_space<vmem>>, %arg7: memref<72x8xf32, #tpu.memory_space<vmem>>, %arg8: memref<2x64x8xf32, #tpu.memory_space<vmem>>, %arg9: memref<2x10x17x8xf32, #tpu.memory_space<vmem>>, %arg10: memref<2x10x17x8xf32, #tpu.memory_space<vmem>>) attributes {dimension_semantics = [#tpu.dimension_semantics<arbitrary>], iteration_bounds = array<i64: 1>, scalar_prefetch = 0 : i64, scratch_operands = 2 : i64, tpu.core_type = #tpu.core_type<tc>, window_params = [{transform_indices = @transform_0, window_bounds = array<i64: 2, 8, 8, 8>}, {pipeline_mode = #tpu.pipeline_mode<synchronous>, transform_indices = @transform_1, window_bounds = array<i64: 1, 8>}, {pipeline_mode = #tpu.pipeline_mode<synchronous>, transform_indices = @transform_2, window_bounds = array<i64: 1, 8>}, {pipeline_mode = #tpu.pipeline_mode<synchronous>, transform_indices = @transform_3, window_bounds = array<i64: 72, 8>}, {pipeline_mode = #tpu.pipeline_mode<synchronous>, transform_indices = @transform_4, window_bounds = array<i64: 1, 8>}, {pipeline_mode = #tpu.pipeline_mode<synchronous>, transform_indices = @transform_5, window_bounds = array<i64: 1, 8>}, {pipeline_mode = #tpu.pipeline_mode<synchronous>, transform_indices = @transform_6, window_bounds = array<i64: 72, 8>}, {transform_indices = @transform_7, window_bounds = array<i64: 2, 64, 8>}]} {
    %c0_i32 = arith.constant 0 : i32
    %0 = arith.cmpi eq, %arg0, %c0_i32 : i32
    %1 = arith.extui %0 : i1 to i32
    %c0_i32_0 = arith.constant 0 : i32
    %2 = arith.cmpi ne, %1, %c0_i32_0 : i32
    scf.if %2 {
      %cst_97 = arith.constant 0.000000e+00 : f32
      %71 = vector.broadcast %cst_97 : f32 to vector<2x10x17x8xf32>
      %c0_98 = arith.constant 0 : index
      %c0_99 = arith.constant 0 : index
      %c0_100 = arith.constant 0 : index
      %c0_101 = arith.constant 0 : index
      %72 = vector.load %arg9[%c0_98, %c0_99, %c0_100, %c0_101] : memref<2x10x17x8xf32, #tpu.memory_space<vmem>>, vector<2x10x17x8xf32>
      tpu.vector_store %arg9[%c0_98, %c0_99, %c0_100, %c0_101], %71 {strides = array<i32>} : memref<2x10x17x8xf32, #tpu.memory_space<vmem>>, vector<2x10x17x8xf32>,
      %cst_102 = arith.constant 0.000000e+00 : f32
      %73 = vector.broadcast %cst_102 : f32 to vector<2x10x17x8xf32>
      %c0_103 = arith.constant 0 : index
      %c0_104 = arith.constant 0 : index
      %c0_105 = arith.constant 0 : index
      %c0_106 = arith.constant 0 : index
      %74 = vector.load %arg10[%c0_103, %c0_104, %c0_105, %c0_106] : memref<2x10x17x8xf32, #tpu.memory_space<vmem>>, vector<2x10x17x8xf32>
      tpu.vector_store %arg10[%c0_103, %c0_104, %c0_105, %c0_106], %73 {strides = array<i32>} : memref<2x10x17x8xf32, #tpu.memory_space<vmem>>, vector<2x10x17x8xf32>,
    } else {
    }
    %c0 = arith.constant 0 : index
    %c0_1 = arith.constant 0 : index
    %c0_2 = arith.constant 0 : index
    %c0_3 = arith.constant 0 : index
    %3 = vector.load %arg1[%c0, %c0_1, %c0_2, %c0_3] : memref<2x8x8x8xf32, #tpu.memory_space<vmem>>, vector<2x8x8x8xf32>
    %c0_4 = arith.constant 0 : index
    %c0_5 = arith.constant 0 : index
    %4 = vector.load %arg2[%c0_4, %c0_5] : memref<1x8xf32, #tpu.memory_space<vmem>>, vector<1x8xf32>
    %5 = vector.shape_cast %4 : vector<1x8xf32> to vector<1x1x1x8xf32>
    %6 = vector.broadcast %5 : vector<1x1x1x8xf32> to vector<2x8x8x8xf32>
    %7 = arith.mulf %3, %6 : vector<2x8x8x8xf32>
    %c0_6 = arith.constant 0 : index
    %c0_7 = arith.constant 0 : index
    %8 = vector.load %arg3[%c0_6, %c0_7] : memref<1x8xf32, #tpu.memory_space<vmem>>, vector<1x8xf32>
    %9 = vector.shape_cast %8 : vector<1x8xf32> to vector<1x1x1x8xf32>
    %10 = vector.broadcast %9 : vector<1x1x1x8xf32> to vector<2x8x8x8xf32>
    %11 = arith.addf %7, %10 : vector<2x8x8x8xf32>
    %cst = arith.constant 0.000000e+00 : f32
    %12 = vector.broadcast %cst : f32 to vector<2x8x8x8xf32>
    %13 = arith.maximumf %11, %12 : vector<2x8x8x8xf32>
    %c0_8 = arith.constant 0 : index
    %c1 = arith.constant 1 : index
    %c8 = arith.constant 8 : index
    %c0_9 = arith.constant 0 : index
    %14 = vector.load %arg9[%c0_8, %c1, %c8, %c0_9] : memref<2x10x17x8xf32, #tpu.memory_space<vmem>>, vector<2x8x8x8xf32>
    tpu.vector_store %arg9[%c0_8, %c1, %c8, %c0_9], %13 {strides = array<i32>} : memref<2x10x17x8xf32, #tpu.memory_space<vmem>>, vector<2x8x8x8xf32>,
    %c0_10 = arith.constant 0 : index
    %c0_11 = arith.constant 0 : index
    %c7 = arith.constant 7 : index
    %c0_12 = arith.constant 0 : index
    %15 = vector.load %arg9[%c0_10, %c0_11, %c7, %c0_12] : memref<2x10x17x8xf32, #tpu.memory_space<vmem>>, vector<2x8x8x8xf32>
    %16 = vector.shape_cast %15 : vector<2x8x8x8xf32> to vector<128x8xf32>
    %c0_13 = arith.constant 0 : index
    %c0_14 = arith.constant 0 : index
    %c8_15 = arith.constant 8 : index
    %c0_16 = arith.constant 0 : index
    %17 = vector.load %arg9[%c0_13, %c0_14, %c8_15, %c0_16] : memref<2x10x17x8xf32, #tpu.memory_space<vmem>>, vector<2x8x8x8xf32>
    %18 = vector.shape_cast %17 : vector<2x8x8x8xf32> to vector<128x8xf32>
    %c0_17 = arith.constant 0 : index
    %c0_18 = arith.constant 0 : index
    %c9 = arith.constant 9 : index
    %c0_19 = arith.constant 0 : index
    %19 = vector.load %arg9[%c0_17, %c0_18, %c9, %c0_19] : memref<2x10x17x8xf32, #tpu.memory_space<vmem>>, vector<2x8x8x8xf32>
    %20 = vector.shape_cast %19 : vector<2x8x8x8xf32> to vector<128x8xf32>
    %c0_20 = arith.constant 0 : index
    %c1_21 = arith.constant 1 : index
    %c7_22 = arith.constant 7 : index
    %c0_23 = arith.constant 0 : index
    %21 = vector.load %arg9[%c0_20, %c1_21, %c7_22, %c0_23] : memref<2x10x17x8xf32, #tpu.memory_space<vmem>>, vector<2x8x8x8xf32>
    %22 = vector.shape_cast %21 : vector<2x8x8x8xf32> to vector<128x8xf32>
    %c0_24 = arith.constant 0 : index
    %c1_25 = arith.constant 1 : index
    %c8_26 = arith.constant 8 : index
    %c0_27 = arith.constant 0 : index
    %23 = vector.load %arg9[%c0_24, %c1_25, %c8_26, %c0_27] : memref<2x10x17x8xf32, #tpu.memory_space<vmem>>, vector<2x8x8x8xf32>
    %24 = vector.shape_cast %23 : vector<2x8x8x8xf32> to vector<128x8xf32>
    %c0_28 = arith.constant 0 : index
    %c1_29 = arith.constant 1 : index
    %c9_30 = arith.constant 9 : index
    %c0_31 = arith.constant 0 : index
    %25 = vector.load %arg9[%c0_28, %c1_29, %c9_30, %c0_31] : memref<2x10x17x8xf32, #tpu.memory_space<vmem>>, vector<2x8x8x8xf32>
    %26 = vector.shape_cast %25 : vector<2x8x8x8xf32> to vector<128x8xf32>
    %c0_32 = arith.constant 0 : index
    %c2 = arith.constant 2 : index
    %c7_33 = arith.constant 7 : index
    %c0_34 = arith.constant 0 : index
    %27 = vector.load %arg9[%c0_32, %c2, %c7_33, %c0_34] : memref<2x10x17x8xf32, #tpu.memory_space<vmem>>, vector<2x8x8x8xf32>
    %28 = vector.shape_cast %27 : vector<2x8x8x8xf32> to vector<128x8xf32>
    %c0_35 = arith.constant 0 : index
    %c2_36 = arith.constant 2 : index
    %c8_37 = arith.constant 8 : index
    %c0_38 = arith.constant 0 : index
    %29 = vector.load %arg9[%c0_35, %c2_36, %c8_37, %c0_38] : memref<2x10x17x8xf32, #tpu.memory_space<vmem>>, vector<2x8x8x8xf32>
    %30 = vector.shape_cast %29 : vector<2x8x8x8xf32> to vector<128x8xf32>
    %c0_39 = arith.constant 0 : index
    %c2_40 = arith.constant 2 : index
    %c9_41 = arith.constant 9 : index
    %c0_42 = arith.constant 0 : index
    %31 = vector.load %arg9[%c0_39, %c2_40, %c9_41, %c0_42] : memref<2x10x17x8xf32, #tpu.memory_space<vmem>>, vector<2x8x8x8xf32>
    %32 = vector.shape_cast %31 : vector<2x8x8x8xf32> to vector<128x8xf32>
    %33 = tpu.concatenate %16, %18, %20, %22, %24, %26, %28, %30, %32 in 1 : vector<128x8xf32>, vector<128x8xf32>, vector<128x8xf32>, vector<128x8xf32>, vector<128x8xf32>, vector<128x8xf32>, vector<128x8xf32>, vector<128x8xf32>, vector<128x8xf32> -> vector<128x72xf32>
    %c0_43 = arith.constant 0 : index
    %c0_44 = arith.constant 0 : index
    %34 = vector.load %arg4[%c0_43, %c0_44] : memref<72x8xf32, #tpu.memory_space<vmem>>, vector<72x8xf32>
    %cst_45 = arith.constant dense<0.000000e+00> : vector<128x8xf32>
    %35 = tpu.matmul %33, %34, %cst_45 {dimension_numbers = #tpu.dot_dimension_numbers<[1], [0], [0], [1], [0, 0, 1, 1], [], []>} : vector<128x72xf32>, vector<72x8xf32>, vector<128x8xf32> -> vector<128x8xf32>
    %c0_46 = arith.constant 0 : index
    %c0_47 = arith.constant 0 : index
    %36 = vector.load %arg5[%c0_46, %c0_47] : memref<1x8xf32, #tpu.memory_space<vmem>>, vector<1x8xf32>
    %37 = vector.broadcast %36 : vector<1x8xf32> to vector<128x8xf32>
    %38 = arith.mulf %35, %37 : vector<128x8xf32>
    %c0_48 = arith.constant 0 : index
    %c0_49 = arith.constant 0 : index
    %39 = vector.load %arg6[%c0_48, %c0_49] : memref<1x8xf32, #tpu.memory_space<vmem>>, vector<1x8xf32>
    %40 = vector.broadcast %39 : vector<1x8xf32> to vector<128x8xf32>
    %41 = arith.addf %38, %40 : vector<128x8xf32>
    %cst_50 = arith.constant 0.000000e+00 : f32
    %42 = vector.broadcast %cst_50 : f32 to vector<128x8xf32>
    %43 = arith.maximumf %41, %42 : vector<128x8xf32>
    %44 = vector.shape_cast %43 : vector<128x8xf32> to vector<2x8x8x8xf32>
    %c0_51 = arith.constant 0 : index
    %c1_52 = arith.constant 1 : index
    %c8_53 = arith.constant 8 : index
    %c0_54 = arith.constant 0 : index
    %45 = vector.load %arg10[%c0_51, %c1_52, %c8_53, %c0_54] : memref<2x10x17x8xf32, #tpu.memory_space<vmem>>, vector<2x8x8x8xf32>
    tpu.vector_store %arg10[%c0_51, %c1_52, %c8_53, %c0_54], %44 {strides = array<i32>} : memref<2x10x17x8xf32, #tpu.memory_space<vmem>>, vector<2x8x8x8xf32>,
    %c0_55 = arith.constant 0 : index
    %c0_56 = arith.constant 0 : index
    %c7_57 = arith.constant 7 : index
    %c0_58 = arith.constant 0 : index
    %46 = vector.load %arg10[%c0_55, %c0_56, %c7_57, %c0_58] : memref<2x10x17x8xf32, #tpu.memory_space<vmem>>, vector<2x8x8x8xf32>
    %47 = vector.shape_cast %46 : vector<2x8x8x8xf32> to vector<128x8xf32>
    %c0_59 = arith.constant 0 : index
    %c0_60 = arith.constant 0 : index
    %c8_61 = arith.constant 8 : index
    %c0_62 = arith.constant 0 : index
    %48 = vector.load %arg10[%c0_59, %c0_60, %c8_61, %c0_62] : memref<2x10x17x8xf32, #tpu.memory_space<vmem>>, vector<2x8x8x8xf32>
    %49 = vector.shape_cast %48 : vector<2x8x8x8xf32> to vector<128x8xf32>
    %c0_63 = arith.constant 0 : index
    %c0_64 = arith.constant 0 : index
    %c9_65 = arith.constant 9 : index
    %c0_66 = arith.constant 0 : index
    %50 = vector.load %arg10[%c0_63, %c0_64, %c9_65, %c0_66] : memref<2x10x17x8xf32, #tpu.memory_space<vmem>>, vector<2x8x8x8xf32>
    %51 = vector.shape_cast %50 : vector<2x8x8x8xf32> to vector<128x8xf32>
    %c0_67 = arith.constant 0 : index
    %c1_68 = arith.constant 1 : index
    %c7_69 = arith.constant 7 : index
    %c0_70 = arith.constant 0 : index
    %52 = vector.load %arg10[%c0_67, %c1_68, %c7_69, %c0_70] : memref<2x10x17x8xf32, #tpu.memory_space<vmem>>, vector<2x8x8x8xf32>
    %53 = vector.shape_cast %52 : vector<2x8x8x8xf32> to vector<128x8xf32>
    %c0_71 = arith.constant 0 : index
    %c1_72 = arith.constant 1 : index
    %c8_73 = arith.constant 8 : index
    %c0_74 = arith.constant 0 : index
    %54 = vector.load %arg10[%c0_71, %c1_72, %c8_73, %c0_74] : memref<2x10x17x8xf32, #tpu.memory_space<vmem>>, vector<2x8x8x8xf32>
    %55 = vector.shape_cast %54 : vector<2x8x8x8xf32> to vector<128x8xf32>
    %c0_75 = arith.constant 0 : index
    %c1_76 = arith.constant 1 : index
    %c9_77 = arith.constant 9 : index
    %c0_78 = arith.constant 0 : index
    %56 = vector.load %arg10[%c0_75, %c1_76, %c9_77, %c0_78] : memref<2x10x17x8xf32, #tpu.memory_space<vmem>>, vector<2x8x8x8xf32>
    %57 = vector.shape_cast %56 : vector<2x8x8x8xf32> to vector<128x8xf32>
    %c0_79 = arith.constant 0 : index
    %c2_80 = arith.constant 2 : index
    %c7_81 = arith.constant 7 : index
    %c0_82 = arith.constant 0 : index
    %58 = vector.load %arg10[%c0_79, %c2_80, %c7_81, %c0_82] : memref<2x10x17x8xf32, #tpu.memory_space<vmem>>, vector<2x8x8x8xf32>
    %59 = vector.shape_cast %58 : vector<2x8x8x8xf32> to vector<128x8xf32>
    %c0_83 = arith.constant 0 : index
    %c2_84 = arith.constant 2 : index
    %c8_85 = arith.constant 8 : index
    %c0_86 = arith.constant 0 : index
    %60 = vector.load %arg10[%c0_83, %c2_84, %c8_85, %c0_86] : memref<2x10x17x8xf32, #tpu.memory_space<vmem>>, vector<2x8x8x8xf32>
    %61 = vector.shape_cast %60 : vector<2x8x8x8xf32> to vector<128x8xf32>
    %c0_87 = arith.constant 0 : index
    %c2_88 = arith.constant 2 : index
    %c9_89 = arith.constant 9 : index
    %c0_90 = arith.constant 0 : index
    %62 = vector.load %arg10[%c0_87, %c2_88, %c9_89, %c0_90] : memref<2x10x17x8xf32, #tpu.memory_space<vmem>>, vector<2x8x8x8xf32>
    %63 = vector.shape_cast %62 : vector<2x8x8x8xf32> to vector<128x8xf32>
    %64 = tpu.concatenate %47, %49, %51, %53, %55, %57, %59, %61, %63 in 1 : vector<128x8xf32>, vector<128x8xf32>, vector<128x8xf32>, vector<128x8xf32>, vector<128x8xf32>, vector<128x8xf32>, vector<128x8xf32>, vector<128x8xf32>, vector<128x8xf32> -> vector<128x72xf32>
    %c0_91 = arith.constant 0 : index
    %c0_92 = arith.constant 0 : index
    %65 = vector.load %arg7[%c0_91, %c0_92] : memref<72x8xf32, #tpu.memory_space<vmem>>, vector<72x8xf32>
    %cst_93 = arith.constant dense<0.000000e+00> : vector<128x8xf32>
    %66 = tpu.matmul %64, %65, %cst_93 {dimension_numbers = #tpu.dot_dimension_numbers<[1], [0], [0], [1], [0, 0, 1, 1], [], []>} : vector<128x72xf32>, vector<72x8xf32>, vector<128x8xf32> -> vector<128x8xf32>
    %67 = vector.shape_cast %3 : vector<2x8x8x8xf32> to vector<128x8xf32>
    %68 = arith.addf %66, %67 : vector<128x8xf32>
    %69 = vector.shape_cast %68 : vector<128x8xf32> to vector<2x64x8xf32>
    %c0_94 = arith.constant 0 : index
    %c0_95 = arith.constant 0 : index
    %c0_96 = arith.constant 0 : index
    %70 = vector.load %arg8[%c0_94, %c0_95, %c0_96] : memref<2x64x8xf32, #tpu.memory_space<vmem>>, vector<2x64x8xf32>
    tpu.vector_store %arg8[%c0_94, %c0_95, %c0_96], %69 {strides = array<i32>} : memref<2x64x8xf32, #tpu.memory_space<vmem>>, vector<2x64x8xf32>,
    return
  }
  func.func @transform_0(%arg0: i32) -> (i32, i32, i32, i32) {
    %c0_i32 = arith.constant 0 : i32
    %c0_i32_0 = arith.constant 0 : i32
    %c0_i32_1 = arith.constant 0 : i32
    %c0_i32_2 = arith.constant 0 : i32
    return %arg0, %c0_i32, %c0_i32_0, %c0_i32_1 : i32, i32, i32, i32
  }
  func.func @transform_1(%arg0: i32) -> (i32, i32) {
    %c0_i32 = arith.constant 0 : i32
    %c0_i32_0 = arith.constant 0 : i32
    %c0_i32_1 = arith.constant 0 : i32
    return %c0_i32, %c0_i32_0 : i32, i32
  }
  func.func @transform_2(%arg0: i32) -> (i32, i32) {
    %c0_i32 = arith.constant 0 : i32
    %c0_i32_0 = arith.constant 0 : i32
    %c0_i32_1 = arith.constant 0 : i32
    return %c0_i32, %c0_i32_0 : i32, i32
  }
  func.func @transform_3(%arg0: i32) -> (i32, i32) {
    %c0_i32 = arith.constant 0 : i32
    %c0_i32_0 = arith.constant 0 : i32
    %c0_i32_1 = arith.constant 0 : i32
    return %c0_i32, %c0_i32_0 : i32, i32
  }
  func.func @transform_4(%arg0: i32) -> (i32, i32) {
    %c0_i32 = arith.constant 0 : i32
    %c0_i32_0 = arith.constant 0 : i32
    %c0_i32_1 = arith.constant 0 : i32
    return %c0_i32, %c0_i32_0 : i32, i32
  }
  func.func @transform_5(%arg0: i32) -> (i32, i32) {
    %c0_i32 = arith.constant 0 : i32
    %c0_i32_0 = arith.constant 0 : i32
    %c0_i32_1 = arith.constant 0 : i32
    return %c0_i32, %c0_i32_0 : i32, i32
  }
  func.func @transform_6(%arg0: i32) -> (i32, i32) {
    %c0_i32 = arith.constant 0 : i32
    %c0_i32_0 = arith.constant 0 : i32
    %c0_i32_1 = arith.constant 0 : i32
    return %c0_i32, %c0_i32_0 : i32, i32
  }
  func.func @transform_7(%arg0: i32) -> (i32, i32, i32) {
    %c0_i32 = arith.constant 0 : i32
    %c0_i32_0 = arith.constant 0 : i32
    %c0_i32_1 = arith.constant 0 : i32
    return %arg0, %c0_i32, %c0_i32_0 : i32, i32, i32
  }
}

</mosaic_0001>

<bundles_post_ra>
// kernel: _lambda_.3
= control target key start
LH: loop header
LB: loop body
LE: loop exit
PB: predicated region body
PF: predicated region fallthrough
CT: control target
= control target key end

     0   :  { %vm30_vm0 = vcmask 64512   ;;  %vm33_vm1 = vcmask 57344   ;;  %v2540_v0 = vmov 0.0   ;;  %s2541_s24 = smov 16   ;;  %s2542_s25 = smov 8   ;;  %vm921_vm2 = vcmask 130048   ;;  %s4000_s3 = inlined_call_operand.vmem [shape: f32[72,8], index: 3, kind: input, shape index: {}]   ;;  %s4001_s4 = inlined_call_operand.vmem [shape: f32[1,8], index: 4, kind: input, shape index: {}]   ;;  %s4002_s5 = inlined_call_operand.vmem [shape: f32[1,8], index: 5, kind: input, shape index: {}]   ;;  %s4003_s6 = inlined_call_operand.vmem [shape: f32[72,8], index: 6, kind: input, shape index: {}]   ;;  %s4004_s0 = inlined_call_operand.vmem [shape: f32[2,8,8,8], index: 0, kind: input, shape index: {}]   ;;  %s4005_s1 = inlined_call_operand.vmem [shape: f32[1,8], index: 1, kind: input, shape index: {}]   ;;  %s4006_s2 = inlined_call_operand.vmem [shape: f32[1,8], index: 2, kind: input, shape index: {}]   ;;  %s4007_s7 = inlined_call_operand.vmem [shape: f32[2,64,8], index: 7, kind: output, shape index: {}]  }
   0x1   :  { %32 = vst.msk [vmem:[#allocation2 + $0x8] sm:$0xff] %vm30_vm0, %v2540_v0  ;;  %31 = vst.msk [vmem:[#allocation2] sm:$0xff] %vm30_vm0, %v2540_v0  ;;  %s2543_s26 = smov 24   ;;  %s2544_s27 = smov 32   ;;  %v1040_v8 = vld [vmem:[%s4000_s3] sm:$0xff]  ;;  %v1041_v9 = vld [vmem:[%s4000_s3 + $0x8] sm:$0xff] }
   0x2   :  { %34 = vst.msk [vmem:[#allocation2 + $0x10] sm:$0x1] %vm33_vm1, %v2540_v0  ;;  %37 = vst.msk [vmem:[#allocation2 + $0x28] sm:$0x1] %vm33_vm1, %v2540_v0  ;;  %s2545_s9 = smov 40   ;;  %v2499_v10 = vpack.c.bf16 %v1041_v9, %v1040_v8  ;;  %v1042_v13 = vld [vmem:[%s4000_s3 + $0x10] sm:$0xff] }
   0x3   :  { %35 = vst.msk [vmem:[#allocation2 + $0x18] sm:$0xff] %vm30_vm0, %v2540_v0  ;;  %36 = vst.msk [vmem:[#allocation2 + $0x20] sm:$0xff] %vm30_vm0, %v2540_v0  ;;  %v1043_v14 = vld [vmem:[%s4000_s3 + $0x18] sm:$0xff]  ;;  %v1044_v16 = vld [vmem:[%s4000_s3 + $0x20] sm:$0xff]  ;;  %s2546_s18 = smov 48   ;;  %s2547_s23 = smov 56  }
   0x4   :  { %38 = vst.msk [vmem:[#allocation2 + $0x30] sm:$0xff] %vm30_vm0, %v2540_v0  ;;  %39 = vst.msk [vmem:[#allocation2 + $0x38] sm:$0xff] %vm30_vm0, %v2540_v0  ;;  %2500 = vmatprep.subr.bf16.mxu0 %v2499_v10  ;;  %v2503_v15 = vpack.c.bf16 %v1043_v14, %v1042_v13  ;;  %v1045_v17 = vld [vmem:[%s4000_s3 + $0x28] sm:$0xff]  ;;  %v1046_v21 = vld [vmem:[%s4000_s3 + $0x30] sm:$0xff]  ;;  %s2548_s30 = smov 64   ;;  %vm938_vm3 = vcmask 195584  }
   0x5   :  { %40 = vst.msk [vmem:[#allocation2 + $0x40] sm:$0x1] %vm33_vm1, %v2540_v0  ;;  %43 = vst.msk [vmem:[#allocation2 + $0x58] sm:$0x1] %vm33_vm1, %v2540_v0  ;;  %2502 = vmatpush3.bf16.msra.mxu0 %v2499_v10  ;;  %v2507_v18 = vpack.c.bf16 %v1045_v17, %v1044_v16  ;;  %v1047_v22 = vld [vmem:[%s4000_s3 + $0x38] sm:$0xff]  ;;  %v1048_v25 = vld [vmem:[%s4000_s3 + $0x40] sm:$0xff] }
   0x6   :  { %41 = vst.msk [vmem:[#allocation2 + $0x48] sm:$0xff] %vm30_vm0, %v2540_v0  ;;  %42 = vst.msk [vmem:[#allocation2 + $0x50] sm:$0xff] %vm30_vm0, %v2540_v0  ;;  %2504 = vmatprep.subr.bf16.mxu0 %v2503_v15  ;;  %v2511_v23 = vpack.c.bf16 %v1047_v22, %v1046_v21  ;;  %vm955_vm4 = vcmask 261120   ;;  %vm972_vm5 = vcmask 326656   ;;  %vm989_vm6 = vcmask 392192  }
   0x7   :  { %44 = vst.msk [vmem:[#allocation2 + $0x60] sm:$0xff] %vm30_vm0, %v2540_v0  ;;  %45 = vst.msk [vmem:[#allocation2 + $0x68] sm:$0xff] %vm30_vm0, %v2540_v0  ;;  %vm1006_vm7 = vcmask 457728   ;;  %vm1023_vm8 = vcmask 523264   ;;  %vm1049_vm9 = vcmask 588800  }
   0x8   :  { %46 = vst.msk [vmem:[#allocation2 + $0x70] sm:$0x1] %vm33_vm1, %v2540_v0  ;;  %49 = vst.msk [vmem:[#allocation2 + $0x88] sm:$0x1] %vm33_vm1, %v2540_v0  ;;  %v264_v2 = vld [vmem:[#allocation2 + $0x8] sm:$0xff] }
   0x9   :  { %47 = vst.msk [vmem:[#allocation2 + $0x78] sm:$0xff] %vm30_vm0, %v2540_v0  ;;  %48 = vst.msk [vmem:[#allocation2 + $0x80] sm:$0xff] %vm30_vm0, %v2540_v0  ;;  %v280_v1 = vld [vmem:[#allocation2 + $0x9] sm:$0xff]  ;;  %409 = vrot.lane.b32.xlu0 %v264_v2, %s2542_s25  ;;  %2506 = vmatpush3.bf16.msra.mxu0 %v2503_v15 }
   0xa   :  { %50 = vst.msk [vmem:[#allocation2 + $0x90] sm:$0xff] %vm30_vm0, %v2540_v0  ;;  %51 = vst.msk [vmem:[#allocation2 + $0x98] sm:$0xff] %vm30_vm0, %v2540_v0  ;;  %473 = vrot.lane.b32.xlu1 %v280_v1, %s2541_s24  ;;  %v281_v3 = vld [vmem:[#allocation2 + $0x21] sm:$0xff]  ;;  %2508 = vmatprep.subr.bf16.mxu0 %v2507_v18 }
   0xb   :  { %52 = vst.msk [vmem:[#allocation2 + $0xa0] sm:$0x1] %vm33_vm1, %v2540_v0  ;;  %55 = vst.msk [vmem:[#allocation2 + $0xb8] sm:$0x1] %vm33_vm1, %v2540_v0  ;;  %v265_v4 = vld [vmem:[#allocation2 + $0x20] sm:$0xff]  ;;  %v2833_v5 = vld [vmem:[#allocation2 + $0x37] sm:$0xff] }
   0xc   :  { %53 = vst.msk [vmem:[#allocation2 + $0xa8] sm:$0xff] %vm30_vm0, %v2540_v0  ;;  %54 = vst.msk [vmem:[#allocation2 + $0xb0] sm:$0xff] %vm30_vm0, %v2540_v0  ;;  %v2835_v6 = vld [vmem:[#allocation2 + $0x1f] sm:$0xff]  ;;  %v248_v2 = vld [vmem:[#allocation2 + $0x7] sm:$0xff] }
   0xd   :  { %56 = vst.msk [vmem:[#allocation2 + $0xc0] sm:$0xff] %vm30_vm0, %v2540_v0  ;;  %57 = vst.msk [vmem:[#allocation2 + $0xc8] sm:$0xff] %vm30_vm0, %v2540_v0  ;;  %411 = vrot.lane.b32.xlu0 %v265_v4, %s2542_s25  ;;  %v266_v7 = vld [vmem:[#allocation2 + $0x38] sm:$0xff]  ;;  %v267_v12 = vld [vmem:[#allocation2 + $0x50] sm:$0xff]  ;;  %2510 = vmatpush3.bf16.msra.mxu0 %v2507_v18 }
   0xe   :  { %58 = vst.msk [vmem:[#allocation2 + $0xd0] sm:$0x1] %vm33_vm1, %v2540_v0  ;;  %61 = vst.msk [vmem:[#allocation2 + $0xe8] sm:$0x1] %vm33_vm1, %v2540_v0  ;;  %475 = vrot.lane.b32.xlu1 %v281_v3, %s2541_s24  ;;  %v282_v11 = vld [vmem:[#allocation2 + $0x39] sm:$0xff]  ;;  %v2868_v19 = vld [vmem:[#allocation2 + $0x4f] sm:$0xff]  ;;  %2512 = vmatprep.subr.bf16.mxu0 %v2511_v23 }
   0xf   :  { %59 = vst.msk [vmem:[#allocation2 + $0xd8] sm:$0xff] %vm30_vm0, %v2540_v0  ;;  %60 = vst.msk [vmem:[#allocation2 + $0xe0] sm:$0xff] %vm30_vm0, %v2540_v0  ;;  %v283_v20 = vld [vmem:[#allocation2 + $0x51] sm:$0xff]  ;;  %v2882_v24 = vld [vmem:[#allocation2 + $0x67] sm:$0xff] }
  0x10   :  { %62 = vst.msk [vmem:[#allocation2 + $0xf0] sm:$0xff] %vm30_vm0, %v2540_v0  ;;  %63 = vst.msk [vmem:[#allocation2 + $0xf8] sm:$0xff] %vm30_vm0, %v2540_v0  ;;  %v315_v26 = vld [vmem:[#allocation2 + $0x68] sm:$0xff]  ;;  %v269_v28 = vld [vmem:[#allocation2 + $0x80] sm:$0xff] }
  0x11   :  { %64 = vst.msk [vmem:[#allocation2 + $0x100] sm:$0x1] %vm33_vm1, %v2540_v0  ;;  %67 = vst.msk [vmem:[#allocation2 + $0x118] sm:$0x1] %vm33_vm1, %v2540_v0  ;;  %537 = vrot.lane.b32.xlu0 %v2835_v6, %s2543_s26  ;;  %2514 = vmatpush3.bf16.msra.mxu0 %v2511_v23  ;;  %v284_v27 = vld [vmem:[#allocation2 + $0x69] sm:$0xff]  ;;  %v2901_v29 = vld [vmem:[#allocation2 + $0x7f] sm:$0xff] }
  0x12   :  { %65 = vst.msk [vmem:[#allocation2 + $0x108] sm:$0xff] %vm30_vm0, %v2540_v0  ;;  %66 = vst.msk [vmem:[#allocation2 + $0x110] sm:$0xff] %vm30_vm0, %v2540_v0  ;;  %539 = vrot.lane.b32.xlu1 %v2833_v5, %s2543_s26  ;;  %2431 = vmatprep.subr.mxu0 %v1048_v25  ;;  %v285_v30 = vld [vmem:[#allocation2 + $0x81] sm:$0xff]  ;;  %v2909_v31 = vld [vmem:[#allocation2 + $0x97] sm:$0xff] }
  0x13   :  { %68 = vst.msk [vmem:[#allocation2 + $0x120] sm:$0xff] %vm30_vm0, %v2540_v0  ;;  %69 = vst.msk [vmem:[#allocation2 + $0x128] sm:$0xff] %vm30_vm0, %v2540_v0  ;;  %v317_v32 = vld [vmem:[#allocation2 + $0x98] sm:$0xff]  ;;  %v271_v34 = vld [vmem:[#allocation2 + $0xb0] sm:$0xff] }
  0x14   :  { %70 = vst.msk [vmem:[#allocation2 + $0x130] sm:$0x1] %vm33_vm1, %v2540_v0  ;;  %73 = vst.msk [vmem:[#allocation2 + $0x148] sm:$0x1] %vm33_vm1, %v2540_v0  ;;  %v286_v33 = vld [vmem:[#allocation2 + $0x99] sm:$0xff]  ;;  %v2925_v35 = vld [vmem:[#allocation2 + $0xaf] sm:$0xff] }
  0x15   :  { %71 = vst.msk [vmem:[#allocation2 + $0x138] sm:$0xff] %vm30_vm0, %v2540_v0  ;;  %72 = vst.msk [vmem:[#allocation2 + $0x140] sm:$0xff] %vm30_vm0, %v2540_v0  ;;  %601 = vrot.lane.b32.xlu0 %v265_v4, %s2544_s27  ;;  %2432 = vmatpush3.msra.mxu0 %v1048_v25  ;;  %v287_v36 = vld [vmem:[#allocation2 + $0xb1] sm:$0xff]  ;;  %v303_v37 = vld [vmem:[#allocation2 + $0xc7] sm:$0xff] }
  0x16   :  { %74 = vst.msk [vmem:[#allocation2 + $0x150] sm:$0xff] %vm30_vm0, %v2540_v0  ;;  %75 = vst.msk [vmem:[#allocation2 + $0x158] sm:$0xff] %vm30_vm0, %v2540_v0  ;;  %413 = vrot.lane.b32.xlu1 %v266_v7, %s2542_s25  ;;  %v319_v38 = vld [vmem:[#allocation2 + $0xc8] sm:$0xff]  ;;  %v352_v51 = vld [vmem:[#allocation2 + $0xdf] sm:$0xff] }
  0x17   :  { %76 = vst.msk [vmem:[#allocation2 + $0x160] sm:$0x1] %vm33_vm1, %v2540_v0  ;;  %79 = vst.msk [vmem:[#allocation2 + $0x178] sm:$0x1] %vm33_vm1, %v2540_v0  ;;  %v272_v39 = vld [vmem:[#allocation2 + $0xf8] sm:$0xff]  ;;  %v335_v44 = vld [vmem:[#allocation2 + $0xc9] sm:$0xff] }
  0x18   :  { %77 = vst.msk [vmem:[#allocation2 + $0x168] sm:$0xff] %vm30_vm0, %v2540_v0  ;;  %78 = vst.msk [vmem:[#allocation2 + $0x170] sm:$0xff] %vm30_vm0, %v2540_v0  ;;  %v288_v40 = vld [vmem:[#allocation2 + $0xf9] sm:$0xff]  ;;  %v384_v63 = vld [vmem:[#allocation2 + $0xe1] sm:$0xff] }
  0x19   :  { %80 = vst.msk [vmem:[#allocation2 + $0x180] sm:$0xff] %vm30_vm0, %v2540_v0  ;;  %81 = vst.msk [vmem:[#allocation2 + $0x188] sm:$0xff] %vm30_vm0, %v2540_v0  ;;  %603 = vrot.lane.b32.xlu0 %v266_v7, %s2544_s27  ;;  %v273_v41 = vld [vmem:[#allocation2 + $0x110] sm:$0xff]  ;;  %v368_v57 = vld [vmem:[#allocation2 + $0xe0] sm:$0xff] }
  0x1a   :  { %82 = vst.msk [vmem:[#allocation2 + $0x190] sm:$0x1] %vm33_vm1, %v2540_v0  ;;  %85 = vst.msk [vmem:[#allocation2 + $0x1a8] sm:$0x1] %vm33_vm1, %v2540_v0  ;;  %665 = vrot.lane.b32.xlu1 %v281_v3, %s2545_s9  ;;  %v2947_v47 = vld [vmem:[#allocation2 + $0x10f] sm:$0xff]  ;;  %v2958_v54 = vld [vmem:[#allocation2 + $0x127] sm:$0xff] }
  0x1b   :  { %83 = vst.msk [vmem:[#allocation2 + $0x198] sm:$0xff] %vm30_vm0, %v2540_v0  ;;  %84 = vst.msk [vmem:[#allocation2 + $0x1a0] sm:$0xff] %vm30_vm0, %v2540_v0  ;;  %v289_v48 = vld [vmem:[#allocation2 + $0x111] sm:$0xff]  ;;  %v321_v60 = vld [vmem:[#allocation2 + $0x128] sm:$0xff] }
  0x1c   :  { %86 = vst.msk [vmem:[#allocation2 + $0x1b0] sm:$0xff] %vm30_vm0, %v2540_v0  ;;  %87 = vst.msk [vmem:[#allocation2 + $0x1b8] sm:$0xff] %vm30_vm0, %v2540_v0  ;;  %v290_v3 = vld [vmem:[#allocation2 + $0x129] sm:$0xff]  ;;  %v275_v4 = vld [vmem:[#allocation2 + $0x140] sm:$0xff] }
  0x1d   :  { %88 = vst.msk [vmem:[#allocation2 + $0x1c0] sm:$0x1] %vm33_vm1, %v2540_v0  ;;  %91 = vst.msk [vmem:[#allocation2 + $0x1d8] sm:$0x1] %vm33_vm1, %v2540_v0  ;;  %415 = vrot.lane.b32.xlu0 %v267_v12, %s2542_s25  ;;  %v2990_v17 = vld [vmem:[#allocation2 + $0x13f] sm:$0xff] }
  0x1e   :  { %89 = vst.msk [vmem:[#allocation2 + $0x1c8] sm:$0xff] %vm30_vm0, %v2540_v0  ;;  %90 = vst.msk [vmem:[#allocation2 + $0x1d0] sm:$0xff] %vm30_vm0, %v2540_v0  ;;  %477 = vrot.lane.b32.xlu1 %v282_v11, %s2541_s24  ;;  %v291_v18 = vld [vmem:[#allocation2 + $0x141] sm:$0xff] }
  0x1f   :  { %92 = vst.msk [vmem:[#allocation3] sm:$0xff] %vm30_vm0, %v2540_v0  ;;  %93 = vst.msk [vmem:[#allocation3 + $0x8] sm:$0xff] %vm30_vm0, %v2540_v0 }
  0x20   :  { %94 = vst.msk [vmem:[#allocation3 + $0x10] sm:$0x1] %vm33_vm1, %v2540_v0  ;;  %97 = vst.msk [vmem:[#allocation3 + $0x28] sm:$0x1] %vm33_vm1, %v2540_v0 }
  0x21   :  { %95 = vst.msk [vmem:[#allocation3 + $0x18] sm:$0xff] %vm30_vm0, %v2540_v0  ;;  %96 = vst.msk [vmem:[#allocation3 + $0x20] sm:$0xff] %vm30_vm0, %v2540_v0  ;;  %667 = vrot.lane.b32.xlu0 %v282_v11, %s2545_s9 }
  0x22   :  { %98 = vst.msk [vmem:[#allocation3 + $0x30] sm:$0xff] %vm30_vm0, %v2540_v0  ;;  %99 = vst.msk [vmem:[#allocation3 + $0x38] sm:$0xff] %vm30_vm0, %v2540_v0  ;;  %729 = vrot.lane.b32.xlu1 %v2833_v5, %s2546_s18 }
  0x23   :  { %100 = vst.msk [vmem:[#allocation3 + $0x40] sm:$0x1] %vm33_vm1, %v2540_v0  ;;  %103 = vst.msk [vmem:[#allocation3 + $0x58] sm:$0x1] %vm33_vm1, %v2540_v0 }
  0x24   :  { %101 = vst.msk [vmem:[#allocation3 + $0x48] sm:$0xff] %vm30_vm0, %v2540_v0  ;;  %102 = vst.msk [vmem:[#allocation3 + $0x50] sm:$0xff] %vm30_vm0, %v2540_v0 }
  0x25   :  { %104 = vst.msk [vmem:[#allocation3 + $0x60] sm:$0xff] %vm30_vm0, %v2540_v0  ;;  %105 = vst.msk [vmem:[#allocation3 + $0x68] sm:$0xff] %vm30_vm0, %v2540_v0  ;;  %479 = vrot.lane.b32.xlu0 %v283_v20, %s2541_s24 }
  0x26   :  { %106 = vst.msk [vmem:[#allocation3 + $0x70] sm:$0x1] %vm33_vm1, %v2540_v0  ;;  %109 = vst.msk [vmem:[#allocation3 + $0x88] sm:$0x1] %vm33_vm1, %v2540_v0  ;;  %541 = vrot.lane.b32.xlu1 %v2868_v19, %s2543_s26 }
  0x27   :  { %107 = vst.msk [vmem:[#allocation3 + $0x78] sm:$0xff] %vm30_vm0, %v2540_v0  ;;  %108 = vst.msk [vmem:[#allocation3 + $0x80] sm:$0xff] %vm30_vm0, %v2540_v0 }
  0x28   :  { %110 = vst.msk [vmem:[#allocation3 + $0x90] sm:$0xff] %vm30_vm0, %v2540_v0  ;;  %111 = vst.msk [vmem:[#allocation3 + $0x98] sm:$0xff] %vm30_vm0, %v2540_v0 }
  0x29   :  { %112 = vst.msk [vmem:[#allocation3 + $0xa0] sm:$0x1] %vm33_vm1, %v2540_v0  ;;  %115 = vst.msk [vmem:[#allocation3 + $0xb8] sm:$0x1] %vm33_vm1, %v2540_v0  ;;  %731 = vrot.lane.b32.xlu0 %v2868_v19, %s2546_s18 }
  0x2a   :  { %113 = vst.msk [vmem:[#allocation3 + $0xa8] sm:$0xff] %vm30_vm0, %v2540_v0  ;;  %114 = vst.msk [vmem:[#allocation3 + $0xb0] sm:$0xff] %vm30_vm0, %v2540_v0  ;;  %793 = vrot.lane.b32.xlu1 %v266_v7, %s2547_s23 }
  0x2b   :  { %116 = vst.msk [vmem:[#allocation3 + $0xc0] sm:$0xff] %vm30_vm0, %v2540_v0  ;;  %117 = vst.msk [vmem:[#allocation3 + $0xc8] sm:$0xff] %vm30_vm0, %v2540_v0 }
  0x2c   :  { %118 = vst.msk [vmem:[#allocation3 + $0xd0] sm:$0x1] %vm33_vm1, %v2540_v0  ;;  %121 = vst.msk [vmem:[#allocation3 + $0xe8] sm:$0x1] %vm33_vm1, %v2540_v0 }
  0x2d   :  { %119 = vst.msk [vmem:[#allocation3 + $0xd8] sm:$0xff] %vm30_vm0, %v2540_v0  ;;  %120 = vst.msk [vmem:[#allocation3 + $0xe0] sm:$0xff] %vm30_vm0, %v2540_v0  ;;  %543 = vrot.lane.b32.xlu0 %v2882_v24, %s2543_s26 }
  0x2e   :  { %122 = vst.msk [vmem:[#allocation3 + $0xf0] sm:$0xff] %vm30_vm0, %v2540_v0  ;;  %123 = vst.msk [vmem:[#allocation3 + $0xf8] sm:$0xff] %vm30_vm0, %v2540_v0  ;;  %605 = vrot.lane.b32.xlu1 %v267_v12, %s2544_s27 }
  0x2f   :  { %124 = vst.msk [vmem:[#allocation3 + $0x100] sm:$0x1] %vm33_vm1, %v2540_v0  ;;  %127 = vst.msk [vmem:[#allocation3 + $0x118] sm:$0x1] %vm33_vm1, %v2540_v0 }
  0x30   :  { %125 = vst.msk [vmem:[#allocation3 + $0x108] sm:$0xff] %vm30_vm0, %v2540_v0  ;;  %126 = vst.msk [vmem:[#allocation3 + $0x110] sm:$0xff] %vm30_vm0, %v2540_v0 }
  0x31   :  { %128 = vst.msk [vmem:[#allocation3 + $0x120] sm:$0xff] %vm30_vm0, %v2540_v0  ;;  %129 = vst.msk [vmem:[#allocation3 + $0x128] sm:$0xff] %vm30_vm0, %v2540_v0  ;;  %795 = vrot.lane.b32.xlu0 %v267_v12, %s2547_s23 }
  0x32   :  { %130 = vst.msk [vmem:[#allocation3 + $0x130] sm:$0x1] %vm33_vm1, %v2540_v0  ;;  %133 = vst.msk [vmem:[#allocation3 + $0x148] sm:$0x1] %vm33_vm1, %v2540_v0  ;;  %857 = vrot.lane.b32.xlu1 %v282_v11, %s2548_s30 }
  0x33   :  { %131 = vst.msk [vmem:[#allocation3 + $0x138] sm:$0xff] %vm30_vm0, %v2540_v0  ;;  %132 = vst.msk [vmem:[#allocation3 + $0x140] sm:$0xff] %vm30_vm0, %v2540_v0 }
  0x34   :  { %134 = vst.msk [vmem:[#allocation3 + $0x150] sm:$0xff] %vm30_vm0, %v2540_v0  ;;  %135 = vst.msk [vmem:[#allocation3 + $0x158] sm:$0xff] %vm30_vm0, %v2540_v0 }
  0x35   :  { %136 = vst.msk [vmem:[#allocation3 + $0x160] sm:$0x1] %vm33_vm1, %v2540_v0  ;;  %139 = vst.msk [vmem:[#allocation3 + $0x178] sm:$0x1] %vm33_vm1, %v2540_v0  ;;  %417 = vrot.lane.b32.xlu0 %v315_v26, %s2542_s25 }
  0x36   :  { %137 = vst.msk [vmem:[#allocation3 + $0x168] sm:$0xff] %vm30_vm0, %v2540_v0  ;;  %138 = vst.msk [vmem:[#allocation3 + $0x170] sm:$0xff] %vm30_vm0, %v2540_v0  ;;  %607 = vrot.lane.b32.xlu1 %v315_v26, %s2544_s27 }
  0x37   :  { %140 = vst.msk [vmem:[#allocation3 + $0x180] sm:$0xff] %vm30_vm0, %v2540_v0  ;;  %141 = vst.msk [vmem:[#allocation3 + $0x188] sm:$0xff] %vm30_vm0, %v2540_v0 }
  0x38   :  { %142 = vst.msk [vmem:[#allocation3 + $0x190] sm:$0x1] %vm33_vm1, %v2540_v0  ;;  %145 = vst.msk [vmem:[#allocation3 + $0x1a8] sm:$0x1] %vm33_vm1, %v2540_v0 }
  0x39   :  { %143 = vst.msk [vmem:[#allocation3 + $0x198] sm:$0xff] %vm30_vm0, %v2540_v0  ;;  %144 = vst.msk [vmem:[#allocation3 + $0x1a0] sm:$0xff] %vm30_vm0, %v2540_v0  ;;  %669 = vrot.lane.b32.xlu0 %v283_v20, %s2545_s9 }
  0x3a   :  { %146 = vst.msk [vmem:[#allocation3 + $0x1b0] sm:$0xff] %vm30_vm0, %v2540_v0  ;;  %147 = vst.msk [vmem:[#allocation3 + $0x1b8] sm:$0xff] %vm30_vm0, %v2540_v0  ;;  %859 = vrot.lane.b32.xlu1 %v283_v20, %s2548_s30 }
  0x3b   :  { %148 = vst.msk [vmem:[#allocation3 + $0x1c0] sm:$0x1] %vm33_vm1, %v2540_v0  ;;  %151 = vst.msk [vmem:[#allocation3 + $0x1d8] sm:$0x1] %vm33_vm1, %v2540_v0 }
  0x3c   :  { %149 = vst.msk [vmem:[#allocation3 + $0x1c8] sm:$0xff] %vm30_vm0, %v2540_v0  ;;  %150 = vst.msk [vmem:[#allocation3 + $0x1d0] sm:$0xff] %vm30_vm0, %v2540_v0 }
  0x3d   :  { %419 = vrot.lane.b32.xlu0 %v269_v28, %s2542_s25 }
  0x3e   :  { %481 = vrot.lane.b32.xlu1 %v284_v27, %s2541_s24 }
  0x41   :  { %671 = vrot.lane.b32.xlu0 %v284_v27, %s2545_s9 }
  0x42   :  { %733 = vrot.lane.b32.xlu1 %v2882_v24, %s2546_s18 }
  0x45   :  { %483 = vrot.lane.b32.xlu0 %v285_v30, %s2541_s24 }
  0x46   :  { %545 = vrot.lane.b32.xlu1 %v2901_v29, %s2543_s26 }
  0x49   :  { %735 = vrot.lane.b32.xlu0 %v2901_v29, %s2546_s18 }
  0x4a   :  { %797 = vrot.lane.b32.xlu1 %v315_v26, %s2547_s23 }
  0x4d   :  { %547 = vrot.lane.b32.xlu0 %v2909_v31, %s2543_s26 }
  0x4e   :  { %609 = vrot.lane.b32.xlu1 %v269_v28, %s2544_s27 }
  0x51   :  { %799 = vrot.lane.b32.xlu0 %v269_v28, %s2547_s23 }
  0x52   :  { %861 = vrot.lane.b32.xlu1 %v284_v27, %s2548_s30 }
  0x55   :  { %421 = vrot.lane.b32.xlu0 %v317_v32, %s2542_s25 }
  0x56   :  { %611 = vrot.lane.b32.xlu1 %v317_v32, %s2544_s27 }
  0x59   :  { %673 = vrot.lane.b32.xlu0 %v285_v30, %s2545_s9 }
  0x5a   :  { %863 = vrot.lane.b32.xlu1 %v285_v30, %s2548_s30 }
  0x5d   :  { %423 = vrot.lane.b32.xlu0 %v271_v34, %s2542_s25 }
  0x5e   :  { %485 = vrot.lane.b32.xlu1 %v286_v33, %s2541_s24 }
  0x61   :  { %675 = vrot.lane.b32.xlu0 %v286_v33, %s2545_s9 }
  0x62   :  { %737 = vrot.lane.b32.xlu1 %v2909_v31, %s2546_s18 }
  0x65   :  { %487 = vrot.lane.b32.xlu0 %v287_v36, %s2541_s24 }
  0x66   :  { %549 = vrot.lane.b32.xlu1 %v2925_v35, %s2543_s26 }
  0x69   :  { %739 = vrot.lane.b32.xlu0 %v2925_v35, %s2546_s18 }
  0x6a   :  { %801 = vrot.lane.b32.xlu1 %v317_v32, %s2547_s23 }
  0x6d   :  { %551 = vrot.lane.b32.xlu0 %v303_v37, %s2543_s26 }
  0x6e   :  { %613 = vrot.lane.b32.xlu1 %v271_v34, %s2544_s27 }
  0x71   :  { %803 = vrot.lane.b32.xlu0 %v271_v34, %s2547_s23  ;;  %v3012_v34 = vld [vmem:[#allocation2 + $0x157] sm:$0xff] }
  0x72   :  { %865 = vrot.lane.b32.xlu1 %v286_v33, %s2548_s30 }
  0x75   :  { %425 = vrot.lane.b32.xlu0 %v272_v39, %s2542_s25 }
  0x76   :  { %615 = vrot.lane.b32.xlu1 %v319_v38, %s2544_s27 }
  0x79   :  { %677 = vrot.lane.b32.xlu0 %v287_v36, %s2545_s9 }
  0x7a   :  { %867 = vrot.lane.b32.xlu1 %v287_v36, %s2548_s30 }
  0x7b   :  { %v410_v43 = vpop.permute.xlu0 %409 }
  0x7c   :  { %v474_v42 = vpop.permute.xlu1 %473  ;;  %v905_v7 = vsel %vm30_vm0, %v248_v2, %v410_v43 }
  0x7d   :  { %427 = vrot.lane.b32.xlu0 %v273_v41, %s2542_s25  ;;  %v922_v10 = vsel %vm921_vm2, %v905_v7, %v474_v42  ;;  %v323_v42 = vld [vmem:[#allocation2 + $0x158] sm:$0xff] }
  0x7e   :  { %489 = vrot.lane.b32.xlu1 %v288_v40, %s2541_s24 }
  0x7f   :  { %v412_v46 = vpop.permute.xlu0 %411 }
  0x80   :  { %v2943_v45 = vpop.permute.xlu1 %475  ;;  %v906_v20 = vsel %vm30_vm0, %v2835_v6, %v412_v46 }
  0x81   :  { %679 = vrot.lane.b32.xlu0 %v335_v44, %s2545_s9  ;;  %v923_v26 = vsel %vm921_vm2, %v906_v20, %v2943_v45  ;;  %v325_v20 = vld [vmem:[#allocation2 + $0x188] sm:$0xff] }
  0x82   :  { %741 = vrot.lane.b32.xlu1 %v303_v37, %s2546_s18 }
  0x83   :  { %v538_v50 = vpop.permute.xlu0 %537 }
  0x84   :  { %v2949_v49 = vpop.permute.xlu1 %539  ;;  %v939_v11 = vsel %vm938_vm3, %v922_v10, %v538_v50 }
  0x85   :  { %491 = vrot.lane.b32.xlu0 %v289_v48, %s2541_s24  ;;  %v940_v6 = vsel %vm938_vm3, %v923_v26, %v2949_v49  ;;  %v277_v49 = vld [vmem:[#allocation2 + $0x170] sm:$0xff] }
  0x86   :  { %553 = vrot.lane.b32.xlu1 %v2947_v47, %s2543_s26  ;;  %v294_v26 = vld [vmem:[#allocation2 + $0x189] sm:$0xff] }
  0x87   :  { %v602_v53 = vpop.permute.xlu0 %601 }
  0x88   :  { %v2954_v52 = vpop.permute.xlu1 %413  ;;  %v956_v14 = vsel %vm955_vm4, %v939_v11, %v602_v53 }
  0x89   :  { %743 = vrot.lane.b32.xlu0 %v352_v51, %s2546_s18  ;;  %v907_v53 = vsel %vm30_vm0, %v2833_v5, %v2954_v52  ;;  %v3051_v52 = vld [vmem:[#allocation2 + $0x16f] sm:$0xff] }
  0x8a   :  { %805 = vrot.lane.b32.xlu1 %v319_v38, %s2547_s23 }
  0x8b   :  { %v604_v56 = vpop.permute.xlu0 %603 }
  0x8c   :  { %v666_v55 = vpop.permute.xlu1 %665  ;;  %v957_v30 = vsel %vm955_vm4, %v940_v6, %v604_v56  ;;  %v279_v6 = vld [vmem:[#allocation2 + $0x1a0] sm:$0xff] }
  0x8d   :  { %555 = vrot.lane.b32.xlu0 %v2958_v54, %s2543_s26  ;;  %v973_v15 = vsel %vm972_vm5, %v956_v14, %v666_v55 }
  0x8e   :  { %617 = vrot.lane.b32.xlu1 %v273_v41, %s2544_s27 }
  0x8f   :  { %v2965_v59 = vpop.permute.xlu0 %415 }
  0x90   :  { %v2963_v58 = vpop.permute.xlu1 %477 }
  0x91   :  { %807 = vrot.lane.b32.xlu0 %v368_v57, %s2547_s23  ;;  %v924_v55 = vsel %vm921_vm2, %v907_v53, %v2963_v58  ;;  %v293_v58 = vld [vmem:[#allocation2 + $0x171] sm:$0xff] }
  0x92   :  { %869 = vrot.lane.b32.xlu1 %v335_v44, %s2548_s30 }
  0x93   :  { %v668_v62 = vpop.permute.xlu0 %667 }
  0x94   :  { %v730_v61 = vpop.permute.xlu1 %729  ;;  %v974_v32 = vsel %vm972_vm5, %v957_v30, %v668_v62 }
  0x95   :  { %429 = vrot.lane.b32.xlu0 %v321_v60, %s2542_s25  ;;  %v990_v16 = vsel %vm989_vm6, %v973_v15, %v730_v61 }
  0x96   :  { %619 = vrot.lane.b32.xlu1 %v321_v60, %s2544_s27 }
  0x97   :  { %v2973_v1 = vpop.permute.xlu0 %479 }
  0x98   :  { %v2971_v0 = vpop.permute.xlu1 %541 }
  0x99   :  { %681 = vrot.lane.b32.xlu0 %v289_v48, %s2545_s9  ;;  %v292_v48 = vld [vmem:[#allocation2 + $0x159] sm:$0xff]  ;;  %v941_v56 = vsel %vm938_vm3, %v924_v55, %v2971_v0 }
  0x9a   :  { %871 = vrot.lane.b32.xlu1 %v384_v63, %s2548_s30 }
  0x9b   :  { %v732_v9 = vpop.permute.xlu0 %731 }
  0x9c   :  { %v794_v8 = vpop.permute.xlu1 %793  ;;  %v991_v33 = vsel %vm989_vm6, %v974_v32, %v732_v9 }
  0x9d   :  { %431 = vrot.lane.b32.xlu0 %v275_v4, %s2542_s25  ;;  %v1007_v21 = vsel %vm1006_vm7, %v990_v16, %v794_v8 }
  0x9e   :  { %493 = vrot.lane.b32.xlu1 %v290_v3, %s2541_s24 }
  0x9f   :  { %v2982_v13 = vpop.permute.xlu0 %543 }
  0xa0   :  { %v606_v12 = vpop.permute.xlu1 %605 }
  0xa1   :  { %683 = vrot.lane.b32.xlu0 %v290_v3, %s2545_s9  ;;  %v958_v61 = vsel %vm955_vm4, %v941_v56, %v606_v12 }
  0xa2   :  { %745 = vrot.lane.b32.xlu1 %v2958_v54, %s2546_s18 }
  0xa3   :  { %v796_v23 = vpop.permute.xlu0 %795 }
  0xa4   :  { %v858_v22 = vpop.permute.xlu1 %857  ;;  %v1008_v36 = vsel %vm1006_vm7, %v991_v33, %v796_v23 }
  0xa5   :  { %v1024_v25 = vsel %vm1023_vm8, %v1007_v21, %v858_v22  ;;  %495 = vrot.lane.b32.xlu0 %v291_v18, %s2541_s24 }
  0xa6   :  { %557 = vrot.lane.b32.xlu1 %v2990_v17, %s2543_s26  ;;  %2433 = vmatprep.mubr.msk.f32.mxu0 %vm1049_vm9, %v1024_v25 }
  0xa7   :  { %v3004_v28 = vpop.permute.xlu0 %417 }
  0xa8   :  { %v608_v27 = vpop.permute.xlu1 %607  ;;  %v909_v32 = vsel %vm30_vm0, %v2882_v24, %v3004_v28  ;;  %v3113_v28 = vld [vmem:[#allocation2 + $0x19f] sm:$0xff] }
  0xa9   :  { %747 = vrot.lane.b32.xlu0 %v2990_v17, %s2546_s18 }
  0xaa   :  { %809 = vrot.lane.b32.xlu1 %v321_v60, %s2547_s23 }
  0xab   :  { %v670_v38 = vpop.permute.xlu0 %669 }
  0xac   :  { %v860_v37 = vpop.permute.xlu1 %859  ;;  %v975_v62 = vsel %vm972_vm5, %v958_v61, %v670_v38 }
  0xad   :  { %v1025_v39 = vsel %vm1023_vm8, %v1008_v36, %v860_v37  ;;  %559 = vrot.lane.b32.xlu0 %v3012_v34, %s2543_s26 }
  0xae   :  { %621 = vrot.lane.b32.xlu1 %v275_v4, %s2544_s27  ;;  %2434 = vmatmul.mubr.msk.f32.vlgmr.msra.gmra.mrb[0].mxu0 %vm1049_vm9, %v1025_v39 }
  0xaf   :  { %v3022_v41 = vpop.permute.xlu0 %419 }
  0xb0   :  { %v3020_v40 = vpop.permute.xlu1 %481 }
  0xb1   :  { %811 = vrot.lane.b32.xlu0 %v275_v4, %s2547_s23  ;;  %v908_v4 = vsel %vm30_vm0, %v2868_v19, %v2965_v59  ;;  %v926_v33 = vsel %vm921_vm2, %v909_v32, %v3020_v40  ;;  %v295_v40 = vld [vmem:[#allocation2 + $0x1a1] sm:$0xff] }
  0xb2   :  { %873 = vrot.lane.b32.xlu1 %v290_v3, %s2548_s30  ;;  %v925_v7 = vsel %vm921_vm2, %v908_v4, %v2973_v1  ;;  %v3074_v1 = vld [vmem:[#allocation2 + $0x187] sm:$0xff] }
  0xb3   :  { %v672_v44 = vpop.permute.xlu0 %671  ;;  %v942_v8 = vsel %vm938_vm3, %v925_v7, %v2982_v13 }
  0xb4   :  { %v734_v43 = vpop.permute.xlu1 %733  ;;  %v959_v11 = vsel %vm955_vm4, %v942_v8, %v608_v27  ;;  %v360_v8 = vld [vmem:[#allocation2 + $0x1cf] sm:$0xff] }
  0xb5   :  { %433 = vrot.lane.b32.xlu0 %v323_v42, %s2542_s25  ;;  %v992_v5 = vsel %vm989_vm6, %v975_v62, %v734_v43  ;;  %v976_v19 = vsel %vm972_vm5, %v959_v11, %v672_v44 }
  0xb6   :  { %623 = vrot.lane.b32.xlu1 %v323_v42, %s2544_s27 }
  0xb7   :  { %v3030_v46 = vpop.permute.xlu0 %483 }
  0xb8   :  { %v3028_v45 = vpop.permute.xlu1 %545 }
  0xb9   :  { %685 = vrot.lane.b32.xlu0 %v291_v18, %s2545_s9  ;;  %v943_v36 = vsel %vm938_vm3, %v926_v33, %v3028_v45 }
  0xba   :  { %875 = vrot.lane.b32.xlu1 %v291_v18, %s2548_s30 }
  0xbb   :  { %v736_v51 = vpop.permute.xlu0 %735 }
  0xbc   :  { %v798_v50 = vpop.permute.xlu1 %797  ;;  %v993_v59 = vsel %vm989_vm6, %v976_v19, %v736_v51 }
  0xbd   :  { %435 = vrot.lane.b32.xlu0 %v277_v49, %s2542_s25  ;;  %v1009_v63 = vsel %vm1006_vm7, %v992_v5, %v798_v50 }
  0xbe   :  { %497 = vrot.lane.b32.xlu1 %v292_v48, %s2541_s24 }
  0xbf   :  { %v3043_v60 = vpop.permute.xlu0 %547 }
  0xc0   :  { %v610_v57 = vpop.permute.xlu1 %609 }
  0xc1   :  { %687 = vrot.lane.b32.xlu0 %v292_v48, %s2545_s9  ;;  %v960_v39 = vsel %vm955_vm4, %v943_v36, %v610_v57 }
  0xc2   :  { %749 = vrot.lane.b32.xlu1 %v3012_v34, %s2546_s18 }
  0xc3   :  { %v800_v2 = vpop.permute.xlu0 %799 }
  0xc4   :  { %v862_v0 = vpop.permute.xlu1 %861  ;;  %v1010_v12 = vsel %vm1006_vm7, %v993_v59, %v800_v2 }
  0xc5   :  { %v1026_v3 = vsel %vm1023_vm8, %v1009_v63, %v862_v0  ;;  %499 = vrot.lane.b32.xlu0 %v293_v58, %s2541_s24  ;;  %v327_v63 = vld [vmem:[#allocation2 + $0x1b8] sm:$0xff] }
  0xc6   :  { %561 = vrot.lane.b32.xlu1 %v3051_v52, %s2543_s26  ;;  %2436 = vmatprep.mubr.msk.f32.mxu0 %vm1049_vm9, %v1026_v3  ;;  %v343_v3 = vld [vmem:[#allocation2 + $0x1b9] sm:$0xff] }
  0xc7   :  { %v3066_v10 = vpop.permute.xlu0 %421 }
  0xc8   :  { %v612_v9 = vpop.permute.xlu1 %611  ;;  %v911_v19 = vsel %vm30_vm0, %v2909_v31, %v3066_v10  ;;  %v392_v10 = vld [vmem:[#allocation2 + $0x1d1] sm:$0xff] }
  0xc9   :  { %751 = vrot.lane.b32.xlu0 %v3051_v52, %s2546_s18 }
  0xca   :  { %813 = vrot.lane.b32.xlu1 %v323_v42, %s2547_s23 }
  0xcb   :  { %v674_v13 = vpop.permute.xlu0 %673 }
  0xcc   :  { %v864_v14 = vpop.permute.xlu1 %863  ;;  %v977_v42 = vsel %vm972_vm5, %v960_v39, %v674_v13 }
  0xcd   :  { %v1027_v15 = vsel %vm1023_vm8, %v1010_v12, %v864_v14  ;;  %563 = vrot.lane.b32.xlu0 %v3074_v1, %s2543_s26  ;;  %v376_v12 = vld [vmem:[#allocation2 + $0x1d0] sm:$0xff] }
  0xce   :  { %625 = vrot.lane.b32.xlu1 %v277_v49, %s2544_s27  ;;  %2437 = vmatmul.mubr.msk.f32.gmra.mrb[2].mxu0 %vm1049_vm9, %v1027_v15 }
  0xcf   :  { %v3084_v18 = vpop.permute.xlu0 %423 }
  0xd0   :  { %v3082_v16 = vpop.permute.xlu1 %485 }
  0xd1   :  { %815 = vrot.lane.b32.xlu0 %v277_v49, %s2547_s23  ;;  %v910_v49 = vsel %vm30_vm0, %v2901_v29, %v3022_v41  ;;  %v928_v59 = vsel %vm921_vm2, %v911_v19, %v3082_v16 }
  0xd2   :  { %877 = vrot.lane.b32.xlu1 %v292_v48, %s2548_s30  ;;  %v927_v50 = vsel %vm921_vm2, %v910_v49, %v3030_v46  ;;  %v311_v46 = vld [vmem:[#allocation2 + $0x1b7] sm:$0xff] }
  0xd3   :  { %v676_v22 = vpop.permute.xlu0 %675  ;;  %v944_v51 = vsel %vm938_vm3, %v927_v50, %v3043_v60 }
  0xd4   :  { %v738_v21 = vpop.permute.xlu1 %737  ;;  %v961_v56 = vsel %vm955_vm4, %v944_v51, %v612_v9 }
  0xd5   :  { %437 = vrot.lane.b32.xlu0 %v325_v20, %s2542_s25  ;;  %v994_v24 = vsel %vm989_vm6, %v977_v42, %v738_v21  ;;  %v978_v29 = vsel %vm972_vm5, %v961_v56, %v676_v22  ;;  %v1354_v42 = vld [vmem:[#allocation3 + $0x9] sm:$0xff] }
  0xd6   :  { %627 = vrot.lane.b32.xlu1 %v325_v20, %s2544_s27 }
  0xd7   :  { %v3092_v25 = vpop.permute.xlu0 %487 }
  0xd8   :  { %v3090_v23 = vpop.permute.xlu1 %549 }
  0xd9   :  { %689 = vrot.lane.b32.xlu0 %v293_v58, %s2545_s9  ;;  %v945_v14 = vsel %vm938_vm3, %v928_v59, %v3090_v23  ;;  %v912_v23 = vsel %vm30_vm0, %v2925_v35, %v3084_v18  ;;  %v1362_v35 = vld [vmem:[#allocation3 + $0xf9] sm:$0xff] }
  0xda   :  { %879 = vrot.lane.b32.xlu1 %v293_v58, %s2548_s30 }
  0xdb   :  { %v740_v30 = vpop.permute.xlu0 %739 }
  0xdc   :  { %v802_v27 = vpop.permute.xlu1 %801  ;;  %v995_v41 = vsel %vm989_vm6, %v978_v29, %v740_v30  ;;  %v1338_v30 = vld [vmem:[#allocation3 + $0x8] sm:$0xff] }
  0xdd   :  { %439 = vrot.lane.b32.xlu0 %v279_v6, %s2542_s25  ;;  %v1011_v43 = vsel %vm1006_vm7, %v994_v24, %v802_v27  ;;  %v929_v27 = vsel %vm921_vm2, %v912_v23, %v3092_v25 }
  0xde   :  { %501 = vrot.lane.b32.xlu1 %v294_v26, %s2541_s24 }
  0xdf   :  { %v3105_v38 = vpop.permute.xlu0 %551 }
  0xe0   :  { %v614_v37 = vpop.permute.xlu1 %613  ;;  %v946_v32 = vsel %vm938_vm3, %v929_v27, %v3105_v38 }
  0xe1   :  { %691 = vrot.lane.b32.xlu0 %v294_v26, %s2545_s9 }
  0xe2   :  { %753 = vrot.lane.b32.xlu1 %v3074_v1, %s2546_s18 }
  0xe3   :  { %v804_v45 = vpop.permute.xlu0 %803 }
  0xe4   :  { %v866_v44 = vpop.permute.xlu1 %865  ;;  %v1012_v57 = vsel %vm1006_vm7, %v995_v41, %v804_v45 }
  0xe5   :  { %v1028_v48 = vsel %vm1023_vm8, %v1011_v43, %v866_v44  ;;  %503 = vrot.lane.b32.xlu0 %v295_v40, %s2541_s24  ;;  %v1346_v43 = vld [vmem:[#allocation3 + $0xf8] sm:$0xff] }
  0xe6   :  { %565 = vrot.lane.b32.xlu1 %v3113_v28, %s2543_s26  ;;  %2439 = vmatprep.mubr.msk.f32.mxu0 %vm1049_vm9, %v1028_v48 }
  0xe7   :  { %v3128_v55 = vpop.permute.xlu0 %425 }
  0xe8   :  { %v616_v53 = vpop.permute.xlu1 %615 }
  0xe9   :  { %755 = vrot.lane.b32.xlu0 %v3113_v28, %s2546_s18 }
  0xea   :  { %817 = vrot.lane.b32.xlu1 %v325_v20, %s2547_s23  ;;  %v962_v20 = vsel %vm955_vm4, %v945_v14, %v614_v37  ;;  %v963_v37 = vsel %vm955_vm4, %v946_v32, %v616_v53  ;;  %v256_v53 = vld [vmem:[#allocation2 + $0xf7] sm:$0xff] }
  0xeb   :  { %v678_v62 = vpop.permute.xlu0 %677  ;;  %v913_v41 = vsel %vm30_vm0, %v256_v53, %v3128_v55 }
  0xec   :  { %v868_v61 = vpop.permute.xlu1 %867  ;;  %v979_v21 = vsel %vm972_vm5, %v962_v20, %v678_v62 }
  0xed   :  { %v1029_v60 = vsel %vm1023_vm8, %v1012_v57, %v868_v61  ;;  %567 = vrot.lane.b32.xlu0 %v311_v46, %s2543_s26 }
  0xee   :  { %629 = vrot.lane.b32.xlu1 %v279_v6, %s2544_s27  ;;  %2440 = vmatmul.mubr.msk.f32.gmra.mrb[4].mxu0 %vm1049_vm9, %v1029_v60 }
  0xef   :  { %v3143_v58 = vpop.permute.xlu0 %427 }
  0xf0   :  { %v3141_v5 = vpop.permute.xlu1 %489  ;;  %v914_v55 = vsel %vm30_vm0, %v2947_v47, %v3143_v58 }
  0xf1   :  { %819 = vrot.lane.b32.xlu0 %v279_v6, %s2547_s23 }
  0xf2   :  { %881 = vrot.lane.b32.xlu1 %v294_v26, %s2548_s30 }
  0xf3   :  { %v680_v2 = vpop.permute.xlu0 %679 }
  0xf4   :  { %v742_v0 = vpop.permute.xlu1 %741  ;;  %v980_v39 = vsel %vm972_vm5, %v963_v37, %v680_v2 }
  0xf5   :  { %631 = vrot.lane.b32.xlu0 %v327_v63, %s2544_s27  ;;  %v996_v31 = vsel %vm989_vm6, %v979_v21, %v742_v0 }
  0xf6   :  { %693 = vrot.lane.b32.xlu1 %v295_v40, %s2545_s9 }
  0xf7   :  { %v3149_v7 = vpop.permute.xlu0 %491 }
  0xf8   :  { %v554_v4 = vpop.permute.xlu1 %553 }
  0xf9   :  { %883 = vrot.lane.b32.xlu0 %v295_v40, %s2548_s30 }
  0xfa   :  { %695 = vrot.lane.b32.xlu1 %v343_v3, %s2545_s9 }
  0xfb   :  { %v744_v11 = vpop.permute.xlu0 %743 }
  0xfc   :  { %v806_v9 = vpop.permute.xlu1 %805  ;;  %v997_v18 = vsel %vm989_vm6, %v980_v39, %v744_v11 }
  0xfd   :  { %757 = vrot.lane.b32.xlu0 %v311_v46, %s2546_s18  ;;  %v1013_v22 = vsel %vm1006_vm7, %v996_v31, %v806_v9  ;;  %v930_v46 = vsel %vm921_vm2, %v913_v41, %v3141_v5  ;;  %v931_v5 = vsel %vm921_vm2, %v914_v55, %v3149_v7 }
  0xfe   :  { %759 = vrot.lane.b32.xlu1 %v360_v8, %s2546_s18  ;;  %v947_v57 = vsel %vm938_vm3, %v930_v46, %v554_v4 }
  0xff   :  { %v556_v15 = vpop.permute.xlu0 %555 }
 0x100   :  { %v618_v13 = vpop.permute.xlu1 %617  ;;  %v948_v4 = vsel %vm938_vm3, %v931_v5, %v556_v15 }
 0x101   :  { %821 = vrot.lane.b32.xlu0 %v327_v63, %s2547_s23  ;;  %v964_v60 = vsel %vm955_vm4, %v947_v57, %v618_v13 }
 0x102   :  { %823 = vrot.lane.b32.xlu1 %v376_v12, %s2547_s23 }
 0x103   :  { %v808_v26 = vpop.permute.xlu0 %807 }
 0x104   :  { %v870_v16 = vpop.permute.xlu1 %869  ;;  %v1014_v25 = vsel %vm1006_vm7, %v997_v18, %v808_v26 }
 0x105   :  { %v1030_v6 = vsel %vm1023_vm8, %v1013_v22, %v870_v16  ;;  %885 = vrot.lane.b32.xlu0 %v343_v3, %s2548_s30 }
 0x106   :  { %887 = vrot.lane.b32.xlu1 %v392_v10, %s2548_s30  ;;  %2442 = vmatprep.mubr.msk.f32.mxu0 %vm1049_vm9, %v1030_v6 }
 0x107   :  { %v430_v36 = vpop.permute.xlu0 %429 }
 0x108   :  { %v620_v33 = vpop.permute.xlu1 %619  ;;  %v915_v6 = vsel %vm30_vm0, %v2958_v54, %v430_v36 }
 0x109   :  { %1483 = vrot.lane.b32.xlu0 %v1338_v30, %s2542_s25  ;;  %v965_v59 = vsel %vm955_vm4, %v948_v4, %v620_v33 }
 0x10a   :  { %1563 = vrot.lane.b32.xlu1 %v1362_v35, %s2541_s24 }
 0x10b   :  { %v682_v40 = vpop.permute.xlu0 %681 }
 0x10c   :  { %v872_v24 = vpop.permute.xlu1 %871  ;;  %v981_v63 = vsel %vm972_vm5, %v964_v60, %v682_v40 }
 0x10d   :  { %v1031_v38 = vsel %vm1023_vm8, %v1014_v25, %v872_v24  ;;  %1547 = vrot.lane.b32.xlu0 %v1354_v42, %s2541_s24 }
 0x10e   :  { %2443 = vmatmul.mubr.msk.f32.gmra.mrb[6].mxu0 %vm1049_vm9, %v1031_v38 }
 0x10f   :  { %v432_v45 = vpop.permute.xlu0 %431 }
 0x110   :  { %v494_v44 = vpop.permute.xlu1 %493  ;;  %v916_v54 = vsel %vm30_vm0, %v2990_v17, %v432_v45 }
 0x111   :  { %1499 = vrot.lane.b32.xlu0 %v1346_v43, %s2542_s25  ;;  %v932_v23 = vsel %vm921_vm2, %v915_v6, %v494_v44 }
 0x113   :  { %v684_v49 = vpop.permute.xlu0 %683 }
 0x114   :  { %v746_v48 = vpop.permute.xlu1 %745  ;;  %v982_v12 = vsel %vm972_vm5, %v965_v59, %v684_v49 }
 0x115   :  { %v998_v0 = vsel %vm989_vm6, %v981_v63, %v746_v48 }
 0x117   :  { %v496_v51 = vpop.permute.xlu0 %495 }
 0x118   :  { %v558_v50 = vpop.permute.xlu1 %557  ;;  %v933_v36 = vsel %vm921_vm2, %v916_v54, %v496_v51 }
 0x119   :  { %v949_v27 = vsel %vm938_vm3, %v932_v23, %v558_v50 }
 0x11b   :  { %v748_v29 = vpop.permute.xlu0 %747 }
 0x11c   :  { %v810_v56 = vpop.permute.xlu1 %809  ;;  %v999_v14 = vsel %vm989_vm6, %v982_v12, %v748_v29 }
 0x11d   :  { %v1015_v2 = vsel %vm1006_vm7, %v998_v0, %v810_v56 }
 0x11f   :  { %v560_v62 = vpop.permute.xlu0 %559 }
 0x120   :  { %v622_v61 = vpop.permute.xlu1 %621  ;;  %v950_v24 = vsel %vm938_vm3, %v933_v36, %v560_v62 }
 0x121   :  { %v966_v33 = vsel %vm955_vm4, %v949_v27, %v622_v61 }
 0x123   :  { %v812_v8 = vpop.permute.xlu0 %811 }
 0x124   :  { %v874_v3 = vpop.permute.xlu1 %873  ;;  %v1016_v13 = vsel %vm1006_vm7, %v999_v14, %v812_v8 }
 0x125   :  { %v1032_v9 = vsel %vm1023_vm8, %v1015_v2, %v874_v3 }
 0x126   :  { %2445 = vmatprep.mubr.msk.f32.mxu0 %vm1049_vm9, %v1032_v9 }
 0x127   :  { %v434_v19 = vpop.permute.xlu0 %433 }
 0x128   :  { %v624_v11 = vpop.permute.xlu1 %623  ;;  %v917_v62 = vsel %vm30_vm0, %v3012_v34, %v434_v19 }
 0x129   :  { %v967_v43 = vsel %vm955_vm4, %v950_v24, %v624_v11  ;;  %v3275_v24 = vld [vmem:[%s4001_s4] ss:$0 sm:$0xff] }
 0x12b   :  { %v686_v21 = vpop.permute.xlu0 %685 }
 0x12c   :  { %v876_v20 = vpop.permute.xlu1 %875  ;;  %v983_v37 = vsel %vm972_vm5, %v966_v33, %v686_v21 }
 0x12d   :  { %v1033_v47 = vsel %vm1023_vm8, %v1016_v13, %v876_v20 }
 0x12e   :  { %2446 = vmatmul.mubr.msk.f32.gmra.mrb[8].mxu0 %vm1049_vm9, %v1033_v47 }
 0x12f   :  { %v436_v7 = vpop.permute.xlu0 %435 }
 0x130   :  { %v498_v58 = vpop.permute.xlu1 %497  ;;  %v918_v34 = vsel %vm30_vm0, %v3051_v52, %v436_v7 }
 0x131   :  { %v934_v60 = vsel %vm921_vm2, %v917_v62, %v498_v58 }
 0x133   :  { %v688_v15 = vpop.permute.xlu0 %687 }
 0x134   :  { %v750_v31 = vpop.permute.xlu1 %749  ;;  %v984_v44 = vsel %vm972_vm5, %v967_v43, %v688_v15 }
 0x135   :  { %v1000_v39 = vsel %vm989_vm6, %v983_v37, %v750_v31 }
 0x137   :  { %v500_v22 = vpop.permute.xlu0 %499 }
 0x138   :  { %v562_v10 = vpop.permute.xlu1 %561  ;;  %v935_v19 = vsel %vm921_vm2, %v918_v34, %v500_v22  ;;  %v2110_v34 = vld [vmem:[%s4003_s6 + $0x18] sm:$0xff] }
 0x139   :  { %v951_v63 = vsel %vm938_vm3, %v934_v60, %v562_v10 }
 0x13b   :  { %v752_v26 = vpop.permute.xlu0 %751 }
 0x13c   :  { %v814_v16 = vpop.permute.xlu1 %813  ;;  %v1001_v48 = vsel %vm989_vm6, %v984_v44, %v752_v26 }
 0x13d   :  { %v1017_v35 = vsel %vm1006_vm7, %v1000_v39, %v814_v16 }
 0x13f   :  { %v564_v32 = vpop.permute.xlu0 %563 }
 0x140   :  { %v626_v30 = vpop.permute.xlu1 %625  ;;  %v952_v59 = vsel %vm938_vm3, %v935_v19, %v564_v32 }
 0x141   :  { %v968_v3 = vsel %vm955_vm4, %v951_v63, %v626_v30 }
 0x143   :  { %v816_v42 = vpop.permute.xlu0 %815 }
 0x144   :  { %v878_v18 = vpop.permute.xlu1 %877  ;;  %v1018_v49 = vsel %vm1006_vm7, %v1001_v48, %v816_v42 }
 0x145   :  { %v1034_v25 = vsel %vm1023_vm8, %v1017_v35, %v878_v18 }
 0x146   :  { %2448 = vmatprep.mubr.msk.f32.mxu0 %vm1049_vm9, %v1034_v25 }
 0x147   :  { %v438_v38 = vpop.permute.xlu0 %437 }
 0x148   :  { %v628_v40 = vpop.permute.xlu1 %627  ;;  %v919_v10 = vsel %vm30_vm0, %v3074_v1, %v438_v38  ;;  %v3280_v38 = vld [vmem:[%s4002_s5] ss:$0 sm:$0xff] }
 0x149   :  { %v969_v13 = vsel %vm955_vm4, %v952_v59, %v628_v40 }
 0x14b   :  { %v690_v53 = vpop.permute.xlu0 %689 }
 0x14c   :  { %v880_v50 = vpop.permute.xlu1 %879  ;;  %v985_v8 = vsel %vm972_vm5, %v968_v3, %v690_v53 }
 0x14d   :  { %v1035_v17 = vsel %vm1023_vm8, %v1018_v49, %v880_v50 }
 0x14e   :  { %2449 = vmatmul.mubr.msk.f32.gmra.mrb[10].mxu0 %vm1049_vm9, %v1035_v17 }
 0x14f   :  { %v440_v51 = vpop.permute.xlu0 %439 }
 0x150   :  { %v502_v45 = vpop.permute.xlu1 %501  ;;  %v920_v22 = vsel %vm30_vm0, %v3113_v28, %v440_v51 }
 0x151   :  { %v936_v16 = vsel %vm921_vm2, %v919_v10, %v502_v45 }
 0x153   :  { %v692_v29 = vpop.permute.xlu0 %691 }
 0x154   :  { %v754_v56 = vpop.permute.xlu1 %753  ;;  %v986_v20 = vsel %vm972_vm5, %v969_v13, %v692_v29 }
 0x155   :  { %v1002_v9 = vsel %vm989_vm6, %v985_v8, %v754_v56 }
 0x157   :  { %v504_v46 = vpop.permute.xlu0 %503 }
 0x158   :  { %v566_v41 = vpop.permute.xlu1 %565  ;;  %v937_v26 = vsel %vm921_vm2, %v920_v22, %v504_v46 }
 0x159   :  { %v953_v6 = vsel %vm938_vm3, %v936_v16, %v566_v41 }
 0x15b   :  { %v756_v61 = vpop.permute.xlu0 %755 }
 0x15c   :  { %v818_v57 = vpop.permute.xlu1 %817  ;;  %v1003_v21 = vsel %vm989_vm6, %v986_v20, %v756_v61 }
 0x15d   :  { %v1019_v55 = vsel %vm1006_vm7, %v1002_v9, %v818_v57  ;;  %v2107_v9 = vld [vmem:[%s4003_s6] sm:$0xff] }
 0x15f   :  { %v568_v2 = vpop.permute.xlu0 %567 }
 0x160   :  { %v630_v0 = vpop.permute.xlu1 %629  ;;  %v954_v23 = vsel %vm938_vm3, %v937_v26, %v568_v2 }
 0x161   :  { %v970_v32 = vsel %vm955_vm4, %v953_v6, %v630_v0 }
 0x163   :  { %v820_v4 = vpop.permute.xlu0 %819 }
 0x164   :  { %v882_v5 = vpop.permute.xlu1 %881  ;;  %v1020_v47 = vsel %vm1006_vm7, %v1003_v21, %v820_v4  ;;  %v2113_v21 = vld [vmem:[%s4003_s6 + $0x30] sm:$0xff] }
 0x165   :  { %v1036_v11 = vsel %vm1023_vm8, %v1019_v55, %v882_v5  ;;  %v2108_v55 = vld [vmem:[%s4003_s6 + $0x8] sm:$0xff] }
 0x166   :  { %2451 = vmatprep.mubr.msk.f32.mxu0 %vm1049_vm9, %v1036_v11  ;;  %v2515_v5 = vpack.c.bf16 %v2108_v55, %v2107_v9  ;;  %v2109_v11 = vld [vmem:[%s4003_s6 + $0x10] sm:$0xff] }
 0x167   :  { %v632_v14 = vpop.permute.xlu0 %631  ;;  %v2519_v19 = vpack.c.bf16 %v2110_v34, %v2109_v11 }
 0x168   :  { %v694_v12 = vpop.permute.xlu1 %693  ;;  %v971_v33 = vsel %vm955_vm4, %v954_v23, %v632_v14  ;;  %2516 = vmatprep.subr.bf16.mxu1 %v2515_v5  ;;  %v2112_v14 = vld [vmem:[%s4003_s6 + $0x28] sm:$0xff] }
 0x169   :  { %v987_v37 = vsel %vm972_vm5, %v970_v32, %v694_v12  ;;  %2518 = vmatpush3.bf16.msra.mxu1 %v2515_v5  ;;  %v2111_v12 = vld [vmem:[%s4003_s6 + $0x20] sm:$0xff] }
 0x16a   :  { %2520 = vmatprep.subr.bf16.mxu1 %v2519_v19  ;;  %v2523_v13 = vpack.c.bf16 %v2112_v14, %v2111_v12  ;;  %v1426_v14 = vld [vmem:[#allocation3 + $0xdf] sm:$0xff] }
 0x16b   :  { %v884_v31 = vpop.permute.xlu0 %883 }
 0x16c   :  { %v696_v58 = vpop.permute.xlu1 %695  ;;  %v1037_v52 = vsel %vm1023_vm8, %v1020_v47, %v884_v31  ;;  %v2114_v47 = vld [vmem:[%s4003_s6 + $0x38] sm:$0xff] }
 0x16d   :  { %2452 = vmatmul.mubr.msk.f32.gmra.mrb[12].mxu0 %vm1049_vm9, %v1037_v52  ;;  %v988_v1 = vsel %vm972_vm5, %v971_v33, %v696_v58  ;;  %2522 = vmatpush3.bf16.msra.mxu1 %v2519_v19  ;;  %v2527_v58 = vpack.c.bf16 %v2114_v47, %v2113_v21 }
 0x16e   :  { %2524 = vmatprep.subr.bf16.mxu1 %v2523_v13 }
 0x16f   :  { %v758_v15 = vpop.permute.xlu0 %757 }
 0x170   :  { %v760_v7 = vpop.permute.xlu1 %759  ;;  %v1004_v39 = vsel %vm989_vm6, %v987_v37, %v758_v15 }
 0x171   :  { %v1005_v28 = vsel %vm989_vm6, %v988_v1, %v760_v7  ;;  %2526 = vmatpush3.bf16.msra.mxu1 %v2523_v13  ;;  %v2115_v7 = vld [vmem:[%s4003_s6 + $0x40] sm:$0xff] }
 0x172   :  { %2528 = vmatprep.subr.bf16.mxu1 %v2527_v58 }
 0x173   :  { %v822_v30 = vpop.permute.xlu0 %821 }
 0x174   :  { %v824_v27 = vpop.permute.xlu1 %823  ;;  %v1021_v18 = vsel %vm1006_vm7, %v1004_v39, %v822_v30 }
 0x175   :  { %v1022_v35 = vsel %vm1006_vm7, %v1005_v28, %v824_v27  ;;  %2530 = vmatpush3.bf16.msra.mxu1 %v2527_v58 }
 0x176   :  { %2473 = vmatprep.subr.mxu1 %v2115_v7 }
 0x177   :  { %v886_v25 = vpop.permute.xlu0 %885 }
 0x178   :  { %v888_v42 = vpop.permute.xlu1 %887  ;;  %v1038_v36 = vsel %vm1023_vm8, %v1021_v18, %v886_v25 }
 0x179   :  { %v1039_v54 = vsel %vm1023_vm8, %v1022_v35, %v888_v42  ;;  %2454 = vmatprep.mubr.msk.f32.mxu0 %vm1049_vm9, %v1038_v36  ;;  %2474 = vmatpush3.msra.mxu1 %v2115_v7 }
 0x17a   :  { %2455 = vmatmul.mubr.msk.f32.gmra.mrb[14].mxu0 %vm1049_vm9, %v1039_v54 }
 0x181   :  { %v2435_v40 = vpop.f32.mrb[0].mxu0 }
 0x182   :  { %v1251_v43 = vmul.f32 %v2435_v40, %v3275_v24  ;;  %v1164_v44 = vpop.f32.mrb[1].mxu0 }
 0x183   :  { %v1250_v48 = vmul.f32 %v3275_v24, %v1164_v44 }
 0x184   :  { %v1274_v49 = vadd.f32 %v3280_v38, %v1251_v43 }
 0x185   :  { %v1273_v50 = vadd.f32 %v3280_v38, %v1250_v48 }
 0x186   :  { %v1290_v53 = vmax.f32 %v1274_v49, 0.0 }
 0x187   :  { %v1289_v17 = vmax.f32 %v1273_v50, 0.0 }
 0x188   :  { %1307 = vst.msk [vmem:[#allocation3 + $0x38] sm:$0xff] %vm30_vm0, %v1290_v53  ;;  %v1484_v53 = vpop.permute.xlu0 %1483 }
 0x189   :  { %1306 = vst.msk [vmem:[#allocation3 + $0x20] sm:$0xff] %vm30_vm0, %v1289_v17 }
 0x18f   :  { %v1387_v45 = vld [vmem:[#allocation3 + $0x38] sm:$0xff] }
 0x190   :  { %v3288_v51 = vld [vmem:[#allocation3 + $0x37] sm:$0xff]  ;;  %1677 = vrot.lane.b32.xlu0 %v1387_v45, %s2544_s27  ;;  %v3295_v29 = vld [vmem:[#allocation3 + $0x1f] sm:$0xff] }
 0x191   :  { %1613 = vrot.lane.b32.xlu1 %v3288_v51, %s2543_s26  ;;  %v1403_v56 = vld [vmem:[#allocation3 + $0x39] sm:$0xff]  ;;  %v1355_v3 = vld [vmem:[#allocation3 + $0x21] sm:$0xff] }
 0x192   :  { %v1386_v41 = vld [vmem:[#allocation3 + $0x20] sm:$0xff] }
 0x194   :  { %1741 = vrot.lane.b32.xlu0 %v1403_v56, %s2545_s9 }
 0x195   :  { %1487 = vrot.lane.b32.xlu1 %v1387_v45, %s2542_s25 }
 0x198   :  { %1611 = vrot.lane.b32.xlu0 %v3295_v29, %s2543_s26 }
 0x199   :  { %1551 = vrot.lane.b32.xlu1 %v1403_v56, %s2541_s24 }
 0x19c   :  { %1675 = vrot.lane.b32.xlu0 %v1386_v41, %s2544_s27 }
 0x19d   :  { %1803 = vrot.lane.b32.xlu1 %v3288_v51, %s2546_s18 }
 0x1a1   :  { %1867 = vrot.lane.b32.xlu1 %v1387_v45, %s2547_s23  ;;  %v2438_v46 = vpop.f32.mrb[2].mxu0  ;;  %v3411_v45 = vpop.permute.xlu1 %1563 }
 0x1a2   :  { %v1253_v57 = vmul.f32 %v2438_v46, %v3275_v24  ;;  %v1174_v61 = vpop.f32.mrb[3].mxu0 }
 0x1a3   :  { %v1252_v62 = vmul.f32 %v3275_v24, %v1174_v61 }
 0x1a4   :  { %v1276_v60 = vadd.f32 %v3280_v38, %v1253_v57 }
 0x1a5   :  { %1931 = vrot.lane.b32.xlu1 %v1403_v56, %s2548_s30  ;;  %v1275_v63 = vadd.f32 %v3280_v38, %v1252_v62  ;;  %v1548_v56 = vpop.permute.xlu0 %1547 }
 0x1a6   :  { %v1292_v0 = vmax.f32 %v1276_v60, 0.0 }
 0x1a7   :  { %v1291_v2 = vmax.f32 %v1275_v63, 0.0 }
 0x1a8   :  { %1309 = vst.msk [vmem:[#allocation3 + $0x68] sm:$0xff] %vm30_vm0, %v1292_v0 }
 0x1a9   :  { %1485 = vrot.lane.b32.xlu1 %v1386_v41, %s2542_s25  ;;  %1308 = vst.msk [vmem:[#allocation3 + $0x50] sm:$0xff] %vm30_vm0, %v1291_v2  ;;  %v3424_v2 = vpop.permute.xlu0 %1499 }
 0x1ad   :  { %1549 = vrot.lane.b32.xlu1 %v1355_v3, %s2541_s24 }
 0x1af   :  { %v3313_v8 = vld [vmem:[#allocation3 + $0x67] sm:$0xff] }
 0x1b0   :  { %1617 = vrot.lane.b32.xlu0 %v3313_v8, %s2543_s26  ;;  %v1389_v4 = vld [vmem:[#allocation3 + $0x68] sm:$0xff]  ;;  %v1341_v20 = vld [vmem:[#allocation3 + $0x50] sm:$0xff] }
 0x1b1   :  { %1739 = vrot.lane.b32.xlu1 %v1355_v3, %s2545_s9  ;;  %v1358_v59 = vld [vmem:[#allocation3 + $0x69] sm:$0xff]  ;;  %v1357_v31 = vld [vmem:[#allocation3 + $0x51] sm:$0xff] }
 0x1b2   :  { %v3356_v16 = vld [vmem:[#allocation3 + $0x4f] sm:$0xff] }
 0x1b4   :  { %1491 = vrot.lane.b32.xlu0 %v1389_v4, %s2542_s25 }
 0x1b5   :  { %1681 = vrot.lane.b32.xlu1 %v1389_v4, %s2544_s27 }
 0x1b8   :  { %1745 = vrot.lane.b32.xlu0 %v1358_v59, %s2545_s9 }
 0x1b9   :  { %1555 = vrot.lane.b32.xlu1 %v1358_v59, %s2541_s24 }
 0x1bc   :  { %1489 = vrot.lane.b32.xlu0 %v1341_v20, %s2542_s25 }
 0x1bd   :  { %1807 = vrot.lane.b32.xlu1 %v3313_v8, %s2546_s18 }
 0x1c0   :  { %1553 = vrot.lane.b32.xlu0 %v1357_v31, %s2541_s24 }
 0x1c1   :  { %1871 = vrot.lane.b32.xlu1 %v1389_v4, %s2547_s23  ;;  %v2441_v52 = vpop.f32.mrb[4].mxu0 }
 0x1c2   :  { %v1255_v15 = vmul.f32 %v2441_v52, %v3275_v24  ;;  %v1184_v10 = vpop.f32.mrb[5].mxu0  ;;  %v1442_v52 = vld [vmem:[#allocation3 + $0xe0] sm:$0xff] }
 0x1c3   :  { %v1254_v22 = vmul.f32 %v3275_v24, %v1184_v10 }
 0x1c4   :  { %v1278_v26 = vadd.f32 %v3280_v38, %v1255_v15  ;;  %1805 = vrot.lane.b32.xlu0 %v3356_v16, %s2546_s18 }
 0x1c5   :  { %1935 = vrot.lane.b32.xlu1 %v1358_v59, %s2548_s30  ;;  %v1277_v6 = vadd.f32 %v3280_v38, %v1254_v22 }
 0x1c6   :  { %v1294_v23 = vmax.f32 %v1278_v26, 0.0 }
 0x1c7   :  { %v1293_v27 = vmax.f32 %v1277_v6, 0.0 }
 0x1c8   :  { %1311 = vst.msk [vmem:[#allocation3 + $0x98] sm:$0xff] %vm30_vm0, %v1294_v23  ;;  %1869 = vrot.lane.b32.xlu0 %v1341_v20, %s2547_s23 }
 0x1c9   :  { %1615 = vrot.lane.b32.xlu1 %v3356_v16, %s2543_s26  ;;  %1310 = vst.msk [vmem:[#allocation3 + $0x80] sm:$0xff] %vm30_vm0, %v1293_v27 }
 0x1cc   :  { %1743 = vrot.lane.b32.xlu0 %v1357_v31, %s2545_s9 }
 0x1cd   :  { %1679 = vrot.lane.b32.xlu1 %v1341_v20, %s2544_s27  ;;  %v1322_v20 = vld [vmem:[#allocation3 + $0x7] sm:$0xff] }
 0x1ce   :  { %v1979_v58 = vsel %vm30_vm0, %v1322_v20, %v1484_v53 }
 0x1cf   :  { %v3370_v30 = vld [vmem:[#allocation3 + $0x97] sm:$0xff]  ;;  %v1995_v7 = vsel %vm921_vm2, %v1979_v58, %v1548_v56 }
 0x1d0   :  { %1621 = vrot.lane.b32.xlu0 %v3370_v30, %s2543_s26  ;;  %v1391_v32 = vld [vmem:[#allocation3 + $0x98] sm:$0xff]  ;;  %v1343_v37 = vld [vmem:[#allocation3 + $0x80] sm:$0xff] }
 0x1d1   :  { %1933 = vrot.lane.b32.xlu1 %v1357_v31, %s2548_s30  ;;  %v1360_v33 = vld [vmem:[#allocation3 + $0x99] sm:$0xff]  ;;  %v1359_v1 = vld [vmem:[#allocation3 + $0x81] sm:$0xff] }
 0x1d2   :  { %v3387_v25 = vld [vmem:[#allocation3 + $0x7f] sm:$0xff] }
 0x1d4   :  { %1495 = vrot.lane.b32.xlu0 %v1391_v32, %s2542_s25 }
 0x1d5   :  { %1685 = vrot.lane.b32.xlu1 %v1391_v32, %s2544_s27 }
 0x1d8   :  { %1749 = vrot.lane.b32.xlu0 %v1360_v33, %s2545_s9 }
 0x1d9   :  { %1559 = vrot.lane.b32.xlu1 %v1360_v33, %s2541_s24 }
 0x1dc   :  { %1493 = vrot.lane.b32.xlu0 %v1343_v37, %s2542_s25 }
 0x1dd   :  { %1811 = vrot.lane.b32.xlu1 %v3370_v30, %s2546_s18 }
 0x1e0   :  { %1557 = vrot.lane.b32.xlu0 %v1359_v1, %s2541_s24 }
 0x1e1   :  { %1875 = vrot.lane.b32.xlu1 %v1391_v32, %s2547_s23  ;;  %v2444_v28 = vpop.f32.mrb[6].mxu0  ;;  %v1458_v32 = vld [vmem:[#allocation3 + $0xe1] sm:$0xff] }
 0x1e2   :  { %v1257_v39 = vmul.f32 %v2444_v28, %v3275_v24  ;;  %v1194_v35 = vpop.f32.mrb[7].mxu0 }
 0x1e3   :  { %v1256_v18 = vmul.f32 %v3275_v24, %v1194_v35 }
 0x1e4   :  { %v1280_v42 = vadd.f32 %v3280_v38, %v1257_v39  ;;  %1809 = vrot.lane.b32.xlu0 %v3387_v25, %s2546_s18 }
 0x1e5   :  { %v1279_v54 = vadd.f32 %v3280_v38, %v1256_v18  ;;  %1939 = vrot.lane.b32.xlu1 %v1360_v33, %s2548_s30 }
 0x1e6   :  { %v1296_v36 = vmax.f32 %v1280_v42, 0.0 }
 0x1e7   :  { %v1295_v40 = vmax.f32 %v1279_v54, 0.0 }
 0x1e8   :  { %1313 = vst.msk [vmem:[#allocation3 + $0xc8] sm:$0xff] %vm30_vm0, %v1296_v36  ;;  %1873 = vrot.lane.b32.xlu0 %v1343_v37, %s2547_s23 }
 0x1e9   :  { %1312 = vst.msk [vmem:[#allocation3 + $0xb0] sm:$0xff] %vm30_vm0, %v1295_v40  ;;  %1619 = vrot.lane.b32.xlu1 %v3387_v25, %s2543_s26 }
 0x1ec   :  { %1747 = vrot.lane.b32.xlu0 %v1359_v1, %s2545_s9 }
 0x1ed   :  { %1683 = vrot.lane.b32.xlu1 %v1343_v37, %s2544_s27 }
 0x1ef   :  { %v1377_v43 = vld [vmem:[#allocation3 + $0xc7] sm:$0xff] }
 0x1f0   :  { %1625 = vrot.lane.b32.xlu0 %v1377_v43, %s2543_s26  ;;  %v1393_v44 = vld [vmem:[#allocation3 + $0xc8] sm:$0xff]  ;;  %v1345_v50 = vld [vmem:[#allocation3 + $0xb0] sm:$0xff] }
 0x1f1   :  { %1937 = vrot.lane.b32.xlu1 %v1359_v1, %s2548_s30  ;;  %v1409_v48 = vld [vmem:[#allocation3 + $0xc9] sm:$0xff]  ;;  %v1361_v17 = vld [vmem:[#allocation3 + $0xb1] sm:$0xff] }
 0x1f2   :  { %v3404_v49 = vld [vmem:[#allocation3 + $0xaf] sm:$0xff] }
 0x1f4   :  { %1753 = vrot.lane.b32.xlu0 %v1409_v48, %s2545_s9 }
 0x1f5   :  { %1689 = vrot.lane.b32.xlu1 %v1393_v44, %s2544_s27 }
 0x1f8   :  { %1497 = vrot.lane.b32.xlu0 %v1345_v50, %s2542_s25 }
 0x1f9   :  { %1623 = vrot.lane.b32.xlu1 %v3404_v49, %s2543_s26 }
 0x1fc   :  { %1561 = vrot.lane.b32.xlu0 %v1361_v17, %s2541_s24 }
 0x1fd   :  { %1687 = vrot.lane.b32.xlu1 %v1345_v50, %s2544_s27 }
 0x200   :  { %1813 = vrot.lane.b32.xlu0 %v3404_v49, %s2546_s18 }
 0x201   :  { %1941 = vrot.lane.b32.xlu1 %v1361_v17, %s2548_s30  ;;  %v2447_v41 = vpop.f32.mrb[8].mxu0 }
 0x202   :  { %v1259_v46 = vmul.f32 %v2447_v41, %v3275_v24  ;;  %v1204_v57 = vpop.f32.mrb[9].mxu0  ;;  %v3433_v5 = vpop.permute.xlu0 %1677 }
 0x203   :  { %v3417_v61 = vpop.permute.xlu1 %1613  ;;  %v1258_v62 = vmul.f32 %v3275_v24, %v1204_v57 }
 0x204   :  { %v1282_v60 = vadd.f32 %v3280_v38, %v1259_v46  ;;  %1877 = vrot.lane.b32.xlu0 %v1345_v50, %s2547_s23 }
 0x205   :  { %v1281_v63 = vadd.f32 %v3280_v38, %v1258_v62  ;;  %1815 = vrot.lane.b32.xlu1 %v1377_v43, %s2546_s18 }
 0x206   :  { %v1298_v0 = vmax.f32 %v1282_v60, 0.0  ;;  %v3440_v19 = vpop.permute.xlu0 %1741 }
 0x207   :  { %v1297_v3 = vmax.f32 %v1281_v63, 0.0  ;;  %v3426_v9 = vpop.permute.xlu1 %1487 }
 0x208   :  { %1315 = vst.msk [vmem:[#allocation3 + $0x128] sm:$0xff] %vm30_vm0, %v1298_v0  ;;  %1751 = vrot.lane.b32.xlu0 %v1361_v17, %s2545_s9 }
 0x209   :  { %1314 = vst.msk [vmem:[#allocation3 + $0x110] sm:$0xff] %vm30_vm0, %v1297_v3 }
 0x20a   :  { %v1612_v21 = vpop.permute.xlu0 %1611 }
 0x20b   :  { %v3431_v55 = vpop.permute.xlu1 %1551  ;;  %v2011_v6 = vsel %vm938_vm3, %v1995_v7, %v1612_v21 }
 0x20e   :  { %v1676_v15 = vpop.permute.xlu0 %1675 }
 0x20f   :  { %v1804_v4 = vpop.permute.xlu1 %1803  ;;  %v3447_v31 = vld [vmem:[#allocation3 + $0x127] sm:$0xff]  ;;  %v2027_v33 = vsel %vm955_vm4, %v2011_v6, %v1676_v15 }
 0x210   :  { %v3435_v11 = vld [vmem:[#allocation3 + $0x10f] sm:$0xff] }
 0x211   :  { %v1347_v34 = vld [vmem:[#allocation3 + $0x110] sm:$0xff]  ;;  %1627 = vrot.lane.b32.xlu1 %v3435_v11, %s2543_s26  ;;  %v1395_v22 = vld [vmem:[#allocation3 + $0x128] sm:$0xff] }
 0x212   :  { %1501 = vrot.lane.b32.xlu0 %v1347_v34, %s2542_s25  ;;  %v1363_v12 = vld [vmem:[#allocation3 + $0x111] sm:$0xff]  ;;  %v1364_v50 = vld [vmem:[#allocation3 + $0x129] sm:$0xff] }
 0x213   :  { %v1868_v59 = vpop.permute.xlu1 %1867 }
 0x215   :  { %1879 = vrot.lane.b32.xlu1 %v1393_v44, %s2547_s23 }
 0x216   :  { %1565 = vrot.lane.b32.xlu0 %v1363_v12, %s2541_s24 }
 0x217   :  { %v1932_v13 = vpop.permute.xlu1 %1931 }
 0x219   :  { %1691 = vrot.lane.b32.xlu1 %v1347_v34, %s2544_s27 }
 0x21a   :  { %1817 = vrot.lane.b32.xlu0 %v1426_v14, %s2546_s18 }
 0x21b   :  { %v1486_v47 = vpop.permute.xlu1 %1485 }
 0x21c   :  { %v1980_v63 = vsel %vm30_vm0, %v3295_v29, %v1486_v47 }
 0x21d   :  { %1943 = vrot.lane.b32.xlu1 %v1409_v48, %s2548_s30 }
 0x21e   :  { %1629 = vrot.lane.b32.xlu0 %v3447_v31, %s2543_s26 }
 0x21f   :  { %v1550_v10 = vpop.permute.xlu1 %1549 }
 0x221   :  { %1693 = vrot.lane.b32.xlu1 %v1395_v22, %s2544_s27  ;;  %v2450_v26 = vpop.f32.mrb[10].mxu0 }
 0x222   :  { %1881 = vrot.lane.b32.xlu0 %v1442_v52, %s2547_s23  ;;  %v1261_v23 = vmul.f32 %v2450_v26, %v3275_v24  ;;  %v1214_v27 = vpop.f32.mrb[11].mxu0  ;;  %v3458_v1 = vpop.permute.xlu0 %1617 }
 0x223   :  { %v1740_v37 = vpop.permute.xlu1 %1739  ;;  %v1260_v28 = vmul.f32 %v3275_v24, %v1214_v27 }
 0x224   :  { %v1284_v39 = vadd.f32 %v3280_v38, %v1261_v23  ;;  %v2043_v35 = vsel %vm972_vm5, %v2027_v33, %v1740_v37 }
 0x225   :  { %v2059_v18 = vsel %vm989_vm6, %v2043_v35, %v1804_v4  ;;  %v1283_v42 = vadd.f32 %v3280_v38, %v1260_v28  ;;  %1945 = vrot.lane.b32.xlu1 %v1458_v32, %s2548_s30  ;;  %v1996_v4 = vsel %vm921_vm2, %v1980_v63, %v1550_v10 }
 0x226   :  { %1503 = vrot.lane.b32.xlu0 %v1395_v22, %s2542_s25  ;;  %v1300_v54 = vmax.f32 %v1284_v39, 0.0  ;;  %v2075_v36 = vsel %vm1006_vm7, %v2059_v18, %v1868_v59  ;;  %v3470_v44 = vpop.permute.xlu0 %1491  ;;  %v2012_v59 = vsel %vm938_vm3, %v1996_v4, %v3417_v61 }
 0x227   :  { %v1299_v40 = vmax.f32 %v1283_v42, 0.0  ;;  %v3468_v43 = vpop.permute.xlu1 %1681  ;;  %v2091_v48 = vsel %vm1023_vm8, %v2075_v36, %v1932_v13  ;;  %v1981_v13 = vsel %vm30_vm0, %v3288_v51, %v3426_v9  ;;  %v2028_v20 = vsel %vm955_vm4, %v2012_v59, %v3433_v5 }
 0x228   :  { %1317 = vst.msk [vmem:[#allocation3 + $0x158] sm:$0xff] %vm30_vm0, %v1300_v54  ;;  %2475 = vmatprep.mubr.msk.f32.mxu1 %vm1049_vm9, %v2091_v48  ;;  %v1997_v29 = vsel %vm921_vm2, %v1981_v13, %v3431_v55  ;;  %v2044_v51 = vsel %vm972_vm5, %v2028_v20, %v3440_v19 }
 0x229   :  { %1316 = vst.msk [vmem:[#allocation3 + $0x140] sm:$0xff] %vm30_vm0, %v1299_v40  ;;  %1567 = vrot.lane.b32.xlu1 %v1364_v50, %s2541_s24 }
 0x22a   :  { %1755 = vrot.lane.b32.xlu0 %v1363_v12, %s2545_s9  ;;  %v3480_v17 = vpop.permute.xlu0 %1745 }
 0x22b   :  { %v3478_v53 = vpop.permute.xlu1 %1555 }
 0x22d   :  { %1819 = vrot.lane.b32.xlu1 %v3447_v31, %s2546_s18 }
 0x22e   :  { %v3484_v41 = vpop.permute.xlu0 %1489 }
 0x22f   :  { %v1808_v56 = vpop.permute.xlu1 %1807  ;;  %v1397_v52 = vld [vmem:[#allocation3 + $0x158] sm:$0xff] }
 0x230   :  { %v3486_v46 = vld [vmem:[#allocation3 + $0x13f] sm:$0xff]  ;;  %v3514_v7 = vld [vmem:[#allocation3 + $0x157] sm:$0xff] }
 0x231   :  { %v1349_v57 = vld [vmem:[#allocation3 + $0x140] sm:$0xff]  ;;  %1631 = vrot.lane.b32.xlu1 %v3486_v46, %s2543_s26 }
 0x232   :  { %1505 = vrot.lane.b32.xlu0 %v1349_v57, %s2542_s25  ;;  %v3491_v60 = vpop.permute.xlu0 %1553  ;;  %v1365_v34 = vld [vmem:[#allocation3 + $0x141] sm:$0xff]  ;;  %v1366_v54 = vld [vmem:[#allocation3 + $0x159] sm:$0xff] }
 0x233   :  { %v1872_v62 = vpop.permute.xlu1 %1871 }
 0x235   :  { %1883 = vrot.lane.b32.xlu1 %v1395_v22, %s2547_s23 }
 0x236   :  { %1757 = vrot.lane.b32.xlu0 %v1364_v50, %s2545_s9  ;;  %v1806_v3 = vpop.permute.xlu0 %1805 }
 0x237   :  { %v1936_v0 = vpop.permute.xlu1 %1935  ;;  %v2060_v5 = vsel %vm989_vm6, %v2044_v51, %v1806_v3 }
 0x239   :  { %1695 = vrot.lane.b32.xlu1 %v1349_v57, %s2544_s27 }
 0x23a   :  { %1569 = vrot.lane.b32.xlu0 %v1365_v34, %s2541_s24  ;;  %v1870_v14 = vpop.permute.xlu0 %1869 }
 0x23b   :  { %v1616_v12 = vpop.permute.xlu1 %1615  ;;  %v2076_v26 = vsel %vm1006_vm7, %v2060_v5, %v1870_v14 }
 0x23c   :  { %v2013_v21 = vsel %vm938_vm3, %v1997_v29, %v1616_v12 }
 0x23d   :  { %1947 = vrot.lane.b32.xlu1 %v1364_v50, %s2548_s30 }
 0x23e   :  { %1821 = vrot.lane.b32.xlu0 %v3486_v46, %s2546_s18  ;;  %v1744_v47 = vpop.permute.xlu0 %1743 }
 0x23f   :  { %v1680_v61 = vpop.permute.xlu1 %1679 }
 0x240   :  { %v2029_v58 = vsel %vm955_vm4, %v2013_v21, %v1680_v61  ;;  %v2453_v55 = vpop.f32.mrb[12].mxu0 }
 0x241   :  { %v2045_v9 = vsel %vm972_vm5, %v2029_v58, %v1744_v47  ;;  %1697 = vrot.lane.b32.xlu1 %v1397_v52, %s2544_s27  ;;  %v1263_v10 = vmul.f32 %v2453_v55, %v3275_v24  ;;  %v1224_v22 = vpop.f32.mrb[13].mxu0 }
 0x242   :  { %1633 = vrot.lane.b32.xlu0 %v3514_v7, %s2543_s26  ;;  %v2061_v15 = vsel %vm989_vm6, %v2045_v9, %v1808_v56  ;;  %v3526_v23 = vpop.permute.xlu0 %1621  ;;  %v1262_v19 = vmul.f32 %v3275_v24, %v1224_v22 }
 0x243   :  { %v1934_v6 = vpop.permute.xlu1 %1933  ;;  %v2077_v27 = vsel %vm1006_vm7, %v2061_v15, %v1872_v62  ;;  %v1286_v32 = vadd.f32 %v3280_v38, %v1263_v10 }
 0x244   :  { %v2092_v33 = vsel %vm1023_vm8, %v2076_v26, %v1934_v6  ;;  %v2093_v37 = vsel %vm1023_vm8, %v2077_v27, %v1936_v0  ;;  %v1285_v28 = vadd.f32 %v3280_v38, %v1262_v19 }
 0x245   :  { %2476 = vmatmul.mubr.msk.f32.vlgmr.msra.gmra.mrb[0].mxu1 %vm1049_vm9, %v2092_v33  ;;  %1949 = vrot.lane.b32.xlu1 %v1365_v34, %s2548_s30  ;;  %v1302_v39 = vmax.f32 %v1286_v32, 0.0 }
 0x246   :  { %2478 = vmatprep.mubr.msk.f32.mxu1 %vm1049_vm9, %v2093_v37  ;;  %1885 = vrot.lane.b32.xlu0 %v1349_v57, %s2547_s23  ;;  %v1301_v35 = vmax.f32 %v1285_v28, 0.0  ;;  %v3540_v42 = vpop.permute.xlu0 %1495 }
 0x247   :  { %v3538_v18 = vpop.permute.xlu1 %1685  ;;  %1319 = vst.msk [vmem:[#allocation3 + $0x188] sm:$0xff] %vm30_vm0, %v1302_v39 }
 0x248   :  { %1318 = vst.msk [vmem:[#allocation3 + $0x170] sm:$0xff] %vm30_vm0, %v1301_v35 }
 0x249   :  { %1571 = vrot.lane.b32.xlu1 %v1366_v54, %s2541_s24 }
 0x24a   :  { %1507 = vrot.lane.b32.xlu0 %v1397_v52, %s2542_s25  ;;  %v3548_v40 = vpop.permute.xlu0 %1749 }
 0x24b   :  { %v3546_v36 = vpop.permute.xlu1 %1559 }
 0x24d   :  { %1823 = vrot.lane.b32.xlu1 %v3514_v7, %s2546_s18  ;;  %v2456_v48 = vpop.f32.mrb[14].mxu0 }
 0x24e   :  { %1759 = vrot.lane.b32.xlu0 %v1365_v34, %s2545_s9  ;;  %v1494_v56 = vpop.permute.xlu0 %1493  ;;  %v1265_v57 = vmul.f32 %v2456_v48, %v3275_v24  ;;  %v1234_v62 = vpop.f32.mrb[15].mxu0  ;;  %v1399_v55 = vld [vmem:[#allocation3 + $0x188] sm:$0xff] }
 0x24f   :  { %v1812_v50 = vpop.permute.xlu1 %1811  ;;  %v3554_v63 = vld [vmem:[#allocation3 + $0x16f] sm:$0xff]  ;;  %v1264_v4 = vmul.f32 %v3275_v24, %v1234_v62  ;;  %v1982_v24 = vsel %vm30_vm0, %v3356_v16, %v3484_v41  ;;  %v1983_v16 = vsel %vm30_vm0, %v3313_v8, %v3470_v44  ;;  %v1984_v37 = vsel %vm30_vm0, %v3387_v25, %v1494_v56 }
 0x250   :  { %v1351_v0 = vld [vmem:[#allocation3 + $0x170] sm:$0xff]  ;;  %v1288_v3 = vadd.f32 %v3280_v38, %v1265_v57  ;;  %v1999_v41 = vsel %vm921_vm2, %v1983_v16, %v3478_v53  ;;  %v3591_v53 = vld [vmem:[#allocation3 + $0x187] sm:$0xff] }
 0x251   :  { %1635 = vrot.lane.b32.xlu1 %v3554_v63, %s2543_s26  ;;  %v1287_v34 = vadd.f32 %v3280_v38, %v1264_v4  ;;  %v1998_v38 = vsel %vm921_vm2, %v1982_v24, %v3491_v60  ;;  %v1367_v21 = vld [vmem:[#allocation3 + $0x171] sm:$0xff]  ;;  %v1368_v32 = vld [vmem:[#allocation3 + $0x189] sm:$0xff] }
 0x252   :  { %1509 = vrot.lane.b32.xlu0 %v1351_v0, %s2542_s25  ;;  %v1304_v59 = vmax.f32 %v1288_v3, 0.0  ;;  %v1558_v14 = vpop.permute.xlu0 %1557  ;;  %v2014_v61 = vsel %vm938_vm3, %v1998_v38, %v3458_v1 }
 0x253   :  { %v1876_v12 = vpop.permute.xlu1 %1875  ;;  %v1303_v13 = vmax.f32 %v1287_v34, 0.0  ;;  %v2030_v60 = vsel %vm955_vm4, %v2014_v61, %v3468_v43  ;;  %v2000_v39 = vsel %vm921_vm2, %v1984_v37, %v1558_v14 }
 0x254   :  { %1321 = vst.msk [vmem:[#allocation3 + $0x1b8] sm:$0xff] %vm30_vm0, %v1304_v59  ;;  %v2046_v8 = vsel %vm972_vm5, %v2030_v60, %v3480_v17 }
 0x255   :  { %1887 = vrot.lane.b32.xlu1 %v1397_v52, %s2547_s23  ;;  %1320 = vst.msk [vmem:[#allocation3 + $0x1a0] sm:$0xff] %vm30_vm0, %v1303_v13 }
 0x256   :  { %1761 = vrot.lane.b32.xlu0 %v1366_v54, %s2545_s9  ;;  %v1810_v20 = vpop.permute.xlu0 %1809 }
 0x257   :  { %v1940_v29 = vpop.permute.xlu1 %1939  ;;  %v2062_v43 = vsel %vm989_vm6, %v2046_v8, %v1810_v20  ;;  %v1985_v20 = vsel %vm30_vm0, %v3370_v30, %v3540_v42 }
 0x258   :  { %v2001_v61 = vsel %vm921_vm2, %v1985_v20, %v3546_v36 }
 0x259   :  { %1699 = vrot.lane.b32.xlu1 %v1351_v0, %s2544_s27 }
 0x25a   :  { %1573 = vrot.lane.b32.xlu0 %v1367_v21, %s2541_s24  ;;  %v1874_v58 = vpop.permute.xlu0 %1873 }
 0x25b   :  { %v1620_v47 = vpop.permute.xlu1 %1619  ;;  %v2078_v15 = vsel %vm1006_vm7, %v2062_v43, %v1874_v58  ;;  %v1417_v24 = vld [vmem:[#allocation3 + $0x1b9] sm:$0xff] }
 0x25c   :  { %v2015_v52 = vsel %vm938_vm3, %v1999_v41, %v1620_v47  ;;  %v3621_v48 = vld [vmem:[#allocation3 + $0x19f] sm:$0xff]  ;;  %v1450_v41 = vld [vmem:[#allocation3 + $0x1d0] sm:$0xff] }
 0x25d   :  { %1951 = vrot.lane.b32.xlu1 %v1366_v54, %s2548_s30  ;;  %v2016_v54 = vsel %vm938_vm3, %v2000_v39, %v3526_v23  ;;  %v1369_v34 = vld [vmem:[#allocation3 + $0x1a1] sm:$0xff]  ;;  %v1401_v58 = vld [vmem:[#allocation3 + $0x1b8] sm:$0xff] }
 0x25e   :  { %1825 = vrot.lane.b32.xlu0 %v3554_v63, %s2546_s18  ;;  %v1748_v51 = vpop.permute.xlu0 %1747  ;;  %v2032_v25 = vsel %vm955_vm4, %v2016_v54, %v3538_v18 }
 0x25f   :  { %v1684_v1 = vpop.permute.xlu1 %1683  ;;  %v2048_v62 = vsel %vm972_vm5, %v2032_v25, %v3548_v40 }
 0x260   :  { %v2031_v9 = vsel %vm955_vm4, %v2015_v52, %v1684_v1 }
 0x261   :  { %v2047_v44 = vsel %vm972_vm5, %v2031_v9, %v1748_v51  ;;  %1701 = vrot.lane.b32.xlu1 %v1399_v55, %s2544_s27  ;;  %v1466_v51 = vld [vmem:[#allocation3 + $0x1d1] sm:$0xff] }
 0x262   :  { %v2063_v5 = vsel %vm989_vm6, %v2047_v44, %v1812_v50  ;;  %1637 = vrot.lane.b32.xlu0 %v3591_v53, %s2543_s26  ;;  %v3598_v22 = vpop.permute.xlu0 %1625  ;;  %v1353_v50 = vld [vmem:[#allocation3 + $0x1a0] sm:$0xff] }
 0x263   :  { %v1938_v10 = vpop.permute.xlu1 %1937  ;;  %v2079_v17 = vsel %vm1006_vm7, %v2063_v5, %v1876_v12  ;;  %v1385_v12 = vld [vmem:[#allocation3 + $0x1b7] sm:$0xff] }
 0x264   :  { %v2094_v26 = vsel %vm1023_vm8, %v2078_v15, %v1938_v10  ;;  %v2095_v6 = vsel %vm1023_vm8, %v2079_v17, %v1940_v29  ;;  %v1434_v29 = vld [vmem:[#allocation3 + $0x1cf] sm:$0xff] }
 0x265   :  { %2479 = vmatmul.mubr.msk.f32.gmra.mrb[2].mxu1 %vm1049_vm9, %v2094_v26  ;;  %1953 = vrot.lane.b32.xlu1 %v1367_v21, %s2548_s30 }
 0x266   :  { %2481 = vmatprep.mubr.msk.f32.mxu1 %vm1049_vm9, %v2095_v6  ;;  %1889 = vrot.lane.b32.xlu0 %v1351_v0, %s2547_s23  ;;  %v3609_v27 = vpop.permute.xlu0 %1753 }
 0x267   :  { %v3607_v19 = vpop.permute.xlu1 %1689 }
 0x269   :  { %1575 = vrot.lane.b32.xlu1 %v1368_v32, %s2541_s24 }
 0x26a   :  { %1511 = vrot.lane.b32.xlu0 %v1399_v55, %s2542_s25  ;;  %v1498_v33 = vpop.permute.xlu0 %1497 }
 0x26b   :  { %v1624_v28 = vpop.permute.xlu1 %1623  ;;  %v1986_v60 = vsel %vm30_vm0, %v3404_v49, %v1498_v33 }
 0x26c   :  { %v2017_v47 = vsel %vm938_vm3, %v2001_v61, %v1624_v28  ;;  %v3708_v28 = vld [vmem:[%s4004_s0] sm:$0xff] }
 0x26d   :  { %1827 = vrot.lane.b32.xlu1 %v3591_v53, %s2546_s18 }
 0x26e   :  { %1763 = vrot.lane.b32.xlu0 %v1367_v21, %s2545_s9  ;;  %v1562_v35 = vpop.permute.xlu0 %1561 }
 0x26f   :  { %v1688_v57 = vpop.permute.xlu1 %1687  ;;  %v2002_v1 = vsel %vm921_vm2, %v1986_v60, %v1562_v35 }
 0x270   :  { %v2033_v16 = vsel %vm955_vm4, %v2017_v47, %v1688_v57  ;;  %v2018_v9 = vsel %vm938_vm3, %v2002_v1, %v3598_v22 }
 0x271   :  { %1639 = vrot.lane.b32.xlu1 %v3621_v48, %s2543_s26  ;;  %v2034_v43 = vsel %vm955_vm4, %v2018_v9, %v3607_v19  ;;  %v3687_v19 = vld [vmem:[%s4005_s1] ss:$0 sm:$0xff] }
 0x272   :  { %1513 = vrot.lane.b32.xlu0 %v1353_v50, %s2542_s25  ;;  %v1814_v56 = vpop.permute.xlu0 %1813  ;;  %v2050_v10 = vsel %vm972_vm5, %v2034_v43, %v3609_v27  ;;  %v3697_v27 = vld [vmem:[%s4004_s0 + $0x8] sm:$0xff]  ;;  %v175_v54 = vmul.f32 %v3687_v19, %v3708_v28 }
 0x273   :  { %v2064_v23 = vsel %vm989_vm6, %v2048_v62, %v1814_v56  ;;  %v1942_v3 = vpop.permute.xlu1 %1941  ;;  %v176_v37 = vmul.f32 %v3687_v19, %v3697_v27 }
 0x275   :  { %1891 = vrot.lane.b32.xlu1 %v1399_v55, %s2547_s23 }
 0x276   :  { %1765 = vrot.lane.b32.xlu0 %v1368_v32, %s2545_s9  ;;  %v1878_v0 = vpop.permute.xlu0 %1877 }
 0x277   :  { %v2080_v4 = vsel %vm1006_vm7, %v2064_v23, %v1878_v0  ;;  %v1816_v18 = vpop.permute.xlu1 %1815 }
 0x278   :  { %v2096_v59 = vsel %vm1023_vm8, %v2080_v4, %v1942_v3 }
 0x279   :  { %1703 = vrot.lane.b32.xlu1 %v1353_v50, %s2544_s27  ;;  %2482 = vmatmul.mubr.msk.f32.gmra.mrb[4].mxu1 %vm1049_vm9, %v2096_v59 }
 0x27a   :  { %1577 = vrot.lane.b32.xlu0 %v1369_v34, %s2541_s24  ;;  %v1752_v40 = vpop.permute.xlu0 %1751 }
 0x27b   :  { %v2049_v30 = vsel %vm972_vm5, %v2033_v16, %v1752_v40 }
 0x27c   :  { %v2065_v36 = vsel %vm989_vm6, %v2049_v30, %v1816_v18  ;;  %v1330_v18 = vld [vmem:[#allocation3 + $0xf7] sm:$0xff] }
 0x27d   :  { %1955 = vrot.lane.b32.xlu1 %v1368_v32, %s2548_s30  ;;  %v3692_v32 = vld [vmem:[%s4006_s2] ss:$0 sm:$0xff]  ;;  %v1987_v40 = vsel %vm30_vm0, %v1330_v18, %v3424_v2 }
 0x27e   :  { %1829 = vrot.lane.b32.xlu0 %v3621_v48, %s2546_s18  ;;  %v199_v35 = vadd.f32 %v3692_v32, %v176_v37  ;;  %v198_v25 = vadd.f32 %v3692_v32, %v175_v54 }
 0x280   :  { %v215_v57 = vmax.f32 %v199_v35, 0.0  ;;  %v214_v0 = vmax.f32 %v198_v25, 0.0 }
 0x281   :  { %1767 = vrot.lane.b32.xlu1 %v1369_v34, %s2545_s9 }
 0x282   :  { %1641 = vrot.lane.b32.xlu0 %v1385_v12, %s2543_s26  ;;  %233 = vst.msk [vmem:[#allocation2 + $0x38] sm:$0xff] %vm30_vm0, %v215_v57  ;;  %232 = vst.msk [vmem:[#allocation2 + $0x20] sm:$0xff] %vm30_vm0, %v214_v0 }
 0x283   :  { %v3643_v14 = vpop.permute.xlu1 %1627 }
 0x284   :  { %v3645_v13 = vpop.permute.xlu0 %1501 }
 0x285   :  { %1769 = vrot.lane.b32.xlu1 %v1417_v24, %s2545_s9 }
 0x286   :  { %1893 = vrot.lane.b32.xlu0 %v1353_v50, %s2547_s23  ;;  %v3718_v50 = vld [vmem:[%s4004_s0 + $0x18] sm:$0xff] }
 0x287   :  { %v1880_v38 = vpop.permute.xlu1 %1879  ;;  %v178_v56 = vmul.f32 %v3687_v19, %v3718_v50 }
 0x288   :  { %v3652_v21 = vpop.permute.xlu0 %1565  ;;  %v2081_v55 = vsel %vm1006_vm7, %v2065_v36, %v1880_v38 }
 0x289   :  { %1833 = vrot.lane.b32.xlu1 %v1434_v29, %s2546_s18  ;;  %v201_v3 = vadd.f32 %v3692_v32, %v178_v56  ;;  %v2003_v29 = vsel %vm921_vm2, %v1987_v40, %v3411_v45  ;;  %v1988_v45 = vsel %vm30_vm0, %v3435_v11, %v3645_v13  ;;  %v3756_v13 = vld [vmem:[%s4004_s0 + $0x10] sm:$0xff] }
 0x28a   :  { %1705 = vrot.lane.b32.xlu0 %v1401_v58, %s2544_s27  ;;  %v2019_v20 = vsel %vm938_vm3, %v2003_v29, %v3643_v14 }
 0x28b   :  { %v1692_v42 = vpop.permute.xlu1 %1691  ;;  %v217_v4 = vmax.f32 %v201_v3, 0.0 }
 0x28c   :  { %v1818_v52 = vpop.permute.xlu0 %1817  ;;  %v2035_v47 = vsel %vm955_vm4, %v2019_v20, %v1692_v42  ;;  %v2004_v42 = vsel %vm921_vm2, %v1988_v45, %v3652_v21  ;;  %v3801_v20 = vld [vmem:[%s4004_s0 + $0x38] sm:$0xff] }
 0x28d   :  { %1897 = vrot.lane.b32.xlu1 %v1450_v41, %s2547_s23  ;;  %v2066_v22 = vsel %vm989_vm6, %v2050_v10, %v1818_v52  ;;  %235 = vst.msk [vmem:[#allocation2 + $0x68] sm:$0xff] %vm30_vm0, %v217_v4 }
 0x28e   :  { %1957 = vrot.lane.b32.xlu0 %v1369_v34, %s2548_s30 }
 0x28f   :  { %v1944_v8 = vpop.permute.xlu1 %1943 }
 0x290   :  { %v3670_v49 = vpop.permute.xlu0 %1629  ;;  %v2097_v44 = vsel %vm1023_vm8, %v2081_v55, %v1944_v8 }
 0x291   :  { %2484 = vmatprep.mubr.msk.f32.mxu1 %vm1049_vm9, %v2097_v44  ;;  %1961 = vrot.lane.b32.xlu1 %v1466_v51, %s2548_s30  ;;  %v2020_v1 = vsel %vm938_vm3, %v2004_v42, %v3670_v49  ;;  %v177_v49 = vmul.f32 %v3687_v19, %v3756_v13 }
 0x292   :  { %1831 = vrot.lane.b32.xlu0 %v1385_v12, %s2546_s18 }
 0x293   :  { %v1694_v5 = vpop.permute.xlu1 %1693 }
 0x294   :  { %v1882_v15 = vpop.permute.xlu0 %1881  ;;  %v2036_v36 = vsel %vm955_vm4, %v2020_v1, %v1694_v5  ;;  %v3764_v5 = vld [vmem:[%s4004_s0 + $0x28] sm:$0xff] }
 0x295   :  { %v2082_v17 = vsel %vm1006_vm7, %v2066_v22, %v1882_v15  ;;  %v200_v15 = vadd.f32 %v3692_v32, %v177_v49  ;;  %v180_v10 = vmul.f32 %v3687_v19, %v3764_v5 }
 0x296   :  { %1895 = vrot.lane.b32.xlu0 %v1401_v58, %s2547_s23 }
 0x297   :  { %v1946_v26 = vpop.permute.xlu1 %1945 }
 0x298   :  { %v2098_v6 = vsel %vm1023_vm8, %v2082_v17, %v1946_v26  ;;  %v3699_v33 = vpop.permute.xlu0 %1503  ;;  %v216_v17 = vmax.f32 %v200_v15, 0.0  ;;  %v203_v26 = vadd.f32 %v3692_v32, %v180_v10 }
 0x299   :  { %2485 = vmatmul.mubr.msk.f32.gmra.mrb[6].mxu1 %vm1049_vm9, %v2098_v6  ;;  %v1989_v57 = vsel %vm30_vm0, %v3447_v31, %v3699_v33  ;;  %v3789_v31 = vld [vmem:[%s4004_s0 + $0x20] sm:$0xff] }
 0x29a   :  { %1959 = vrot.lane.b32.xlu0 %v1417_v24, %s2548_s30  ;;  %234 = vst.msk [vmem:[#allocation2 + $0x50] sm:$0xff] %vm30_vm0, %v216_v17  ;;  %v219_v37 = vmax.f32 %v203_v26, 0.0 }
 0x29b   :  { %v3710_v39 = vpop.permute.xlu1 %1567 }
 0x29c   :  { %v1756_v62 = vpop.permute.xlu0 %1755  ;;  %237 = vst.msk [vmem:[#allocation2 + $0x98] sm:$0xff] %vm30_vm0, %v219_v37  ;;  %v2005_v56 = vsel %vm921_vm2, %v1989_v57, %v3710_v39 }
 0x29d   :  { %v2051_v58 = vsel %vm972_vm5, %v2035_v47, %v1756_v62 }
 0x29f   :  { %v1820_v23 = vpop.permute.xlu1 %1819 }
 0x2a0   :  { %v2067_v16 = vsel %vm989_vm6, %v2051_v58, %v1820_v23  ;;  %v182_v58 = vmul.f32 %v3687_v19, %v3801_v20 }
 0x2a3   :  { %v1632_v59 = vpop.permute.xlu1 %1631 }
 0x2a4   :  { %v3726_v34 = vpop.permute.xlu0 %1505  ;;  %v2021_v23 = vsel %vm938_vm3, %v2005_v56, %v1632_v59  ;;  %v179_v59 = vmul.f32 %v3687_v19, %v3789_v31 }
 0x2a5   :  { %v1990_v29 = vsel %vm30_vm0, %v3486_v46, %v3726_v34  ;;  %v205_v46 = vadd.f32 %v3692_v32, %v182_v58 }
 0x2a6   :  { %v202_v47 = vadd.f32 %v3692_v32, %v179_v59 }
 0x2a7   :  { %v1884_v12 = vpop.permute.xlu1 %1883 }
 0x2a8   :  { %v1758_v24 = vpop.permute.xlu0 %1757  ;;  %v2083_v41 = vsel %vm1006_vm7, %v2067_v16, %v1884_v12 }
 0x2a9   :  { %v2052_v51 = vsel %vm972_vm5, %v2036_v36, %v1758_v24 }
 0x2ab   :  { %v1696_v38 = vpop.permute.xlu1 %1695 }
 0x2ac   :  { %v1570_v61 = vpop.permute.xlu0 %1569  ;;  %v2037_v0 = vsel %vm955_vm4, %v2021_v23, %v1696_v38 }
 0x2ad   :  { %v2006_v38 = vsel %vm921_vm2, %v1990_v29, %v1570_v61 }
 0x2af   :  { %v1948_v60 = vpop.permute.xlu1 %1947 }
 0x2b0   :  { %v1822_v2 = vpop.permute.xlu0 %1821  ;;  %v2099_v30 = vsel %vm1023_vm8, %v2083_v41, %v1948_v60 }
 0x2b1   :  { %2487 = vmatprep.mubr.msk.f32.mxu1 %vm1049_vm9, %v2099_v30  ;;  %v2068_v55 = vsel %vm989_vm6, %v2052_v51, %v1822_v2  ;;  %v218_v2 = vmax.f32 %v202_v47, 0.0  ;;  %v221_v30 = vmax.f32 %v205_v46, 0.0 }
 0x2b3   :  { %v1698_v14 = vpop.permute.xlu1 %1697  ;;  %236 = vst.msk [vmem:[#allocation2 + $0x80] sm:$0xff] %vm30_vm0, %v218_v2  ;;  %239 = vst.msk [vmem:[#allocation2 + $0xc8] sm:$0xff] %vm30_vm0, %v221_v30 }
 0x2b4   :  { %v1634_v52 = vpop.permute.xlu0 %1633 }
 0x2b5   :  { %v2022_v16 = vsel %vm938_vm3, %v2006_v38, %v1634_v52 }
 0x2b6   :  { %v2038_v34 = vsel %vm955_vm4, %v2022_v16, %v1698_v14 }
 0x2b7   :  { %v1950_v9 = vpop.permute.xlu1 %1949 }
 0x2b8   :  { %v1886_v8 = vpop.permute.xlu0 %1885 }
 0x2b9   :  { %v2084_v44 = vsel %vm1006_vm7, %v2068_v55, %v1886_v8 }
 0x2ba   :  { %v2100_v11 = vsel %vm1023_vm8, %v2084_v44, %v1950_v9 }
 0x2bb   :  { %2488 = vmatmul.mubr.msk.f32.gmra.mrb[8].mxu1 %vm1049_vm9, %v2100_v11  ;;  %v1572_v21 = vpop.permute.xlu1 %1571 }
 0x2bc   :  { %v1508_v43 = vpop.permute.xlu0 %1507 }
 0x2bd   :  { %v1991_v11 = vsel %vm30_vm0, %v3514_v7, %v1508_v43 }
 0x2be   :  { %v2007_v15 = vsel %vm921_vm2, %v1991_v11, %v1572_v21 }
 0x2bf   :  { %v1824_v22 = vpop.permute.xlu1 %1823 }
 0x2c0   :  { %v1760_v6 = vpop.permute.xlu0 %1759 }
 0x2c1   :  { %v2053_v3 = vsel %vm972_vm5, %v2037_v0, %v1760_v6 }
 0x2c2   :  { %v2069_v40 = vsel %vm989_vm6, %v2053_v3, %v1824_v22 }
 0x2c3   :  { %v1636_v35 = vpop.permute.xlu1 %1635 }
 0x2c4   :  { %v3772_v54 = vpop.permute.xlu0 %1509  ;;  %v2023_v22 = vsel %vm938_vm3, %v2007_v15, %v1636_v35 }
 0x2c7   :  { %v1888_v25 = vpop.permute.xlu1 %1887 }
 0x2c8   :  { %v1762_v62 = vpop.permute.xlu0 %1761  ;;  %v2085_v12 = vsel %vm1006_vm7, %v2069_v40, %v1888_v25  ;;  %v3827_v25 = vld [vmem:[%s4004_s0 + $0x30] sm:$0xff] }
 0x2c9   :  { %v2054_v45 = vsel %vm972_vm5, %v2038_v34, %v1762_v62  ;;  %v181_v21 = vmul.f32 %v3687_v19, %v3827_v25  ;;  %v3836_v62 = vld [vmem:[%s4004_s0 + $0x48] sm:$0xff] }
 0x2ca   :  { %v184_v0 = vmul.f32 %v3687_v19, %v3836_v62 }
 0x2cb   :  { %v1700_v4 = vpop.permute.xlu1 %1699  ;;  %v204_v23 = vadd.f32 %v3692_v32, %v181_v21 }
 0x2cc   :  { %v3782_v18 = vpop.permute.xlu0 %1573  ;;  %v2039_v17 = vsel %vm955_vm4, %v2023_v22, %v1700_v4  ;;  %v207_v40 = vadd.f32 %v3692_v32, %v184_v0 }
 0x2cd   :  { %v220_v4 = vmax.f32 %v204_v23, 0.0  ;;  %v162_v23 = vld [vmem:[%s4004_s0 + $0x50] sm:$0xff] }
 0x2cf   :  { %v1952_v24 = vpop.permute.xlu1 %1951  ;;  %238 = vst.msk [vmem:[#allocation2 + $0xb0] sm:$0xff] %vm30_vm0, %v220_v4 }
 0x2d0   :  { %v2101_v33 = vsel %vm1023_vm8, %v2085_v12, %v1952_v24  ;;  %v1826_v39 = vpop.permute.xlu0 %1825  ;;  %v223_v24 = vmax.f32 %v207_v40, 0.0 }
 0x2d1   :  { %2490 = vmatprep.mubr.msk.f32.mxu1 %vm1049_vm9, %v2101_v33  ;;  %v2070_v42 = vsel %vm989_vm6, %v2054_v45, %v1826_v39  ;;  %v1992_v33 = vsel %vm30_vm0, %v3554_v63, %v3772_v54 }
 0x2d2   :  { %241 = vst.msk [vmem:[#allocation2 + $0x128] sm:$0xff] %vm30_vm0, %v223_v24  ;;  %v2008_v59 = vsel %vm921_vm2, %v1992_v33, %v3782_v18 }
 0x2d3   :  { %v1702_v41 = vpop.permute.xlu1 %1701 }
 0x2d4   :  { %v1638_v60 = vpop.permute.xlu0 %1637 }
 0x2d5   :  { %v2024_v38 = vsel %vm938_vm3, %v2008_v59, %v1638_v60 }
 0x2d6   :  { %v2040_v58 = vsel %vm955_vm4, %v2024_v38, %v1702_v41 }
 0x2d7   :  { %v1954_v61 = vpop.permute.xlu1 %1953 }
 0x2d8   :  { %v1890_v1 = vpop.permute.xlu0 %1889 }
 0x2d9   :  { %v2086_v52 = vsel %vm1006_vm7, %v2070_v42, %v1890_v1 }
 0x2da   :  { %v2102_v36 = vsel %vm1023_vm8, %v2086_v52, %v1954_v61 }
 0x2db   :  { %2491 = vmatmul.mubr.msk.f32.gmra.mrb[10].mxu1 %vm1049_vm9, %v2102_v36  ;;  %v1576_v51 = vpop.permute.xlu1 %1575 }
 0x2dc   :  { %v1512_v9 = vpop.permute.xlu0 %1511 }
 0x2dd   :  { %v1993_v41 = vsel %vm30_vm0, %v3591_v53, %v1512_v9 }
 0x2de   :  { %v2009_v1 = vsel %vm921_vm2, %v1993_v41, %v1576_v51 }
 0x2df   :  { %v1828_v14 = vpop.permute.xlu1 %1827 }
 0x2e0   :  { %v1764_v55 = vpop.permute.xlu0 %1763 }
 0x2e1   :  { %v2055_v26 = vsel %vm972_vm5, %v2039_v17, %v1764_v55  ;;  %v3887_v17 = vld [vmem:[%s4004_s0 + $0x58] sm:$0xff] }
 0x2e2   :  { %v2071_v57 = vsel %vm989_vm6, %v2055_v26, %v1828_v14 }
 0x2e3   :  { %v1640_v8 = vpop.permute.xlu1 %1639 }
 0x2e4   :  { %v1514_v44 = vpop.permute.xlu0 %1513 }
 0x2e5   :  { %v1994_v63 = vsel %vm30_vm0, %v3621_v48, %v1514_v44  ;;  %v2025_v48 = vsel %vm938_vm3, %v2009_v1, %v1640_v8  ;;  %v3880_v8 = vld [vmem:[%s4004_s0 + $0x40] sm:$0xff] }
 0x2e6   :  { %v183_v22 = vmul.f32 %v3687_v19, %v3880_v8 }
 0x2e7   :  { %v1892_v49 = vpop.permute.xlu1 %1891 }
 0x2e8   :  { %v1766_v10 = vpop.permute.xlu0 %1765  ;;  %v2087_v7 = vsel %vm1006_vm7, %v2071_v57, %v1892_v49  ;;  %v206_v26 = vadd.f32 %v3692_v32, %v183_v22 }
 0x2e9   :  { %v2056_v16 = vsel %vm972_vm5, %v2040_v58, %v1766_v10 }
 0x2eb   :  { %v1704_v6 = vpop.permute.xlu1 %1703 }
 0x2ec   :  { %v1578_v37 = vpop.permute.xlu0 %1577  ;;  %v2041_v14 = vsel %vm955_vm4, %v2025_v48, %v1704_v6  ;;  %v186_v6 = vmul.f32 %v3687_v19, %v3887_v17 }
 0x2ed   :  { %v2010_v18 = vsel %vm921_vm2, %v1994_v63, %v1578_v37  ;;  %v222_v37 = vmax.f32 %v206_v26, 0.0 }
 0x2ee   :  { %v209_v57 = vadd.f32 %v3692_v32, %v186_v6 }
 0x2ef   :  { %v1956_v43 = vpop.permute.xlu1 %1955  ;;  %240 = vst.msk [vmem:[#allocation2 + $0x110] sm:$0xff] %vm30_vm0, %v222_v37 }
 0x2f0   :  { %v2103_v35 = vsel %vm1023_vm8, %v2087_v7, %v1956_v43  ;;  %v1830_v56 = vpop.permute.xlu0 %1829  ;;  %v225_v7 = vmax.f32 %v209_v57, 0.0 }
 0x2f1   :  { %2493 = vmatprep.mubr.msk.f32.mxu1 %vm1049_vm9, %v2103_v35  ;;  %v2072_v2 = vsel %vm989_vm6, %v2056_v16, %v1830_v56 }
 0x2f2   :  { %243 = vst.msk [vmem:[#allocation2 + $0x158] sm:$0xff] %vm30_vm0, %v225_v7 }
 0x2f3   :  { %v1768_v3 = vpop.permute.xlu1 %1767 }
 0x2f4   :  { %v1642_v12 = vpop.permute.xlu0 %1641  ;;  %v2057_v55 = vsel %vm972_vm5, %v2041_v14, %v1768_v3 }
 0x2f5   :  { %v2026_v60 = vsel %vm938_vm3, %v2010_v18, %v1642_v12 }
 0x2f7   :  { %v1770_v29 = vpop.permute.xlu1 %1769 }
 0x2f8   :  { %v1894_v39 = vpop.permute.xlu0 %1893 }
 0x2f9   :  { %v2088_v34 = vsel %vm1006_vm7, %v2072_v2, %v1894_v39 }
 0x2fb   :  { %v1834_v46 = vpop.permute.xlu1 %1833 }
 0x2fc   :  { %v1706_v47 = vpop.permute.xlu0 %1705 }
 0x2fd   :  { %v2042_v45 = vsel %vm955_vm4, %v2026_v60, %v1706_v47 }
 0x2fe   :  { %v2058_v52 = vsel %vm972_vm5, %v2042_v45, %v1770_v29 }
 0x2ff   :  { %v1898_v42 = vpop.permute.xlu1 %1897  ;;  %v2074_v44 = vsel %vm989_vm6, %v2058_v52, %v1834_v46 }
 0x300   :  { %v1958_v30 = vpop.permute.xlu0 %1957  ;;  %v2090_v15 = vsel %vm1006_vm7, %v2074_v44, %v1898_v42 }
 0x301   :  { %v2104_v54 = vsel %vm1023_vm8, %v2088_v34, %v1958_v30  ;;  %v166_v30 = vld [vmem:[%s4004_s0 + $0x70] sm:$0xff] }
 0x302   :  { %2494 = vmatmul.mubr.msk.f32.gmra.mrb[12].mxu1 %vm1049_vm9, %v2104_v54  ;;  %v189_v63 = vmul.f32 %v3687_v19, %v166_v30 }
 0x303   :  { %v1962_v11 = vpop.permute.xlu1 %1961 }
 0x304   :  { %v1832_v61 = vpop.permute.xlu0 %1831  ;;  %v2106_v10 = vsel %vm1023_vm8, %v2090_v15, %v1962_v11  ;;  %v212_v54 = vadd.f32 %v3692_v32, %v189_v63 }
 0x305   :  { %v2073_v53 = vsel %vm989_vm6, %v2057_v55, %v1832_v61 }
 0x306   :  { %v228_v18 = vmax.f32 %v212_v54, 0.0 }
 0x308   :  { %v1896_v36 = vpop.permute.xlu0 %1895  ;;  %246 = vst.msk [vmem:[#allocation2 + $0x1a0] sm:$0xff] %vm30_vm0, %v228_v18 }
 0x309   :  { %v2089_v9 = vsel %vm1006_vm7, %v2073_v53, %v1896_v36 }
 0x30c   :  { %v1960_v49 = vpop.permute.xlu0 %1959 }
 0x30d   :  { %v2105_v51 = vsel %vm1023_vm8, %v2089_v9, %v1960_v49 }
 0x30e   :  { %2496 = vmatprep.mubr.msk.f32.mxu1 %vm1049_vm9, %v2105_v51 }
 0x30f   :  { %2497 = vmatmul.mubr.msk.f32.gmra.mrb[14].mxu1 %vm1049_vm9, %v2106_v10 }
 0x318   :  { %v2477_v43 = vpop.f32.mrb[0].mxu1 }
 0x319   :  { %v2236_v21 = vadd.f32 %v2477_v43, %v3697_v27  ;;  %v2230_v35 = vpop.f32.mrb[1].mxu1  ;;  %v185_v27 = vmul.f32 %v3687_v19, %v162_v23 }
 0x31a   :  { %v2231_v56 = vadd.f32 %v2230_v35, %v3708_v28  ;;  %v165_v28 = vld [vmem:[%s4004_s0 + $0x68] sm:$0xff] }
 0x31b   :  { %2310 = vst.msk [vmem:[%s4007_s7 + $0x8] sm:$0xff] %vm30_vm0, %v2236_v21  ;;  %v208_v0 = vadd.f32 %v3692_v32, %v185_v27  ;;  %v188_v3 = vmul.f32 %v3687_v19, %v165_v28 }
 0x31c   :  { %2309 = vst.msk [vmem:[%s4007_s7] sm:$0xff] %vm30_vm0, %v2231_v56 }
 0x31d   :  { %v224_v4 = vmax.f32 %v208_v0, 0.0  ;;  %v211_v40 = vadd.f32 %v3692_v32, %v188_v3 }
 0x31f   :  { %242 = vst.msk [vmem:[#allocation2 + $0x140] sm:$0xff] %vm30_vm0, %v224_v4  ;;  %v227_v12 = vmax.f32 %v211_v40, 0.0 }
 0x321   :  { %245 = vst.msk [vmem:[#allocation2 + $0x188] sm:$0xff] %vm30_vm0, %v227_v12 }
 0x338   :  { %v2480_v24 = vpop.f32.mrb[2].mxu1 }
 0x339   :  { %v2246_v33 = vadd.f32 %v2480_v24, %v3718_v50  ;;  %v2240_v39 = vpop.f32.mrb[3].mxu1 }
 0x33a   :  { %v2241_v59 = vadd.f32 %v2240_v39, %v3756_v13  ;;  %v164_v13 = vld [vmem:[%s4004_s0 + $0x60] sm:$0xff] }
 0x33b   :  { %2312 = vst.msk [vmem:[%s4007_s7 + $0x18] sm:$0xff] %vm30_vm0, %v2246_v33  ;;  %v187_v58 = vmul.f32 %v3687_v19, %v164_v13 }
 0x33c   :  { %2311 = vst.msk [vmem:[%s4007_s7 + $0x10] sm:$0xff] %vm30_vm0, %v2241_v59 }
 0x34c   :  { %v2483_v29 = vpop.f32.mrb[4].mxu1 }
 0x34d   :  { %v2256_v38 = vadd.f32 %v2483_v29, %v3764_v5  ;;  %v2250_v47 = vpop.f32.mrb[5].mxu1  ;;  %v167_v5 = vld [vmem:[%s4004_s0 + $0x78] sm:$0xff] }
 0x34e   :  { %v2251_v50 = vadd.f32 %v2250_v47, %v3789_v31  ;;  %v210_v31 = vadd.f32 %v3692_v32, %v187_v58  ;;  %v190_v16 = vmul.f32 %v3687_v19, %v167_v5 }
 0x34f   :  { %2314 = vst.msk [vmem:[%s4007_s7 + $0x28] sm:$0xff] %vm30_vm0, %v2256_v38 }
 0x350   :  { %2313 = vst.msk [vmem:[%s4007_s7 + $0x20] sm:$0xff] %vm30_vm0, %v2251_v50  ;;  %v226_v2 = vmax.f32 %v210_v31, 0.0  ;;  %v213_v46 = vadd.f32 %v3692_v32, %v190_v16 }
 0x352   :  { %244 = vst.msk [vmem:[#allocation2 + $0x170] sm:$0xff] %vm30_vm0, %v226_v2  ;;  %v229_v34 = vmax.f32 %v213_v46, 0.0 }
 0x354   :  { %247 = vst.msk [vmem:[#allocation2 + $0x1b8] sm:$0xff] %vm30_vm0, %v229_v34 }
 0x36c   :  { %v2486_v60 = vpop.f32.mrb[6].mxu1 }
 0x36d   :  { %v2266_v41 = vadd.f32 %v2486_v60, %v3801_v20  ;;  %v2260_v45 = vpop.f32.mrb[7].mxu1 }
 0x36e   :  { %v2261_v61 = vadd.f32 %v2260_v45, %v3827_v25 }
 0x36f   :  { %2316 = vst.msk [vmem:[%s4007_s7 + $0x38] sm:$0xff] %vm30_vm0, %v2266_v41 }
 0x370   :  { %2315 = vst.msk [vmem:[%s4007_s7 + $0x30] sm:$0xff] %vm30_vm0, %v2261_v61 }
 0x38e   :  { %v2489_v19 = vpop.f32.mrb[8].mxu1 }
 0x38f   :  { %v2276_v32 = vadd.f32 %v2489_v19, %v3836_v62  ;;  %v2270_v42 = vpop.f32.mrb[9].mxu1 }
 0x390   :  { %v2271_v1 = vadd.f32 %v2270_v42, %v3880_v8 }
 0x391   :  { %2318 = vst.msk [vmem:[%s4007_s7 + $0x48] sm:$0xff] %vm30_vm0, %v2276_v32 }
 0x392   :  { %2317 = vst.msk [vmem:[%s4007_s7 + $0x40] sm:$0xff] %vm30_vm0, %v2271_v1 }
 0x3ae   :  { %v2492_v20 = vpop.f32.mrb[10].mxu1 }
 0x3af   :  { %v2286_v25 = vadd.f32 %v2492_v20, %v3887_v17  ;;  %v2280_v52 = vpop.f32.mrb[11].mxu1 }
 0x3b0   :  { %v2281_v48 = vadd.f32 %v2280_v52, %v162_v23 }
 0x3b1   :  { %2320 = vst.msk [vmem:[%s4007_s7 + $0x58] sm:$0xff] %vm30_vm0, %v2286_v25 }
 0x3b2   :  { %2319 = vst.msk [vmem:[%s4007_s7 + $0x50] sm:$0xff] %vm30_vm0, %v2281_v48 }
 0x3d5   :  { %v2495_v62 = vpop.f32.mrb[12].mxu1 }
 0x3d6   :  { %v2296_v36 = vadd.f32 %v2495_v62, %v165_v28  ;;  %v2290_v14 = vpop.f32.mrb[13].mxu1 }
 0x3d7   :  { %v2291_v55 = vadd.f32 %v2290_v14, %v164_v13 }
 0x3d8   :  { %2322 = vst.msk [vmem:[%s4007_s7 + $0x68] sm:$0xff] %vm30_vm0, %v2296_v36 }
 0x3d9   :  { %2321 = vst.msk [vmem:[%s4007_s7 + $0x60] sm:$0xff] %vm30_vm0, %v2291_v55 }
 0x3e2   :  { %v2498_v44 = vpop.f32.mrb[14].mxu1 }
 0x3e3   :  { %v2306_v11 = vadd.f32 %v2498_v44, %v167_v5  ;;  %v2300_v53 = vpop.f32.mrb[15].mxu1 }
 0x3e4   :  { %v2301_v9 = vadd.f32 %v2300_v53, %v166_v30 }
 0x3e5   :  { %2324 = vst.msk [vmem:[%s4007_s7 + $0x78] sm:$0xff] %vm30_vm0, %v2306_v11 }
 0x3e6   :  { %2323 = vst.msk [vmem:[%s4007_s7 + $0x70] sm:$0xff] %vm30_vm0, %v2301_v9 }

// kernel: _lambda_.2
= control target key start
LH: loop header
LB: loop body
LE: loop exit
PB: predicated region body
PF: predicated region fallthrough
CT: control target
= control target key end

     0   :  { %vm33_vm0 = vcmask 31744   ;;  %vm179_vm1 = vcmask 64512   ;;  %v3391_v0 = vmov 0.0   ;;  %s3392_s18 = smov 4   ;;  %s3393_s19 = smov 8   ;;  %vm1567_vm2 = vcmask 1043456   ;;  %s5167_s0 = inlined_call_operand.vmem [shape: f32[2,16,16,4], index: 0, kind: input, shape index: {}]   ;;  %s5168_s1 = inlined_call_operand.vmem [shape: f32[1,4], index: 1, kind: input, shape index: {}]   ;;  %s5169_s2 = inlined_call_operand.vmem [shape: f32[1,4], index: 2, kind: input, shape index: {}]   ;;  %s5170_s3 = inlined_call_operand.vmem [shape: f32[36,8], index: 3, kind: input, shape index: {}]   ;;  %s5171_s4 = inlined_call_operand.vmem [shape: f32[1,8], index: 4, kind: input, shape index: {}]   ;;  %s5172_s5 = inlined_call_operand.vmem [shape: f32[1,8], index: 5, kind: input, shape index: {}]   ;;  %s5173_s7 = inlined_call_operand.vmem [shape: f32[4,8], index: 7, kind: input, shape index: {}]   ;;  %s5174_s6 = inlined_call_operand.vmem [shape: f32[72,8], index: 6, kind: input, shape index: {}]   ;;  %s5175_s8 = inlined_call_operand.vmem [shape: f32[2,64,8], index: 8, kind: output, shape index: {}]  }
   0x1   :  { %35 = vst.msk [vmem:[#allocation2 + $0x8] sm:$0xff] %vm33_vm0, %v3391_v0  ;;  %36 = vst.msk [vmem:[#allocation2 + $0x10] sm:$0xff] %vm33_vm0, %v3391_v0  ;;  %v243_v1 = vld [vmem:[%s5167_s0 + $0x10] sm:$0xff]  ;;  %v244_v2 = vld [vmem:[%s5167_s0 + $0x18] sm:$0xff]  ;;  %s3394_s28 = smov 12   ;;  %s3395_s11 = smov 16  }
   0x2   :  { %34 = vst.msk [vmem:[#allocation2] sm:$0xff] %vm33_vm0, %v3391_v0  ;;  %39 = vst.msk [vmem:[#allocation2 + $0x20] sm:$0xff] %vm33_vm0, %v3391_v0  ;;  %v3662_v3 = vld [vmem:[%s5168_s1] ss:$0 sm:$0xff]  ;;  %v246_v8 = vld [vmem:[%s5167_s0 + $0x28] sm:$0xff]  ;;  %s3396_s16 = smov 20  }
   0x3   :  { %40 = vst.msk [vmem:[#allocation2 + $0x28] sm:$0xff] %vm33_vm0, %v3391_v0  ;;  %41 = vst.msk [vmem:[#allocation2 + $0x30] sm:$0xff] %vm33_vm0, %v3391_v0  ;;  %v314_v4 = vmul.f32 %v3662_v3, %v243_v1  ;;  %v315_v5 = vmul.f32 %v3662_v3, %v244_v2  ;;  %v3749_v6 = vld [vmem:[%s5169_s2] ss:$0 sm:$0xff]  ;;  %v317_v10 = vmul.f32 %v3662_v3, %v246_v8  ;;  %v242_v12 = vld [vmem:[%s5167_s0 + $0x8] sm:$0xff]  ;;  %s3397_s22 = smov 24  }
   0x4   :  { %43 = vst.msk [vmem:[#allocation2 + $0x40] sm:$0xff] %vm33_vm0, %v3391_v0  ;;  %44 = vst.msk [vmem:[#allocation2 + $0x48] sm:$0xff] %vm33_vm0, %v3391_v0  ;;  %v245_v7 = vld [vmem:[%s5167_s0 + $0x20] sm:$0xff]  ;;  %v247_v13 = vld [vmem:[%s5167_s0 + $0x30] sm:$0xff]  ;;  %v313_v17 = vmul.f32 %v3662_v3, %v242_v12  ;;  %s3398_s13 = smov 28   ;;  %s3399_s27 = smov 32  }
   0x5   :  { %45 = vst.msk [vmem:[#allocation2 + $0x50] sm:$0xff] %vm33_vm0, %v3391_v0  ;;  %47 = vst.msk [vmem:[#allocation2 + $0x60] sm:$0xff] %vm33_vm0, %v3391_v0  ;;  %v316_v9 = vmul.f32 %v3662_v3, %v245_v7  ;;  %v241_v11 = vld [vmem:[%s5167_s0] sm:$0xff]  ;;  %v385_v14 = vadd.f32 %v3749_v6, %v314_v4  ;;  %v386_v15 = vadd.f32 %v3749_v6, %v315_v5  ;;  %v248_v18 = vld [vmem:[%s5167_s0 + $0x38] sm:$0xff]  ;;  %vm1411_vm3 = vcmask 97280   ;;  %s3403_s25 = smov 64  }
   0x6   :  { %48 = vst.msk [vmem:[#allocation2 + $0x68] sm:$0xff] %vm33_vm0, %v3391_v0  ;;  %49 = vst.msk [vmem:[#allocation2 + $0x70] sm:$0xff] %vm33_vm0, %v3391_v0  ;;  %v312_v16 = vmul.f32 %v3662_v3, %v241_v11  ;;  %v388_v20 = vadd.f32 %v3749_v6, %v317_v10  ;;  %v318_v21 = vmul.f32 %v3662_v3, %v247_v13  ;;  %v251_v23 = vld [vmem:[%s5167_s0 + $0x50] sm:$0xff]  ;;  %v252_v24 = vld [vmem:[%s5167_s0 + $0x58] sm:$0xff]  ;;  %vm1428_vm4 = vcmask 130048  }
   0x7   :  { %51 = vst.msk [vmem:[#allocation2 + $0x80] sm:$0xff] %vm33_vm0, %v3391_v0  ;;  %52 = vst.msk [vmem:[#allocation2 + $0x88] sm:$0xff] %vm33_vm0, %v3391_v0  ;;  %v387_v19 = vadd.f32 %v3749_v6, %v316_v9  ;;  %v319_v22 = vmul.f32 %v3662_v3, %v248_v18  ;;  %v449_v25 = vmax.f32 %v385_v14, 0.0  ;;  %v450_v26 = vmax.f32 %v386_v15, 0.0  ;;  %v249_v29 = vld [vmem:[%s5167_s0 + $0x40] sm:$0xff]  ;;  %v250_v30 = vld [vmem:[%s5167_s0 + $0x48] sm:$0xff] }
   0x8   :  { %53 = vst.msk [vmem:[#allocation2 + $0x90] sm:$0xff] %vm33_vm0, %v3391_v0  ;;  %55 = vst.msk [vmem:[#allocation2 + $0xa0] sm:$0xff] %vm33_vm0, %v3391_v0  ;;  %v383_v27 = vadd.f32 %v3749_v6, %v312_v16  ;;  %v384_v28 = vadd.f32 %v3749_v6, %v313_v17  ;;  %v253_v31 = vld [vmem:[%s5167_s0 + $0x60] sm:$0xff]  ;;  %v452_v33 = vmax.f32 %v388_v20, 0.0  ;;  %v389_v34 = vadd.f32 %v3749_v6, %v318_v21  ;;  %v254_v36 = vld [vmem:[%s5167_s0 + $0x68] sm:$0xff] }
   0x9   :  { %56 = vst.msk [vmem:[#allocation2 + $0xa8] sm:$0xff] %vm33_vm0, %v3391_v0  ;;  %57 = vst.msk [vmem:[#allocation2 + $0xb0] sm:$0xff] %vm33_vm0, %v3391_v0  ;;  %v451_v32 = vmax.f32 %v387_v19, 0.0  ;;  %v390_v35 = vadd.f32 %v3749_v6, %v319_v22  ;;  %v255_v37 = vld [vmem:[%s5167_s0 + $0x70] sm:$0xff]  ;;  %v256_v38 = vld [vmem:[%s5167_s0 + $0x78] sm:$0xff]  ;;  %v322_v43 = vmul.f32 %v3662_v3, %v251_v23  ;;  %v323_v44 = vmul.f32 %v3662_v3, %v252_v24 }
   0xa   :  { %59 = vst.msk [vmem:[#allocation2 + $0xc0] sm:$0xff] %vm33_vm0, %v3391_v0  ;;  %60 = vst.msk [vmem:[#allocation2 + $0xc8] sm:$0xff] %vm33_vm0, %v3391_v0  ;;  %v610_v39 = vld [vmem:[#allocation2 + $0x8] ss:$2 sm:$0xff]  ;;  %v642_v40 = vld [vmem:[#allocation2 + $0x9] ss:$2 sm:$0xff]  ;;  %v320_v47 = vmul.f32 %v3662_v3, %v249_v29  ;;  %v321_v48 = vmul.f32 %v3662_v3, %v250_v30  ;;  %v324_v51 = vmul.f32 %v3662_v3, %v253_v31 }
   0xb   :  { %61 = vst.msk [vmem:[#allocation2 + $0xd0] sm:$0xff] %vm33_vm0, %v3391_v0  ;;  %63 = vst.msk [vmem:[#allocation2 + $0xe0] sm:$0xff] %vm33_vm0, %v3391_v0  ;;  %v447_v41 = vmax.f32 %v383_v27, 0.0  ;;  %v448_v42 = vmax.f32 %v384_v28, 0.0  ;;  %882 = vrot.lane.b32.xlu0 %v610_v39, %s3392_s18  ;;  %946 = vrot.lane.b32.xlu1 %v642_v40, %s3393_s19  ;;  %v453_v45 = vmax.f32 %v389_v34, 0.0  ;;  %v454_v46 = vmax.f32 %v390_v35, 0.0 }
   0xc   :  { %64 = vst.msk [vmem:[#allocation2 + $0xe8] sm:$0xff] %vm33_vm0, %v3391_v0  ;;  %65 = vst.msk [vmem:[#allocation2 + $0xf0] sm:$0xff] %vm33_vm0, %v3391_v0  ;;  %v393_v49 = vadd.f32 %v3749_v6, %v322_v43  ;;  %v394_v50 = vadd.f32 %v3749_v6, %v323_v44  ;;  %v325_v52 = vmul.f32 %v3662_v3, %v254_v36  ;;  %v259_v57 = vld [vmem:[%s5167_s0 + $0x90] sm:$0xff]  ;;  %v260_v58 = vld [vmem:[%s5167_s0 + $0x98] sm:$0xff]  ;;  %vm1445_vm5 = vcmask 162816  }
   0xd   :  { %67 = vst.msk [vmem:[#allocation2 + $0x100] sm:$0xff] %vm33_vm0, %v3391_v0  ;;  %68 = vst.msk [vmem:[#allocation2 + $0x108] sm:$0xff] %vm33_vm0, %v3391_v0  ;;  %v391_v53 = vadd.f32 %v3749_v6, %v320_v47  ;;  %v392_v54 = vadd.f32 %v3749_v6, %v321_v48  ;;  %v326_v55 = vmul.f32 %v3662_v3, %v255_v37  ;;  %v257_v59 = vld [vmem:[%s5167_s0 + $0x80] sm:$0xff]  ;;  %v258_v1 = vld [vmem:[%s5167_s0 + $0x88] sm:$0xff]  ;;  %vm1462_vm6 = vcmask 195584  }
   0xe   :  { %69 = vst.msk [vmem:[#allocation2 + $0x110] sm:$0xff] %vm33_vm0, %v3391_v0  ;;  %71 = vst.msk [vmem:[#allocation2 + $0x120] sm:$0xff] %vm33_vm0, %v3391_v0  ;;  %v327_v56 = vmul.f32 %v3662_v3, %v256_v38  ;;  %v457_v60 = vmax.f32 %v393_v49, 0.0  ;;  %v458_v61 = vmax.f32 %v394_v50, 0.0  ;;  %v395_v62 = vadd.f32 %v3749_v6, %v324_v51  ;;  %v261_v2 = vld [vmem:[%s5167_s0 + $0xa0] sm:$0xff]  ;;  %v262_v4 = vld [vmem:[%s5167_s0 + $0xa8] sm:$0xff] }
   0xf   :  { %72 = vst.msk [vmem:[#allocation2 + $0x128] sm:$0xff] %vm33_vm0, %v3391_v0  ;;  %73 = vst.msk [vmem:[#allocation2 + $0x130] sm:$0xff] %vm33_vm0, %v3391_v0  ;;  %v396_v63 = vadd.f32 %v3749_v6, %v325_v52  ;;  %v455_v5 = vmax.f32 %v391_v53, 0.0  ;;  %v456_v7 = vmax.f32 %v392_v54, 0.0  ;;  %v397_v8 = vadd.f32 %v3749_v6, %v326_v55  ;;  %v263_v9 = vld [vmem:[%s5167_s0 + $0xb0] sm:$0xff]  ;;  %v264_v10 = vld [vmem:[%s5167_s0 + $0xb8] sm:$0xff] }
  0x10   :  { %75 = vst.msk [vmem:[#allocation2 + $0x140] sm:$0xff] %vm33_vm0, %v3391_v0  ;;  %76 = vst.msk [vmem:[#allocation2 + $0x148] sm:$0xff] %vm33_vm0, %v3391_v0  ;;  %v459_v11 = vmax.f32 %v395_v62, 0.0  ;;  %v330_v13 = vmul.f32 %v3662_v3, %v259_v57  ;;  %v331_v14 = vmul.f32 %v3662_v3, %v260_v58  ;;  %v267_v15 = vld [vmem:[%s5167_s0 + $0xd0] sm:$0xff]  ;;  %v268_v16 = vld [vmem:[%s5167_s0 + $0xd8] sm:$0xff]  ;;  %v328_v20 = vmul.f32 %v3662_v3, %v257_v59 }
  0x11   :  { %77 = vst.msk [vmem:[#allocation2 + $0x150] sm:$0xff] %vm33_vm0, %v3391_v0  ;;  %79 = vst.msk [vmem:[#allocation2 + $0x160] sm:$0xff] %vm33_vm0, %v3391_v0  ;;  %v460_v12 = vmax.f32 %v396_v63, 0.0  ;;  %v265_v17 = vld [vmem:[%s5167_s0 + $0xc0] sm:$0xff]  ;;  %v329_v21 = vmul.f32 %v3662_v3, %v258_v1  ;;  %v332_v22 = vmul.f32 %v3662_v3, %v261_v2  ;;  %v333_v23 = vmul.f32 %v3662_v3, %v262_v4  ;;  %v266_v24 = vld [vmem:[%s5167_s0 + $0xc8] sm:$0xff] }
  0x12   :  { %80 = vst.msk [vmem:[#allocation2 + $0x168] sm:$0xff] %vm33_vm0, %v3391_v0  ;;  %81 = vst.msk [vmem:[#allocation2 + $0x170] sm:$0xff] %vm33_vm0, %v3391_v0  ;;  %v402_v27 = vadd.f32 %v3749_v6, %v331_v14  ;;  %v269_v28 = vld [vmem:[%s5167_s0 + $0xe0] sm:$0xff]  ;;  %v270_v29 = vld [vmem:[%s5167_s0 + $0xe8] sm:$0xff]  ;;  %v334_v35 = vmul.f32 %v3662_v3, %v263_v9  ;;  %v335_v37 = vmul.f32 %v3662_v3, %v264_v10  ;;  %vm1479_vm7 = vcmask 228352  }
  0x13   :  { %83 = vst.msk [vmem:[#allocation2 + $0x180] sm:$0xff] %vm33_vm0, %v3391_v0  ;;  %84 = vst.msk [vmem:[#allocation2 + $0x188] sm:$0xff] %vm33_vm0, %v3391_v0  ;;  %v403_v34 = vadd.f32 %v3749_v6, %v332_v22  ;;  %v404_v36 = vadd.f32 %v3749_v6, %v333_v23  ;;  %v338_v38 = vmul.f32 %v3662_v3, %v267_v15  ;;  %v275_v44 = vld [vmem:[%s5167_s0 + $0x110] sm:$0xff]  ;;  %v276_v49 = vld [vmem:[%s5167_s0 + $0x118] sm:$0xff]  ;;  %vm1496_vm8 = vcmask 261120  }
  0x14   :  { %85 = vst.msk [vmem:[#allocation2 + $0x190] sm:$0xff] %vm33_vm0, %v3391_v0  ;;  %87 = vst.msk [vmem:[#allocation2 + $0x1a0] sm:$0xff] %vm33_vm0, %v3391_v0  ;;  %v339_v39 = vmul.f32 %v3662_v3, %v268_v16  ;;  %v336_v40 = vmul.f32 %v3662_v3, %v265_v17  ;;  %v341_v43 = vmul.f32 %v3662_v3, %v270_v29  ;;  %v466_v48 = vmax.f32 %v402_v27, 0.0  ;;  %v273_v50 = vld [vmem:[%s5167_s0 + $0x100] sm:$0xff]  ;;  %v272_v23 = vld [vmem:[%s5167_s0 + $0xf8] sm:$0xff] }
  0x15   :  { %88 = vst.msk [vmem:[#allocation2 + $0x1a8] sm:$0xff] %vm33_vm0, %v3391_v0  ;;  %89 = vst.msk [vmem:[#allocation2 + $0x1b0] sm:$0xff] %vm33_vm0, %v3391_v0  ;;  %v405_v53 = vadd.f32 %v3749_v6, %v334_v35  ;;  %v406_v54 = vadd.f32 %v3749_v6, %v335_v37  ;;  %v409_v55 = vadd.f32 %v3749_v6, %v338_v38  ;;  %vm1518_vm9 = vcmask 293888  }
  0x16   :  { %91 = vst.msk [vmem:[#allocation2 + $0x1c0] sm:$0xff] %vm33_vm0, %v3391_v0  ;;  %92 = vst.msk [vmem:[#allocation2 + $0x1c8] sm:$0xff] %vm33_vm0, %v3391_v0  ;;  %v407_v57 = vadd.f32 %v3749_v6, %v336_v40  ;;  %v347_v62 = vmul.f32 %v3662_v3, %v276_v49  ;;  %v344_v63 = vmul.f32 %v3662_v3, %v273_v50  ;;  %v279_v49 = vld [vmem:[%s5167_s0 + $0x130] sm:$0xff]  ;;  %v280_v50 = vld [vmem:[%s5167_s0 + $0x138] sm:$0xff]  ;;  %vm182_vm10 = vcmask 57344  }
  0x17   :  { %93 = vst.msk [vmem:[#allocation2 + $0x1d0] sm:$0xff] %vm33_vm0, %v3391_v0  ;;  %95 = vst.msk [vmem:[#allocation2 + $0x1e0] sm:$0xff] %vm33_vm0, %v3391_v0  ;;  %v469_v9 = vmax.f32 %v405_v53, 0.0  ;;  %v470_v10 = vmax.f32 %v406_v54, 0.0  ;;  %v343_v29 = vmul.f32 %v3662_v3, %v272_v23  ;;  %v350_v53 = vmul.f32 %v3662_v3, %v279_v49 }
  0x18   :  { %96 = vst.msk [vmem:[#allocation2 + $0x1e8] sm:$0xff] %vm33_vm0, %v3391_v0  ;;  %97 = vst.msk [vmem:[#allocation2 + $0x1f0] sm:$0xff] %vm33_vm0, %v3391_v0  ;;  %v415_v22 = vadd.f32 %v3749_v6, %v344_v63  ;;  %v351_v54 = vmul.f32 %v3662_v3, %v280_v50  ;;  %vm2516_vm11 = vcmask 326656   ;;  %vm2533_vm12 = vcmask 392192  }
  0x19   :  { %99 = vst.msk [vmem:[#allocation2 + $0x200] sm:$0xff] %vm33_vm0, %v3391_v0  ;;  %100 = vst.msk [vmem:[#allocation2 + $0x208] sm:$0xff] %vm33_vm0, %v3391_v0  ;;  %v414_v38 = vadd.f32 %v3749_v6, %v343_v29  ;;  %v421_v63 = vadd.f32 %v3749_v6, %v350_v53  ;;  %v289_v53 = vld [vmem:[%s5167_s0 + $0x180] sm:$0xff]  ;;  %vm2550_vm13 = vcmask 457728   ;;  %vm2567_vm14 = vcmask 523264  }
  0x1a   :  { %101 = vst.msk [vmem:[#allocation2 + $0x210] sm:$0xff] %vm33_vm0, %v3391_v0  ;;  %107 = vst.msk [vmem:[#allocation2 + $0x240] sm:$0xff] %vm33_vm0, %v3391_v0  ;;  %vm2806_vm15 = vcmask 588800  }
  0x1b   :  { %108 = vst.msk [vmem:[#allocation2 + $0x248] sm:$0xff] %vm33_vm0, %v3391_v0  ;;  %109 = vst.msk [vmem:[#allocation2 + $0x250] sm:$0xff] %vm33_vm0, %v3391_v0 }
  0x1c   :  { %111 = vst.msk [vmem:[#allocation2 + $0x260] sm:$0xff] %vm33_vm0, %v3391_v0  ;;  %112 = vst.msk [vmem:[#allocation2 + $0x268] sm:$0xff] %vm33_vm0, %v3391_v0 }
  0x1d   :  { %113 = vst.msk [vmem:[#allocation2 + $0x270] sm:$0xff] %vm33_vm0, %v3391_v0  ;;  %115 = vst.msk [vmem:[#allocation2 + $0x280] sm:$0xff] %vm33_vm0, %v3391_v0 }
  0x1e   :  { %116 = vst.msk [vmem:[#allocation2 + $0x288] sm:$0xff] %vm33_vm0, %v3391_v0  ;;  %117 = vst.msk [vmem:[#allocation2 + $0x290] sm:$0xff] %vm33_vm0, %v3391_v0 }
  0x1f   :  { %119 = vst.msk [vmem:[#allocation2 + $0x2a0] sm:$0xff] %vm33_vm0, %v3391_v0  ;;  %120 = vst.msk [vmem:[#allocation2 + $0x2a8] sm:$0xff] %vm33_vm0, %v3391_v0 }
  0x20   :  { %121 = vst.msk [vmem:[#allocation2 + $0x2b0] sm:$0xff] %vm33_vm0, %v3391_v0  ;;  %123 = vst.msk [vmem:[#allocation2 + $0x2c0] sm:$0xff] %vm33_vm0, %v3391_v0 }
  0x21   :  { %124 = vst.msk [vmem:[#allocation2 + $0x2c8] sm:$0xff] %vm33_vm0, %v3391_v0  ;;  %125 = vst.msk [vmem:[#allocation2 + $0x2d0] sm:$0xff] %vm33_vm0, %v3391_v0 }
  0x22   :  { %127 = vst.msk [vmem:[#allocation2 + $0x2e0] sm:$0xff] %vm33_vm0, %v3391_v0  ;;  %128 = vst.msk [vmem:[#allocation2 + $0x2e8] sm:$0xff] %vm33_vm0, %v3391_v0 }
  0x23   :  { %129 = vst.msk [vmem:[#allocation2 + $0x2f0] sm:$0xff] %vm33_vm0, %v3391_v0  ;;  %131 = vst.msk [vmem:[#allocation2 + $0x300] sm:$0xff] %vm33_vm0, %v3391_v0 }
  0x24   :  { %132 = vst.msk [vmem:[#allocation2 + $0x308] sm:$0xff] %vm33_vm0, %v3391_v0  ;;  %133 = vst.msk [vmem:[#allocation2 + $0x310] sm:$0xff] %vm33_vm0, %v3391_v0 }
  0x25   :  { %135 = vst.msk [vmem:[#allocation2 + $0x320] sm:$0xff] %vm33_vm0, %v3391_v0  ;;  %136 = vst.msk [vmem:[#allocation2 + $0x328] sm:$0xff] %vm33_vm0, %v3391_v0 }
  0x26   :  { %137 = vst.msk [vmem:[#allocation2 + $0x330] sm:$0xff] %vm33_vm0, %v3391_v0  ;;  %139 = vst.msk [vmem:[#allocation2 + $0x340] sm:$0xff] %vm33_vm0, %v3391_v0 }
  0x27   :  { %140 = vst.msk [vmem:[#allocation2 + $0x348] sm:$0xff] %vm33_vm0, %v3391_v0  ;;  %141 = vst.msk [vmem:[#allocation2 + $0x350] sm:$0xff] %vm33_vm0, %v3391_v0 }
  0x28   :  { %143 = vst.msk [vmem:[#allocation2 + $0x360] sm:$0xff] %vm33_vm0, %v3391_v0  ;;  %144 = vst.msk [vmem:[#allocation2 + $0x368] sm:$0xff] %vm33_vm0, %v3391_v0 }
  0x29   :  { %145 = vst.msk [vmem:[#allocation2 + $0x370] sm:$0xff] %vm33_vm0, %v3391_v0  ;;  %147 = vst.msk [vmem:[#allocation2 + $0x380] sm:$0xff] %vm33_vm0, %v3391_v0 }
  0x2a   :  { %148 = vst.msk [vmem:[#allocation2 + $0x388] sm:$0xff] %vm33_vm0, %v3391_v0  ;;  %149 = vst.msk [vmem:[#allocation2 + $0x390] sm:$0xff] %vm33_vm0, %v3391_v0 }
  0x2b   :  { %151 = vst.msk [vmem:[#allocation2 + $0x3a0] sm:$0xff] %vm33_vm0, %v3391_v0  ;;  %152 = vst.msk [vmem:[#allocation2 + $0x3a8] sm:$0xff] %vm33_vm0, %v3391_v0 }
  0x2c   :  { %153 = vst.msk [vmem:[#allocation2 + $0x3b0] sm:$0xff] %vm33_vm0, %v3391_v0  ;;  %155 = vst.msk [vmem:[#allocation2 + $0x3c0] sm:$0xff] %vm33_vm0, %v3391_v0 }
  0x2d   :  { %156 = vst.msk [vmem:[#allocation2 + $0x3c8] sm:$0xff] %vm33_vm0, %v3391_v0  ;;  %157 = vst.msk [vmem:[#allocation2 + $0x3d0] sm:$0xff] %vm33_vm0, %v3391_v0 }
  0x2e   :  { %159 = vst.msk [vmem:[#allocation2 + $0x3e0] sm:$0xff] %vm33_vm0, %v3391_v0  ;;  %160 = vst.msk [vmem:[#allocation2 + $0x3e8] sm:$0xff] %vm33_vm0, %v3391_v0 }
  0x2f   :  { %161 = vst.msk [vmem:[#allocation2 + $0x3f0] sm:$0xff] %vm33_vm0, %v3391_v0  ;;  %163 = vst.msk [vmem:[#allocation2 + $0x400] sm:$0xff] %vm33_vm0, %v3391_v0 }
  0x30   :  { %164 = vst.msk [vmem:[#allocation2 + $0x408] sm:$0xff] %vm33_vm0, %v3391_v0  ;;  %165 = vst.msk [vmem:[#allocation2 + $0x410] sm:$0xff] %vm33_vm0, %v3391_v0 }
  0x31   :  { %167 = vst.msk [vmem:[#allocation2 + $0x420] sm:$0xff] %vm33_vm0, %v3391_v0  ;;  %168 = vst.msk [vmem:[#allocation2 + $0x428] sm:$0xff] %vm33_vm0, %v3391_v0 }
  0x32   :  { %169 = vst.msk [vmem:[#allocation2 + $0x430] sm:$0xff] %vm33_vm0, %v3391_v0  ;;  %171 = vst.msk [vmem:[#allocation2 + $0x440] sm:$0xff] %vm33_vm0, %v3391_v0 }
  0x33   :  { %172 = vst.msk [vmem:[#allocation2 + $0x448] sm:$0xff] %vm33_vm0, %v3391_v0  ;;  %173 = vst.msk [vmem:[#allocation2 + $0x450] sm:$0xff] %vm33_vm0, %v3391_v0 }
  0x34   :  { %180 = vst.msk [vmem:[#allocation3] sm:$0xff] %vm179_vm1, %v3391_v0  ;;  %181 = vst.msk [vmem:[#allocation3 + $0x8] sm:$0xff] %vm179_vm1, %v3391_v0 }
  0x35   :  { %184 = vst.msk [vmem:[#allocation3 + $0x18] sm:$0xff] %vm179_vm1, %v3391_v0  ;;  %185 = vst.msk [vmem:[#allocation3 + $0x20] sm:$0xff] %vm179_vm1, %v3391_v0 }
  0x36   :  { %187 = vst.msk [vmem:[#allocation3 + $0x30] sm:$0xff] %vm179_vm1, %v3391_v0  ;;  %188 = vst.msk [vmem:[#allocation3 + $0x38] sm:$0xff] %vm179_vm1, %v3391_v0 }
  0x37   :  { %190 = vst.msk [vmem:[#allocation3 + $0x48] sm:$0xff] %vm179_vm1, %v3391_v0  ;;  %191 = vst.msk [vmem:[#allocation3 + $0x50] sm:$0xff] %vm179_vm1, %v3391_v0 }
  0x38   :  { %193 = vst.msk [vmem:[#allocation3 + $0x60] sm:$0xff] %vm179_vm1, %v3391_v0  ;;  %194 = vst.msk [vmem:[#allocation3 + $0x68] sm:$0xff] %vm179_vm1, %v3391_v0 }
  0x39   :  { %196 = vst.msk [vmem:[#allocation3 + $0x78] sm:$0xff] %vm179_vm1, %v3391_v0  ;;  %197 = vst.msk [vmem:[#allocation3 + $0x80] sm:$0xff] %vm179_vm1, %v3391_v0 }
  0x3a   :  { %199 = vst.msk [vmem:[#allocation3 + $0x90] sm:$0xff] %vm179_vm1, %v3391_v0  ;;  %200 = vst.msk [vmem:[#allocation3 + $0x98] sm:$0xff] %vm179_vm1, %v3391_v0 }
  0x3b   :  { %202 = vst.msk [vmem:[#allocation3 + $0xa8] sm:$0xff] %vm179_vm1, %v3391_v0  ;;  %203 = vst.msk [vmem:[#allocation3 + $0xb0] sm:$0xff] %vm179_vm1, %v3391_v0 }
  0x3c   :  { %205 = vst.msk [vmem:[#allocation3 + $0xc0] sm:$0xff] %vm179_vm1, %v3391_v0  ;;  %206 = vst.msk [vmem:[#allocation3 + $0xc8] sm:$0xff] %vm179_vm1, %v3391_v0 }
  0x3d   :  { %208 = vst.msk [vmem:[#allocation3 + $0xd8] sm:$0xff] %vm179_vm1, %v3391_v0  ;;  %209 = vst.msk [vmem:[#allocation3 + $0xe0] sm:$0xff] %vm179_vm1, %v3391_v0 }
  0x3e   :  { %211 = vst.msk [vmem:[#allocation3 + $0xf0] sm:$0xff] %vm179_vm1, %v3391_v0  ;;  %212 = vst.msk [vmem:[#allocation3 + $0xf8] sm:$0xff] %vm179_vm1, %v3391_v0 }
  0x3f   :  { %214 = vst.msk [vmem:[#allocation3 + $0x108] sm:$0xff] %vm179_vm1, %v3391_v0  ;;  %215 = vst.msk [vmem:[#allocation3 + $0x110] sm:$0xff] %vm179_vm1, %v3391_v0 }
  0x40   :  { %217 = vst.msk [vmem:[#allocation3 + $0x120] sm:$0xff] %vm179_vm1, %v3391_v0  ;;  %218 = vst.msk [vmem:[#allocation3 + $0x128] sm:$0xff] %vm179_vm1, %v3391_v0 }
  0x41   :  { %220 = vst.msk [vmem:[#allocation3 + $0x138] sm:$0xff] %vm179_vm1, %v3391_v0  ;;  %221 = vst.msk [vmem:[#allocation3 + $0x140] sm:$0xff] %vm179_vm1, %v3391_v0 }
  0x42   :  { %223 = vst.msk [vmem:[#allocation3 + $0x150] sm:$0xff] %vm179_vm1, %v3391_v0  ;;  %224 = vst.msk [vmem:[#allocation3 + $0x158] sm:$0xff] %vm179_vm1, %v3391_v0 }
  0x43   :  { %226 = vst.msk [vmem:[#allocation3 + $0x168] sm:$0xff] %vm179_vm1, %v3391_v0  ;;  %227 = vst.msk [vmem:[#allocation3 + $0x170] sm:$0xff] %vm179_vm1, %v3391_v0 }
  0x44   :  { %229 = vst.msk [vmem:[#allocation3 + $0x180] sm:$0xff] %vm179_vm1, %v3391_v0  ;;  %230 = vst.msk [vmem:[#allocation3 + $0x188] sm:$0xff] %vm179_vm1, %v3391_v0 }
  0x45   :  { %232 = vst.msk [vmem:[#allocation3 + $0x198] sm:$0xff] %vm179_vm1, %v3391_v0  ;;  %233 = vst.msk [vmem:[#allocation3 + $0x1a0] sm:$0xff] %vm179_vm1, %v3391_v0 }
  0x46   :  { %235 = vst.msk [vmem:[#allocation3 + $0x1b0] sm:$0xff] %vm179_vm1, %v3391_v0  ;;  %236 = vst.msk [vmem:[#allocation3 + $0x1b8] sm:$0xff] %vm179_vm1, %v3391_v0 }
  0x47   :  { %238 = vst.msk [vmem:[#allocation3 + $0x1c8] sm:$0xff] %vm179_vm1, %v3391_v0  ;;  %239 = vst.msk [vmem:[#allocation3 + $0x1d0] sm:$0xff] %vm179_vm1, %v3391_v0 }
  0x48   :  { %515 = vst.msk [vmem:[#allocation2 + $0x48] sm:$0xff] %vm33_vm0, %v449_v25  ;;  %516 = vst.msk [vmem:[#allocation2 + $0x50] sm:$0xff] %vm33_vm0, %v450_v26  ;;  %v398_v25 = vadd.f32 %v3749_v6, %v327_v56  ;;  %v401_v26 = vadd.f32 %v3749_v6, %v330_v13  ;;  %v410_v56 = vadd.f32 %v3749_v6, %v339_v39  ;;  %v471_v13 = vmax.f32 %v407_v57, 0.0 }
  0x49   :  { %517 = vst.msk [vmem:[#allocation2 + $0x68] sm:$0xff] %vm33_vm0, %v451_v32  ;;  %518 = vst.msk [vmem:[#allocation2 + $0x70] sm:$0xff] %vm33_vm0, %v452_v33  ;;  %v399_v32 = vadd.f32 %v3749_v6, %v328_v20  ;;  %v400_v33 = vadd.f32 %v3749_v6, %v329_v21  ;;  %v418_v20 = vadd.f32 %v3749_v6, %v347_v62 }
  0x4a   :  { %513 = vst.msk [vmem:[#allocation2 + $0x28] sm:$0xff] %vm33_vm0, %v447_v41  ;;  %514 = vst.msk [vmem:[#allocation2 + $0x30] sm:$0xff] %vm33_vm0, %v448_v42  ;;  %v337_v41 = vmul.f32 %v3662_v3, %v266_v24  ;;  %v340_v42 = vmul.f32 %v3662_v3, %v269_v28  ;;  %v465_v47 = vmax.f32 %v401_v26, 0.0  ;;  %v277_v24 = vld [vmem:[%s5167_s0 + $0x120] sm:$0xff] }
  0x4b   :  { %519 = vst.msk [vmem:[#allocation2 + $0x88] sm:$0xff] %vm33_vm0, %v453_v45  ;;  %520 = vst.msk [vmem:[#allocation2 + $0x90] sm:$0xff] %vm33_vm0, %v454_v46  ;;  %v461_v45 = vmax.f32 %v397_v8, 0.0  ;;  %v462_v46 = vmax.f32 %v398_v25, 0.0  ;;  %v463_v2 = vmax.f32 %v399_v32, 0.0  ;;  %v464_v4 = vmax.f32 %v400_v33, 0.0 }
  0x4c   :  { %523 = vst.msk [vmem:[#allocation2 + $0xc8] sm:$0xff] %vm33_vm0, %v457_v60  ;;  %524 = vst.msk [vmem:[#allocation2 + $0xd0] sm:$0xff] %vm33_vm0, %v458_v61  ;;  %v408_v58 = vadd.f32 %v3749_v6, %v337_v41  ;;  %v411_v59 = vadd.f32 %v3749_v6, %v340_v42  ;;  %v412_v60 = vadd.f32 %v3749_v6, %v341_v43  ;;  %v482_v32 = vmax.f32 %v418_v20, 0.0 }
  0x4d   :  { %521 = vst.msk [vmem:[#allocation2 + $0xa8] sm:$0xff] %vm33_vm0, %v455_v5  ;;  %522 = vst.msk [vmem:[#allocation2 + $0xb0] sm:$0xff] %vm33_vm0, %v456_v7  ;;  %v346_v61 = vmul.f32 %v3662_v3, %v275_v44  ;;  %v467_v5 = vmax.f32 %v403_v34, 0.0  ;;  %v468_v7 = vmax.f32 %v404_v36, 0.0  ;;  %v479_v33 = vmax.f32 %v415_v22, 0.0  ;;  %v278_v44 = vld [vmem:[%s5167_s0 + $0x128] sm:$0xff] }
  0x4e   :  { %525 = vst.msk [vmem:[#allocation2 + $0xe8] sm:$0xff] %vm33_vm0, %v459_v11  ;;  %526 = vst.msk [vmem:[#allocation2 + $0xf0] sm:$0xff] %vm33_vm0, %v460_v12  ;;  %v473_v11 = vmax.f32 %v409_v55, 0.0  ;;  %v474_v12 = vmax.f32 %v410_v56, 0.0  ;;  %v472_v14 = vmax.f32 %v408_v58, 0.0  ;;  %v475_v15 = vmax.f32 %v411_v59, 0.0 }
  0x4f   :  { %v644_v18 = vld [vmem:[#allocation2 + $0x49] ss:$2 sm:$0xff]  ;;  %v612_v19 = vld [vmem:[#allocation2 + $0x48] ss:$2 sm:$0xff]  ;;  %527 = vst.msk [vmem:[#allocation2 + $0x108] sm:$0xff] %vm33_vm0, %v461_v45  ;;  %528 = vst.msk [vmem:[#allocation2 + $0x110] sm:$0xff] %vm33_vm0, %v462_v46  ;;  %v417_v17 = vadd.f32 %v3749_v6, %v346_v61 }
  0x50   :  { %948 = vrot.lane.b32.xlu1 %v644_v18, %s3393_s19  ;;  %884 = vrot.lane.b32.xlu0 %v612_v19, %s3392_s18  ;;  %v676_v30 = vld [vmem:[#allocation2 + $0x67] ss:$2 sm:$0xff]  ;;  %531 = vst.msk [vmem:[#allocation2 + $0x148] sm:$0xff] %vm33_vm0, %v465_v47  ;;  %532 = vst.msk [vmem:[#allocation2 + $0x150] sm:$0xff] %vm33_vm0, %v466_v48  ;;  %v708_v1 = vld [vmem:[#allocation2 + $0x68] ss:$2 sm:$0xff]  ;;  %v349_v48 = vmul.f32 %v3662_v3, %v278_v44 }
  0x51   :  { %v674_v31 = vld [vmem:[#allocation2 + $0x27] ss:$2 sm:$0xff]  ;;  %v706_v52 = vld [vmem:[#allocation2 + $0x28] ss:$2 sm:$0xff]  ;;  %529 = vst.msk [vmem:[#allocation2 + $0x128] sm:$0xff] %vm33_vm0, %v463_v2  ;;  %530 = vst.msk [vmem:[#allocation2 + $0x130] sm:$0xff] %vm33_vm0, %v464_v4 }
  0x52   :  { %v614_v51 = vld [vmem:[#allocation2 + $0x88] ss:$2 sm:$0xff]  ;;  %v738_v8 = vld [vmem:[#allocation2 + $0x29] ss:$2 sm:$0xff]  ;;  %533 = vst.msk [vmem:[#allocation2 + $0x168] sm:$0xff] %vm33_vm0, %v467_v5  ;;  %534 = vst.msk [vmem:[#allocation2 + $0x170] sm:$0xff] %vm33_vm0, %v468_v7 }
  0x53   :  { %v476_v16 = vmax.f32 %v412_v60, 0.0  ;;  %535 = vst.msk [vmem:[#allocation2 + $0x188] sm:$0xff] %vm33_vm0, %v469_v9  ;;  %536 = vst.msk [vmem:[#allocation2 + $0x190] sm:$0xff] %vm33_vm0, %v470_v10  ;;  %v274_v18 = vld [vmem:[%s5167_s0 + $0x108] sm:$0xff]  ;;  %v271_v19 = vld [vmem:[%s5167_s0 + $0xf0] sm:$0xff]  ;;  %v478_v43 = vmax.f32 %v414_v38, 0.0 }
  0x54   :  { %1012 = vrot.lane.b32.xlu1 %v676_v30, %s3394_s28  ;;  %1010 = vrot.lane.b32.xlu0 %v674_v31, %s3394_s28  ;;  %539 = vst.msk [vmem:[#allocation2 + $0x1c8] sm:$0xff] %vm33_vm0, %v473_v11  ;;  %540 = vst.msk [vmem:[#allocation2 + $0x1d0] sm:$0xff] %vm33_vm0, %v474_v12  ;;  %v345_v21 = vmul.f32 %v3662_v3, %v274_v18  ;;  %v646_v25 = vld [vmem:[#allocation2 + $0x89] ss:$2 sm:$0xff]  ;;  %v616_v26 = vld [vmem:[#allocation2 + $0xc8] ss:$2 sm:$0xff]  ;;  %v342_v28 = vmul.f32 %v3662_v3, %v271_v19 }
  0x55   :  { %537 = vst.msk [vmem:[#allocation2 + $0x1a8] sm:$0xff] %vm33_vm0, %v471_v13  ;;  %538 = vst.msk [vmem:[#allocation2 + $0x1b0] sm:$0xff] %vm33_vm0, %v472_v14  ;;  %v348_v30 = vmul.f32 %v3662_v3, %v277_v24  ;;  %v481_v31 = vmax.f32 %v417_v17, 0.0  ;;  %v771_v35 = vld [vmem:[#allocation2 + $0x47] ss:$2 sm:$0xff]  ;;  %v284_v56 = vld [vmem:[%s5167_s0 + $0x158] sm:$0xff] }
  0x56   :  { %541 = vst.msk [vmem:[#allocation2 + $0x1e8] sm:$0xff] %vm33_vm0, %v475_v15  ;;  %542 = vst.msk [vmem:[#allocation2 + $0x1f0] sm:$0xff] %vm33_vm0, %v476_v16  ;;  %v416_v27 = vadd.f32 %v3749_v6, %v345_v21  ;;  %v740_v36 = vld [vmem:[#allocation2 + $0x69] ss:$2 sm:$0xff]  ;;  %v413_v37 = vadd.f32 %v3749_v6, %v342_v28  ;;  %v803_v46 = vld [vmem:[#allocation2 + $0x48] ss:$2 sm:$0xff]  ;;  %v355_v59 = vmul.f32 %v3662_v3, %v284_v56 }
  0x57   :  { %547 = vst.msk [vmem:[#allocation2 + $0x288] sm:$0xff] %vm33_vm0, %v481_v31  ;;  %548 = vst.msk [vmem:[#allocation2 + $0x290] sm:$0xff] %vm33_vm0, %v482_v32  ;;  %v419_v39 = vadd.f32 %v3749_v6, %v348_v30  ;;  %v678_v40 = vld [vmem:[#allocation2 + $0xa7] ss:$2 sm:$0xff]  ;;  %v1516_v12 = vld [vmem:[%s5170_s3 + $0x18] sm:$0xff]  ;;  %v485_v13 = vmax.f32 %v421_v63, 0.0 }
  0x58   :  { %886 = vrot.lane.b32.xlu1 %v614_v51, %s3392_s18  ;;  %1074 = vrot.lane.b32.xlu0 %v706_v52, %s3395_s11  ;;  %v480_v34 = vmax.f32 %v416_v27, 0.0  ;;  %545 = vst.msk [vmem:[#allocation2 + $0x268] sm:$0xff] %vm33_vm0, %v479_v33  ;;  %v648_v41 = vld [vmem:[#allocation2 + $0xc9] ss:$2 sm:$0xff]  ;;  %v477_v42 = vmax.f32 %v413_v37, 0.0  ;;  %544 = vst.msk [vmem:[#allocation2 + $0x210] sm:$0xff] %vm33_vm0, %v478_v43  ;;  %v420_v52 = vadd.f32 %v3749_v6, %v349_v48 }
  0x59   :  { %v483_v45 = vmax.f32 %v419_v39, 0.0  ;;  %v773_v47 = vld [vmem:[#allocation2 + $0x87] ss:$2 sm:$0xff]  ;;  %v710_v51 = vld [vmem:[#allocation2 + $0xa8] ss:$2 sm:$0xff]  ;;  %v426_v9 = vadd.f32 %v3749_v6, %v355_v59  ;;  %551 = vst.msk [vmem:[#allocation2 + $0x2c8] sm:$0xff] %vm33_vm0, %v485_v13 }
  0x5a   :  { %546 = vst.msk [vmem:[#allocation2 + $0x270] sm:$0xff] %vm33_vm0, %v480_v34  ;;  %543 = vst.msk [vmem:[#allocation2 + $0x208] sm:$0xff] %vm33_vm0, %v477_v42  ;;  %v283_v55 = vld [vmem:[%s5167_s0 + $0x150] sm:$0xff]  ;;  %v1513_v60 = vld [vmem:[%s5170_s3] sm:$0xff]  ;;  %v484_v62 = vmax.f32 %v420_v52, 0.0 }
  0x5b   :  { %549 = vst.msk [vmem:[#allocation2 + $0x2a8] sm:$0xff] %vm33_vm0, %v483_v45  ;;  %v680_v57 = vld [vmem:[#allocation2 + $0xe7] ss:$2 sm:$0xff]  ;;  %v354_v58 = vmul.f32 %v3662_v3, %v283_v55  ;;  %v490_v18 = vmax.f32 %v426_v9, 0.0  ;;  %v805_v24 = vld [vmem:[#allocation2 + $0x88] ss:$2 sm:$0xff]  ;;  %v360_v55 = vmul.f32 %v3662_v3, %v289_v53 }
  0x5c   :  { %1138 = vrot.lane.b32.xlu1 %v738_v8, %s3396_s16  ;;  %1076 = vrot.lane.b32.xlu0 %v708_v1, %s3395_s11  ;;  %v1514_v61 = vld [vmem:[%s5170_s3 + $0x8] sm:$0xff]  ;;  %v422_v1 = vadd.f32 %v3749_v6, %v351_v54  ;;  %v281_v4 = vld [vmem:[%s5167_s0 + $0x140] sm:$0xff]  ;;  %550 = vst.msk [vmem:[#allocation2 + $0x2b0] sm:$0xff] %vm33_vm0, %v484_v62 }
  0x5d   :  { %v3335_v2 = vpack.c.bf16 %v1514_v61, %v1513_v60  ;;  %v282_v5 = vld [vmem:[%s5167_s0 + $0x148] sm:$0xff]  ;;  %v1515_v7 = vld [vmem:[%s5170_s3 + $0x10] sm:$0xff]  ;;  %v425_v8 = vadd.f32 %v3749_v6, %v354_v58  ;;  %v352_v10 = vmul.f32 %v3662_v3, %v281_v4  ;;  %v285_v16 = vld [vmem:[%s5167_s0 + $0x160] sm:$0xff]  ;;  %556 = vst.msk [vmem:[#allocation2 + $0x310] sm:$0xff] %vm33_vm0, %v490_v18  ;;  %v431_v59 = vadd.f32 %v3749_v6, %v360_v55 }
  0x5e   :  { %v353_v11 = vmul.f32 %v3662_v3, %v282_v5  ;;  %v486_v14 = vmax.f32 %v422_v1, 0.0  ;;  %v3339_v15 = vpack.c.bf16 %v1516_v12, %v1515_v7  ;;  %v286_v21 = vld [vmem:[%s5167_s0 + $0x168] sm:$0xff]  ;;  %v287_v22 = vld [vmem:[%s5167_s0 + $0x170] sm:$0xff]  ;;  %v288_v30 = vld [vmem:[%s5167_s0 + $0x178] sm:$0xff]  ;;  %183 = vst.msk [vmem:[#allocation3 + $0x10] sm:$0x1] %vm182_vm10, %v3391_v0 }
  0x5f   :  { %3336 = vmatprep.subr.bf16.mxu0 %v3335_v2  ;;  %v489_v17 = vmax.f32 %v425_v8, 0.0  ;;  %v423_v19 = vadd.f32 %v3749_v6, %v352_v10  ;;  %v835_v23 = vld [vmem:[#allocation2 + $0x49] ss:$2 sm:$0xff]  ;;  %v358_v27 = vmul.f32 %v3662_v3, %v287_v22  ;;  %v292_v32 = vld [vmem:[%s5167_s0 + $0x198] sm:$0xff]  ;;  %v1517_v33 = vld [vmem:[%s5170_s3 + $0x20] sm:$0xf] }
  0x60   :  { %950 = vrot.lane.b32.xlu1 %v646_v25, %s3393_s19  ;;  %888 = vrot.lane.b32.xlu0 %v616_v26, %s3392_s18  ;;  %v424_v20 = vadd.f32 %v3749_v6, %v353_v11  ;;  %552 = vst.msk [vmem:[#allocation2 + $0x2d0] sm:$0xff] %vm33_vm0, %v486_v14  ;;  %v356_v25 = vmul.f32 %v3662_v3, %v285_v16  ;;  %v291_v31 = vld [vmem:[%s5167_s0 + $0x190] sm:$0xff]  ;;  %v290_v54 = vld [vmem:[%s5167_s0 + $0x188] sm:$0xff]  ;;  %v495_v61 = vmax.f32 %v431_v59, 0.0 }
  0x61   :  { %3338 = vmatpush3.bf16.msra.mxu0 %v3335_v2  ;;  %v357_v26 = vmul.f32 %v3662_v3, %v286_v21  ;;  %555 = vst.msk [vmem:[#allocation2 + $0x308] sm:$0xff] %vm33_vm0, %v489_v17  ;;  %v487_v28 = vmax.f32 %v423_v19, 0.0  ;;  %v429_v37 = vadd.f32 %v3749_v6, %v358_v27  ;;  %v712_v38 = vld [vmem:[#allocation2 + $0xe8] ss:$2 sm:$0xff]  ;;  %v362_v39 = vmul.f32 %v3662_v3, %v291_v31  ;;  %v837_v49 = vld [vmem:[#allocation2 + $0x89] ss:$2 sm:$0xff] }
  0x62   :  { %v488_v29 = vmax.f32 %v424_v20, 0.0  ;;  %3340 = vmatprep.subr.bf16.mxu0 %v3339_v15  ;;  %v427_v34 = vadd.f32 %v3749_v6, %v356_v25  ;;  %v742_v50 = vld [vmem:[#allocation2 + $0xa9] ss:$2 sm:$0xff]  ;;  %v361_v56 = vmul.f32 %v3662_v3, %v290_v54  ;;  %v620_v58 = vld [vmem:[#allocation2 + $0x148] ss:$2 sm:$0xff]  ;;  %561 = vst.msk [vmem:[#allocation2 + $0x368] sm:$0xff] %vm33_vm0, %v495_v61 }
  0x63   :  { %553 = vst.msk [vmem:[#allocation2 + $0x2e8] sm:$0xff] %vm33_vm0, %v487_v28  ;;  %v493_v45 = vmax.f32 %v429_v37, 0.0  ;;  %v775_v63 = vld [vmem:[#allocation2 + $0xc7] ss:$2 sm:$0xff]  ;;  %v807_v14 = vld [vmem:[#allocation2 + $0xc8] ss:$2 sm:$0xff] }
  0x64   :  { %1202 = vrot.lane.b32.xlu1 %v771_v35, %s3397_s22  ;;  %1140 = vrot.lane.b32.xlu0 %v740_v36, %s3396_s16  ;;  %v428_v35 = vadd.f32 %v3749_v6, %v357_v26  ;;  %v359_v36 = vmul.f32 %v3662_v3, %v288_v30  ;;  %554 = vst.msk [vmem:[#allocation2 + $0x2f0] sm:$0xff] %vm33_vm0, %v488_v29  ;;  %v491_v42 = vmax.f32 %v427_v34, 0.0  ;;  %v744_v1 = vld [vmem:[#allocation2 + $0xe9] ss:$2 sm:$0xff]  ;;  %v293_v2 = vld [vmem:[%s5167_s0 + $0x1a0] sm:$0xff]  ;;  %v296_v17 = vld [vmem:[%s5167_s0 + $0x1b8] sm:$0xff] }
  0x65   :  { %3342 = vmatpush3.bf16.msra.mxu0 %v3339_v15  ;;  %559 = vst.msk [vmem:[#allocation2 + $0x348] sm:$0xff] %vm33_vm0, %v493_v45  ;;  %v432_v60 = vadd.f32 %v3749_v6, %v361_v56  ;;  %v294_v4 = vld [vmem:[%s5167_s0 + $0x1a8] sm:$0xff]  ;;  %v364_v5 = vmul.f32 %v3662_v3, %v293_v2  ;;  %v295_v16 = vld [vmem:[%s5167_s0 + $0x1b0] sm:$0xff]  ;;  %v367_v19 = vmul.f32 %v3662_v3, %v296_v17  ;;  %v300_v29 = vld [vmem:[%s5167_s0 + $0x1d8] sm:$0xff] }
  0x66   :  { %v492_v43 = vmax.f32 %v428_v35, 0.0  ;;  %v430_v44 = vadd.f32 %v3749_v6, %v359_v36  ;;  %3241 = vmatprep.subr.msk.mxu0 %vm1567_vm2, %v1517_v33  ;;  %557 = vst.msk [vmem:[#allocation2 + $0x328] sm:$0xff] %vm33_vm0, %v491_v42  ;;  %v365_v7 = vmul.f32 %v3662_v3, %v294_v4  ;;  %v682_v8 = vld [vmem:[#allocation2 + $0x127] ss:$2 sm:$0xff]  ;;  %v366_v18 = vmul.f32 %v3662_v3, %v295_v16  ;;  %v714_v20 = vld [vmem:[#allocation2 + $0x128] ss:$2 sm:$0xff] }
  0x67   :  { %v496_v62 = vmax.f32 %v432_v60, 0.0  ;;  %v652_v9 = vld [vmem:[#allocation2 + $0x149] ss:$2 sm:$0xff]  ;;  %v435_v10 = vadd.f32 %v3749_v6, %v364_v5  ;;  %v809_v27 = vld [vmem:[#allocation2 + $0x108] ss:$2 sm:$0xff]  ;;  %v371_v31 = vmul.f32 %v3662_v3, %v300_v29 }
  0x68   :  { %1014 = vrot.lane.b32.xlu1 %v678_v40, %s3394_s28  ;;  %952 = vrot.lane.b32.xlu0 %v648_v41, %s3393_s19  ;;  %v363_v40 = vmul.f32 %v3662_v3, %v292_v32  ;;  %v618_v41 = vld [vmem:[#allocation2 + $0x108] ss:$2 sm:$0xff]  ;;  %558 = vst.msk [vmem:[#allocation2 + $0x330] sm:$0xff] %vm33_vm0, %v492_v43  ;;  %v494_v48 = vmax.f32 %v430_v44, 0.0  ;;  %v436_v11 = vadd.f32 %v3749_v6, %v365_v7  ;;  %v777_v15 = vld [vmem:[#allocation2 + $0x107] ss:$2 sm:$0xff] }
  0x69   :  { %3242 = vmatpush3.msk.msra.mxu0 %vm1567_vm2, %v1517_v33  ;;  %562 = vst.msk [vmem:[#allocation2 + $0x370] sm:$0xff] %vm33_vm0, %v496_v62  ;;  %v499_v12 = vmax.f32 %v435_v10, 0.0  ;;  %v684_v21 = vld [vmem:[#allocation2 + $0x167] ss:$2 sm:$0xff]  ;;  %v437_v22 = vadd.f32 %v3749_v6, %v366_v18  ;;  %v716_v32 = vld [vmem:[#allocation2 + $0x168] ss:$2 sm:$0xff]  ;;  %v442_v35 = vadd.f32 %v3749_v6, %v371_v31 }
  0x6a   :  { %560 = vst.msk [vmem:[#allocation2 + $0x350] sm:$0xff] %vm33_vm0, %v494_v48  ;;  %v500_v13 = vmax.f32 %v436_v11, 0.0  ;;  %v839_v26 = vld [vmem:[#allocation2 + $0xc9] ss:$2 sm:$0xff]  ;;  %v622_v33 = vld [vmem:[#allocation2 + $0x188] ss:$2 sm:$0xff] }
  0x6b   :  { %565 = vst.msk [vmem:[#allocation2 + $0x3a8] sm:$0xff] %vm33_vm0, %v499_v12  ;;  %v299_v28 = vld [vmem:[%s5167_s0 + $0x1d0] sm:$0xff]  ;;  %v506_v37 = vmax.f32 %v442_v35, 0.0  ;;  %v302_v53 = vld [vmem:[%s5167_s0 + $0x1e8] sm:$0xff]  ;;  %v304_v7 = vld [vmem:[%s5167_s0 + $0x1f8] sm:$0xff] }
  0x6c   :  { %1266 = vrot.lane.b32.xlu1 %v803_v46, %s3398_s13  ;;  %1204 = vrot.lane.b32.xlu0 %v773_v47, %s3397_s22  ;;  %v433_v46 = vadd.f32 %v3749_v6, %v362_v39  ;;  %v434_v47 = vadd.f32 %v3749_v6, %v363_v40  ;;  %566 = vst.msk [vmem:[#allocation2 + $0x3b0] sm:$0xff] %vm33_vm0, %v500_v13  ;;  %v746_v39 = vld [vmem:[#allocation2 + $0x129] ss:$2 sm:$0xff]  ;;  %v297_v40 = vld [vmem:[%s5167_s0 + $0x1c0] sm:$0xff]  ;;  %v624_v45 = vld [vmem:[#allocation2 + $0x1c8] ss:$2 sm:$0xff] }
  0x6d   :  { %v370_v30 = vmul.f32 %v3662_v3, %v299_v28  ;;  %572 = vst.msk [vmem:[#allocation2 + $0x410] sm:$0xff] %vm33_vm0, %v506_v37  ;;  %v368_v42 = vmul.f32 %v3662_v3, %v297_v40  ;;  %v654_v44 = vld [vmem:[#allocation2 + $0x189] ss:$2 sm:$0xff]  ;;  %v373_v55 = vmul.f32 %v3662_v3, %v302_v53  ;;  %v811_v62 = vld [vmem:[#allocation2 + $0x148] ss:$2 sm:$0xff] }
  0x6e   :  { %v498_v52 = vmax.f32 %v434_v47, 0.0  ;;  %v686_v56 = vld [vmem:[#allocation2 + $0x1a7] ss:$2 sm:$0xff]  ;;  %v813_v4 = vld [vmem:[#allocation2 + $0x188] ss:$2 sm:$0xff] }
  0x6f   :  { %v441_v34 = vadd.f32 %v3749_v6, %v370_v30  ;;  %v444_v59 = vadd.f32 %v3749_v6, %v373_v55  ;;  %v843_v2 = vld [vmem:[#allocation2 + $0x149] ss:$2 sm:$0xff]  ;;  %v720_v11 = vld [vmem:[#allocation2 + $0x1e8] ss:$2 sm:$0xff]  ;;  %186 = vst.msk [vmem:[#allocation3 + $0x28] sm:$0x1] %vm182_vm10, %v3391_v0 }
  0x70   :  { %1078 = vrot.lane.b32.xlu1 %v710_v51, %s3395_s11  ;;  %1016 = vrot.lane.b32.xlu0 %v680_v57, %s3394_s28  ;;  %v497_v51 = vmax.f32 %v433_v46, 0.0  ;;  %564 = vst.msk [vmem:[#allocation2 + $0x390] sm:$0xff] %vm33_vm0, %v498_v52  ;;  %v650_v57 = vld [vmem:[#allocation2 + $0x109] ss:$2 sm:$0xff]  ;;  %v439_v46 = vadd.f32 %v3749_v6, %v368_v42  ;;  %v301_v52 = vld [vmem:[%s5167_s0 + $0x1e0] sm:$0xff] }
  0x71   :  { %v505_v36 = vmax.f32 %v441_v34, 0.0  ;;  %v372_v54 = vmul.f32 %v3662_v3, %v301_v52  ;;  %v508_v61 = vmax.f32 %v444_v59, 0.0  ;;  %v303_v5 = vld [vmem:[%s5167_s0 + $0x1f0] sm:$0xff]  ;;  %189 = vst.msk [vmem:[#allocation3 + $0x40] sm:$0x1] %vm182_vm10, %v3391_v0 }
  0x72   :  { %563 = vst.msk [vmem:[#allocation2 + $0x388] sm:$0xff] %vm33_vm0, %v497_v51  ;;  %v503_v48 = vmax.f32 %v439_v46, 0.0  ;;  %v748_v51 = vld [vmem:[#allocation2 + $0x169] ss:$2 sm:$0xff]  ;;  %v626_v12 = vld [vmem:[#allocation2 + $0x248] ss:$2 sm:$0xff] }
  0x73   :  { %571 = vst.msk [vmem:[#allocation2 + $0x408] sm:$0xff] %vm33_vm0, %v505_v36  ;;  %574 = vst.msk [vmem:[#allocation2 + $0x430] sm:$0xff] %vm33_vm0, %v508_v61  ;;  %v845_v17 = vld [vmem:[#allocation2 + $0x189] ss:$2 sm:$0xff]  ;;  %v815_v30 = vld [vmem:[#allocation2 + $0x1c8] ss:$2 sm:$0xff] }
  0x74   :  { %1330 = vrot.lane.b32.xlu1 %v835_v23, %s3399_s27  ;;  %1268 = vrot.lane.b32.xlu0 %v805_v24, %s3398_s13  ;;  %v438_v23 = vadd.f32 %v3749_v6, %v367_v19  ;;  %v501_v24 = vmax.f32 %v437_v22, 0.0  ;;  %569 = vst.msk [vmem:[#allocation2 + $0x3e8] sm:$0xff] %vm33_vm0, %v503_v48  ;;  %v750_v18 = vld [vmem:[#allocation2 + $0x1a9] ss:$2 sm:$0xff]  ;;  %v722_v34 = vld [vmem:[#allocation2 + $0x268] ss:$2 sm:$0xff] }
  0x75   :  { %v783_v22 = vld [vmem:[#allocation2 + $0x1c7] ss:$2 sm:$0xff]  ;;  %v724_v42 = vld [vmem:[#allocation2 + $0x2a8] ss:$2 sm:$0xff]  ;;  %192 = vst.msk [vmem:[#allocation3 + $0x58] sm:$0x1] %vm182_vm10, %v3391_v0 }
  0x76   :  { %v502_v25 = vmax.f32 %v438_v23, 0.0  ;;  %567 = vst.msk [vmem:[#allocation2 + $0x3c8] sm:$0xff] %vm33_vm0, %v501_v24  ;;  %v752_v23 = vld [vmem:[#allocation2 + $0x1e9] ss:$2 sm:$0xff]  ;;  %v632_v52 = vld [vmem:[#allocation2 + $0x308] ss:$2 sm:$0xff] }
  0x77   :  { %v785_v31 = vld [vmem:[#allocation2 + $0x207] ss:$2 sm:$0xff]  ;;  %195 = vst.msk [vmem:[#allocation3 + $0x70] sm:$0x1] %vm182_vm10, %v3391_v0  ;;  %198 = vst.msk [vmem:[#allocation3 + $0x88] sm:$0x1] %vm182_vm10, %v3391_v0 }
  0x78   :  { %1080 = vrot.lane.b32.xlu1 %v712_v38, %s3395_s11  ;;  %890 = vrot.lane.b32.xlu0 %v618_v41, %s3392_s18  ;;  %568 = vst.msk [vmem:[#allocation2 + $0x3d0] sm:$0xff] %vm33_vm0, %v502_v25  ;;  %v841_v38 = vld [vmem:[#allocation2 + $0x109] ss:$2 sm:$0xff] }
  0x79   :  { %v298_v41 = vld [vmem:[%s5167_s0 + $0x1c8] sm:$0xff]  ;;  %201 = vst.msk [vmem:[#allocation3 + $0xa0] sm:$0x1] %vm182_vm10, %v3391_v0  ;;  %204 = vst.msk [vmem:[#allocation3 + $0xb8] sm:$0x1] %vm182_vm10, %v3391_v0 }
  0x7a   :  { %v369_v43 = vmul.f32 %v3662_v3, %v298_v41  ;;  %v718_v3 = vld [vmem:[#allocation2 + $0x1a8] ss:$2 sm:$0xff]  ;;  %v692_v35 = vld [vmem:[#allocation2 + $0x2a7] ss:$2 sm:$0xff]  ;;  %207 = vst.msk [vmem:[#allocation3 + $0xd0] sm:$0x1] %vm182_vm10, %v3391_v0 }
  0x7b   :  { %v849_v46 = vld [vmem:[#allocation2 + $0x209] ss:$2 sm:$0xff]  ;;  %210 = vst.msk [vmem:[#allocation3 + $0xe8] sm:$0x1] %vm182_vm10, %v3391_v0  ;;  %213 = vst.msk [vmem:[#allocation3 + $0x100] sm:$0x1] %vm182_vm10, %v3391_v0 }
  0x7c   :  { %1332 = vrot.lane.b32.xlu1 %v837_v49, %s3399_s27  ;;  %1142 = vrot.lane.b32.xlu0 %v742_v50, %s3396_s16  ;;  %v440_v47 = vadd.f32 %v3749_v6, %v369_v43  ;;  %v779_v50 = vld [vmem:[#allocation2 + $0x147] ss:$2 sm:$0xff]  ;;  %v630_v43 = vld [vmem:[#allocation2 + $0x2c8] ss:$2 sm:$0xff]  ;;  %216 = vst.msk [vmem:[#allocation3 + $0x118] sm:$0x1] %vm182_vm10, %v3391_v0 }
  0x7d   :  { %v883_v19 = vpop.permute.xlu0 %882  ;;  %219 = vst.msk [vmem:[#allocation3 + $0x130] sm:$0x1] %vm182_vm10, %v3391_v0  ;;  %222 = vst.msk [vmem:[#allocation3 + $0x148] sm:$0x1] %vm182_vm10, %v3391_v0 }
  0x7e   :  { %v504_v49 = vmax.f32 %v440_v47, 0.0  ;;  %v754_v47 = vld [vmem:[#allocation2 + $0x269] ss:$2 sm:$0xff]  ;;  %225 = vst.msk [vmem:[#allocation3 + $0x160] sm:$0x1] %vm182_vm10, %v3391_v0 }
  0x7f   :  { %228 = vst.msk [vmem:[#allocation3 + $0x178] sm:$0x1] %vm182_vm10, %v3391_v0  ;;  %231 = vst.msk [vmem:[#allocation3 + $0x190] sm:$0x1] %vm182_vm10, %v3391_v0 }
  0x80   :  { %954 = vrot.lane.b32.xlu1 %v650_v57, %s3393_s19  ;;  %892 = vrot.lane.b32.xlu0 %v620_v58, %s3392_s18  ;;  %570 = vst.msk [vmem:[#allocation2 + $0x3f0] sm:$0xff] %vm33_vm0, %v504_v49  ;;  %v656_v57 = vld [vmem:[#allocation2 + $0x1c9] ss:$2 sm:$0xff]  ;;  %v443_v58 = vadd.f32 %v3749_v6, %v372_v54 }
  0x81   :  { %234 = vst.msk [vmem:[#allocation3 + $0x1a8] sm:$0x1] %vm182_vm10, %v3391_v0  ;;  %237 = vst.msk [vmem:[#allocation3 + $0x1c0] sm:$0x1] %vm182_vm10, %v3391_v0 }
  0x82   :  { %v507_v60 = vmax.f32 %v443_v58, 0.0  ;;  %v756_v58 = vld [vmem:[#allocation2 + $0x2a9] ss:$2 sm:$0xff]  ;;  %240 = vst.msk [vmem:[#allocation3 + $0x1d8] sm:$0x1] %vm182_vm10, %v3391_v0 }
  0x84   :  { %1206 = vrot.lane.b32.xlu1 %v775_v63, %s3397_s22  ;;  %1144 = vrot.lane.b32.xlu0 %v744_v1, %s3396_s16  ;;  %v781_v63 = vld [vmem:[#allocation2 + $0x187] ss:$2 sm:$0xff]  ;;  %573 = vst.msk [vmem:[#allocation2 + $0x428] sm:$0xff] %vm33_vm0, %v507_v60 }
  0x85   :  { %v688_v1 = vld [vmem:[#allocation2 + $0x1e7] ss:$2 sm:$0xff] }
  0x88   :  { %1018 = vrot.lane.b32.xlu1 %v682_v8, %s3394_s28  ;;  %956 = vrot.lane.b32.xlu0 %v652_v9, %s3393_s19  ;;  %v3390_v8 = vld [vmem:[%s5168_s1] ss:$0 sm:$0xff] }
  0x89   :  { %v374_v9 = vmul.f32 %v3390_v8, %v303_v5  ;;  %v375_v10 = vmul.f32 %v3390_v8, %v304_v7 }
  0x8b   :  { %v445_v13 = vadd.f32 %v3749_v6, %v374_v9 }
  0x8c   :  { %1270 = vrot.lane.b32.xlu1 %v807_v14, %s3398_s13  ;;  %1208 = vrot.lane.b32.xlu0 %v777_v15, %s3397_s22  ;;  %v446_v14 = vadd.f32 %v3749_v6, %v375_v10  ;;  %v628_v6 = vld [vmem:[#allocation2 + $0x288] ss:$2 sm:$0xff] }
  0x8d   :  { %v509_v15 = vmax.f32 %v445_v13, 0.0  ;;  %v789_v13 = vld [vmem:[#allocation2 + $0x2c7] ss:$2 sm:$0xff] }
  0x8e   :  { %v510_v16 = vmax.f32 %v446_v14, 0.0 }
  0x8f   :  { %575 = vst.msk [vmem:[#allocation2 + $0x448] sm:$0xff] %vm33_vm0, %v509_v15 }
  0x90   :  { %1082 = vrot.lane.b32.xlu1 %v714_v20, %s3395_s11  ;;  %1020 = vrot.lane.b32.xlu0 %v684_v21, %s3394_s28  ;;  %576 = vst.msk [vmem:[#allocation2 + $0x450] sm:$0xff] %vm33_vm0, %v510_v16  ;;  %v947_v20 = vpop.permute.xlu1 %946  ;;  %v658_v21 = vld [vmem:[#allocation2 + $0x249] ss:$2 sm:$0xff] }
  0x94   :  { %1334 = vrot.lane.b32.xlu1 %v839_v26, %s3399_s27  ;;  %1272 = vrot.lane.b32.xlu0 %v809_v27, %s3398_s13  ;;  %v690_v26 = vld [vmem:[#allocation2 + $0x267] ss:$2 sm:$0xff] }
  0x95   :  { %v660_v27 = vld [vmem:[#allocation2 + $0x289] ss:$2 sm:$0xff] }
  0x98   :  { %1084 = vrot.lane.b32.xlu1 %v716_v32, %s3395_s11  ;;  %894 = vrot.lane.b32.xlu0 %v622_v33, %s3392_s18 }
  0x9c   :  { %1336 = vrot.lane.b32.xlu1 %v841_v38, %s3399_s27  ;;  %1146 = vrot.lane.b32.xlu0 %v746_v39, %s3396_s16  ;;  %v847_v38 = vld [vmem:[#allocation2 + $0x1c9] ss:$2 sm:$0xff]  ;;  %v817_v39 = vld [vmem:[#allocation2 + $0x208] ss:$2 sm:$0xff] }
  0xa0   :  { %958 = vrot.lane.b32.xlu1 %v654_v44, %s3393_s19  ;;  %896 = vrot.lane.b32.xlu0 %v624_v45, %s3392_s18 }
  0xa4   :  { %1210 = vrot.lane.b32.xlu1 %v779_v50, %s3397_s22  ;;  %1148 = vrot.lane.b32.xlu0 %v748_v51, %s3396_s16  ;;  %v578_v50 = vld [vmem:[#allocation2 + $0x7] ss:$2 sm:$0xff] }
  0xa5   :  { %v662_v51 = vld [vmem:[#allocation2 + $0x2c9] ss:$2 sm:$0xff]  ;;  %v1378_v53 = vsel %vm33_vm0, %v578_v50, %v883_v19 }
  0xa6   :  { %v760_v50 = vld [vmem:[#allocation2 + $0x329] ss:$2 sm:$0xff] }
  0xa8   :  { %1022 = vrot.lane.b32.xlu1 %v686_v56, %s3394_s28  ;;  %960 = vrot.lane.b32.xlu0 %v656_v57, %s3393_s19  ;;  %v1395_v56 = vsel %vm179_vm1, %v1378_v53, %v947_v20  ;;  %v787_v57 = vld [vmem:[#allocation2 + $0x287] ss:$2 sm:$0xff]  ;;  %v726_v20 = vld [vmem:[#allocation2 + $0x2e8] ss:$2 sm:$0xff] }
  0xac   :  { %1274 = vrot.lane.b32.xlu1 %v811_v62, %s3398_s13  ;;  %1212 = vrot.lane.b32.xlu0 %v781_v63, %s3397_s22  ;;  %v580_v62 = vld [vmem:[#allocation2 + $0x47] ss:$2 sm:$0xff] }
  0xb0   :  { %1086 = vrot.lane.b32.xlu1 %v718_v3, %s3395_s11  ;;  %1024 = vrot.lane.b32.xlu0 %v688_v1, %s3394_s28 }
  0xb4   :  { %1338 = vrot.lane.b32.xlu1 %v843_v2, %s3399_s27  ;;  %1276 = vrot.lane.b32.xlu0 %v813_v4, %s3398_s13  ;;  %v694_v2 = vld [vmem:[#allocation2 + $0x2e7] ss:$2 sm:$0xff] }
  0xb5   :  { %v664_v4 = vld [vmem:[#allocation2 + $0x309] ss:$2 sm:$0xff] }
  0xb8   :  { %1088 = vrot.lane.b32.xlu1 %v720_v11, %s3395_s11  ;;  %898 = vrot.lane.b32.xlu0 %v626_v12, %s3392_s18  ;;  %v819_v12 = vld [vmem:[#allocation2 + $0x288] ss:$2 sm:$0xff] }
  0xbc   :  { %1340 = vrot.lane.b32.xlu1 %v845_v17, %s3399_s27  ;;  %1150 = vrot.lane.b32.xlu0 %v750_v18, %s3396_s16 }
  0xc0   :  { %962 = vrot.lane.b32.xlu1 %v658_v21, %s3393_s19  ;;  %900 = vrot.lane.b32.xlu0 %v628_v6, %s3392_s18  ;;  %v696_v21 = vld [vmem:[#allocation2 + $0x327] ss:$2 sm:$0xff] }
  0xc2   :  { %v4205_v24 = vpop.permute.xlu1 %948  ;;  %v4207_v25 = vpop.permute.xlu0 %884 }
  0xc3   :  { %v1379_v5 = vsel %vm33_vm0, %v580_v62, %v4207_v25  ;;  %v851_v25 = vld [vmem:[#allocation2 + $0x289] ss:$2 sm:$0xff] }
  0xc4   :  { %1214 = vrot.lane.b32.xlu1 %v783_v22, %s3397_s22  ;;  %1152 = vrot.lane.b32.xlu0 %v752_v23, %s3396_s16  ;;  %v1396_v11 = vsel %vm179_vm1, %v1379_v5, %v4205_v24 }
  0xc6   :  { %v4211_v28 = vpop.permute.xlu1 %1012  ;;  %v1011_v29 = vpop.permute.xlu0 %1010 }
  0xc7   :  { %v1412_v59 = vsel %vm1411_vm3, %v1395_v56, %v1011_v29  ;;  %v1413_v14 = vsel %vm1411_vm3, %v1396_v11, %v4211_v28  ;;  %v728_v29 = vld [vmem:[#allocation2 + $0x328] ss:$2 sm:$0xff]  ;;  %v698_v56 = vld [vmem:[#allocation2 + $0x367] ss:$2 sm:$0xff] }
  0xc8   :  { %1026 = vrot.lane.b32.xlu1 %v690_v26, %s3394_s28  ;;  %964 = vrot.lane.b32.xlu0 %v660_v27, %s3393_s19  ;;  %v821_v26 = vld [vmem:[#allocation2 + $0x2c8] ss:$2 sm:$0xff] }
  0xca   :  { %v4215_v32 = vpop.permute.xlu1 %886  ;;  %v1075_v33 = vpop.permute.xlu0 %1074 }
  0xcb   :  { %v1429_v63 = vsel %vm1428_vm4, %v1412_v59, %v1075_v33 }
  0xcc   :  { %1278 = vrot.lane.b32.xlu1 %v815_v30, %s3398_s13  ;;  %1216 = vrot.lane.b32.xlu0 %v785_v31, %s3397_s22  ;;  %v634_v30 = vld [vmem:[#allocation2 + $0x348] ss:$2 sm:$0xff] }
  0xce   :  { %v1139_v36 = vpop.permute.xlu1 %1138  ;;  %v4219_v37 = vpop.permute.xlu0 %1076 }
  0xcf   :  { %v1446_v3 = vsel %vm1445_vm5, %v1429_v63, %v1139_v36  ;;  %v1430_v17 = vsel %vm1428_vm4, %v1413_v14, %v4219_v37  ;;  %v825_v14 = vld [vmem:[#allocation2 + $0x348] ss:$2 sm:$0xff] }
  0xd0   :  { %1090 = vrot.lane.b32.xlu1 %v722_v34, %s3395_s11  ;;  %1028 = vrot.lane.b32.xlu0 %v692_v35, %s3394_s28  ;;  %v853_v34 = vld [vmem:[#allocation2 + $0x2c9] ss:$2 sm:$0xff] }
  0xd1   :  { %v758_v35 = vld [vmem:[#allocation2 + $0x2e9] ss:$2 sm:$0xff] }
  0xd2   :  { %v4223_v40 = vpop.permute.xlu1 %950  ;;  %v4225_v41 = vpop.permute.xlu0 %888 }
  0xd4   :  { %1342 = vrot.lane.b32.xlu1 %v847_v38, %s3399_s27  ;;  %1280 = vrot.lane.b32.xlu0 %v817_v39, %s3398_s13  ;;  %v582_v38 = vld [vmem:[#allocation2 + $0x87] ss:$2 sm:$0xff] }
  0xd5   :  { %v666_v39 = vld [vmem:[#allocation2 + $0x349] ss:$2 sm:$0xff] }
  0xd6   :  { %v1203_v44 = vpop.permute.xlu1 %1202  ;;  %v1141_v45 = vpop.permute.xlu0 %1140 }
  0xd7   :  { %v1463_v1 = vsel %vm1462_vm6, %v1446_v3, %v1203_v44  ;;  %v1447_v18 = vsel %vm1445_vm5, %v1430_v17, %v1141_v45  ;;  %v1380_v45 = vsel %vm33_vm0, %v582_v38, %v4215_v32  ;;  %v823_v3 = vld [vmem:[#allocation2 + $0x308] ss:$2 sm:$0xff]  ;;  %v764_v38 = vld [vmem:[#allocation2 + $0x3a9] ss:$2 sm:$0xff] }
  0xd8   :  { %1092 = vrot.lane.b32.xlu1 %v724_v42, %s3395_s11  ;;  %902 = vrot.lane.b32.xlu0 %v630_v43, %s3392_s18  ;;  %v636_v42 = vld [vmem:[#allocation2 + $0x388] ss:$2 sm:$0xff] }
  0xda   :  { %v4231_v48 = vpop.permute.xlu1 %1014  ;;  %v4233_v49 = vpop.permute.xlu0 %952 }
  0xdc   :  { %1344 = vrot.lane.b32.xlu1 %v849_v46, %s3399_s27  ;;  %1154 = vrot.lane.b32.xlu0 %v754_v47, %s3396_s16  ;;  %v1397_v46 = vsel %vm179_vm1, %v1380_v45, %v4223_v40  ;;  %v791_v47 = vld [vmem:[#allocation2 + $0x307] ss:$2 sm:$0xff] }
  0xdd   :  { %v588_v45 = vld [vmem:[#allocation2 + $0x147] ss:$2 sm:$0xff] }
  0xde   :  { %v1267_v54 = vpop.permute.xlu1 %1266  ;;  %v1205_v55 = vpop.permute.xlu0 %1204 }
  0xdf   :  { %v1480_v7 = vsel %vm1479_vm7, %v1463_v1, %v1267_v54  ;;  %v1464_v19 = vsel %vm1462_vm6, %v1447_v18, %v1205_v55  ;;  %v584_v55 = vld [vmem:[#allocation2 + $0xc7] ss:$2 sm:$0xff]  ;;  %v732_v18 = vld [vmem:[#allocation2 + $0x3a8] ss:$2 sm:$0xff] }
  0xe0   :  { %966 = vrot.lane.b32.xlu1 %v662_v51, %s3393_s19  ;;  %904 = vrot.lane.b32.xlu0 %v632_v52, %s3392_s18  ;;  %v1414_v51 = vsel %vm1411_vm3, %v1397_v46, %v4231_v48  ;;  %v793_v1 = vld [vmem:[#allocation2 + $0x347] ss:$2 sm:$0xff] }
  0xe1   :  { %v702_v46 = vld [vmem:[#allocation2 + $0x3e7] ss:$2 sm:$0xff] }
  0xe2   :  { %v4242_v60 = vpop.permute.xlu1 %1078  ;;  %v4244_v61 = vpop.permute.xlu0 %1016 }
  0xe3   :  { %v1431_v54 = vsel %vm1428_vm4, %v1414_v51, %v4242_v60  ;;  %v1381_v60 = vsel %vm33_vm0, %v584_v55, %v4225_v41  ;;  %v827_v55 = vld [vmem:[#allocation2 + $0x388] ss:$2 sm:$0xff] }
  0xe4   :  { %1218 = vrot.lane.b32.xlu1 %v787_v57, %s3397_s22  ;;  %1156 = vrot.lane.b32.xlu0 %v756_v58, %s3396_s16  ;;  %v668_v57 = vld [vmem:[#allocation2 + $0x389] ss:$2 sm:$0xff]  ;;  %v1398_v63 = vsel %vm179_vm1, %v1381_v60, %v4233_v49 }
  0xe6   :  { %v1331_v8 = vpop.permute.xlu1 %1330  ;;  %v1269_v9 = vpop.permute.xlu0 %1268 }
  0xe7   :  { %v1497_v10 = vsel %vm1496_vm8, %v1480_v7, %v1331_v8  ;;  %v1481_v6 = vsel %vm1479_vm7, %v1464_v19, %v1269_v9  ;;  %v730_v8 = vld [vmem:[#allocation2 + $0x368] ss:$2 sm:$0xff]  ;;  %v700_v9 = vld [vmem:[#allocation2 + $0x3a7] ss:$2 sm:$0xff] }
  0xe8   :  { %1030 = vrot.lane.b32.xlu1 %v694_v2, %s3394_s28  ;;  %968 = vrot.lane.b32.xlu0 %v664_v4, %s3393_s19  ;;  %v1415_v2 = vsel %vm1411_vm3, %v1398_v63, %v4244_v61  ;;  %v638_v19 = vld [vmem:[#allocation2 + $0x3c8] ss:$2 sm:$0xff] }
  0xe9   :  { %3243 = vmatprep.mubr.msk.f32.mxu0 %vm1518_vm9, %v1497_v10 }
  0xea   :  { %v4262_v15 = vpop.permute.xlu1 %1080  ;;  %v4264_v16 = vpop.permute.xlu0 %890 }
  0xeb   :  { %v1432_v41 = vsel %vm1428_vm4, %v1415_v2, %v4262_v15  ;;  %v829_v2 = vld [vmem:[#allocation2 + $0x3c8] ss:$2 sm:$0xff] }
  0xec   :  { %1282 = vrot.lane.b32.xlu1 %v819_v12, %s3398_s13  ;;  %1220 = vrot.lane.b32.xlu0 %v789_v13, %s3397_s22  ;;  %v855_v13 = vld [vmem:[#allocation2 + $0x309] ss:$2 sm:$0xff] }
  0xee   :  { %v1333_v22 = vpop.permute.xlu1 %1332  ;;  %v1143_v23 = vpop.permute.xlu0 %1142 }
  0xef   :  { %v1498_v24 = vsel %vm1496_vm8, %v1481_v6, %v1333_v22  ;;  %v1448_v32 = vsel %vm1445_vm5, %v1431_v54, %v1143_v23  ;;  %v857_v6 = vld [vmem:[#allocation2 + $0x349] ss:$2 sm:$0xff] }
  0xf0   :  { %1094 = vrot.lane.b32.xlu1 %v726_v20, %s3395_s11  ;;  %1032 = vrot.lane.b32.xlu0 %v696_v21, %s3394_s28  ;;  %v762_v22 = vld [vmem:[#allocation2 + $0x369] ss:$2 sm:$0xff] }
  0xf1   :  { %3244 = vmatmul.mubr.msk.f32.vlgmr.msra.gmra.mrb[0].mxu0 %vm1518_vm9, %v1498_v24 }
  0xf2   :  { %v4277_v27 = vpop.permute.xlu1 %954  ;;  %v4279_v28 = vpop.permute.xlu0 %892 }
  0xf4   :  { %1346 = vrot.lane.b32.xlu1 %v851_v25, %s3399_s27  ;;  %1284 = vrot.lane.b32.xlu0 %v821_v26, %s3398_s13  ;;  %v586_v25 = vld [vmem:[#allocation2 + $0x107] ss:$2 sm:$0xff] }
  0xf5   :  { %v670_v26 = vld [vmem:[#allocation2 + $0x3c9] ss:$2 sm:$0xff] }
  0xf6   :  { %v1207_v31 = vpop.permute.xlu1 %1206  ;;  %v1145_v33 = vpop.permute.xlu0 %1144 }
  0xf7   :  { %v1465_v40 = vsel %vm1462_vm6, %v1448_v32, %v1207_v31  ;;  %v1449_v7 = vsel %vm1445_vm5, %v1432_v41, %v1145_v33  ;;  %v1382_v33 = vsel %vm33_vm0, %v586_v25, %v4264_v16  ;;  %v831_v25 = vld [vmem:[#allocation2 + $0x408] ss:$2 sm:$0xff] }
  0xf8   :  { %1096 = vrot.lane.b32.xlu1 %v728_v29, %s3395_s11  ;;  %906 = vrot.lane.b32.xlu0 %v634_v30, %s3392_s18  ;;  %v640_v29 = vld [vmem:[#allocation2 + $0x408] ss:$2 sm:$0xff] }
  0xfa   :  { %v4285_v36 = vpop.permute.xlu1 %1018  ;;  %v4287_v37 = vpop.permute.xlu0 %956 }
  0xfc   :  { %1348 = vrot.lane.b32.xlu1 %v853_v34, %s3399_s27  ;;  %1158 = vrot.lane.b32.xlu0 %v758_v35, %s3396_s16  ;;  %v1399_v34 = vsel %vm179_vm1, %v1382_v33, %v4277_v27  ;;  %v795_v35 = vld [vmem:[#allocation2 + $0x387] ss:$2 sm:$0xff] }
  0xfd   :  { %v865_v33 = vld [vmem:[#allocation2 + $0x449] ss:$2 sm:$0xff] }
  0xfe   :  { %v1271_v43 = vpop.permute.xlu1 %1270  ;;  %v1209_v44 = vpop.permute.xlu0 %1208 }
  0xff   :  { %v1482_v48 = vsel %vm1479_vm7, %v1465_v40, %v1271_v43  ;;  %v1466_v49 = vsel %vm1462_vm6, %v1449_v7, %v1209_v44  ;;  %v797_v40 = vld [vmem:[#allocation2 + $0x3c7] ss:$2 sm:$0xff] }
 0x100   :  { %970 = vrot.lane.b32.xlu1 %v666_v39, %s3393_s19  ;;  %908 = vrot.lane.b32.xlu0 %v636_v42, %s3392_s18  ;;  %v1416_v39 = vsel %vm1411_vm3, %v1399_v34, %v4285_v36  ;;  %v766_v7 = vld [vmem:[#allocation2 + $0x3e9] ss:$2 sm:$0xff] }
 0x101   :  { %v863_v34 = vld [vmem:[#allocation2 + $0x409] ss:$2 sm:$0xff] }
 0x102   :  { %v4299_v52 = vpop.permute.xlu1 %1082  ;;  %v4301_v53 = vpop.permute.xlu0 %1020 }
 0x103   :  { %v1433_v44 = vsel %vm1428_vm4, %v1416_v39, %v4299_v52  ;;  %v1383_v52 = vsel %vm33_vm0, %v588_v45, %v4279_v28 }
 0x104   :  { %1222 = vrot.lane.b32.xlu1 %v791_v47, %s3397_s22  ;;  %1160 = vrot.lane.b32.xlu0 %v760_v50, %s3396_s16  ;;  %v672_v47 = vld [vmem:[#allocation2 + $0x409] ss:$2 sm:$0xff]  ;;  %v1400_v32 = vsel %vm179_vm1, %v1383_v52, %v4287_v37 }
 0x106   :  { %v1335_v58 = vpop.permute.xlu1 %1334  ;;  %v1273_v59 = vpop.permute.xlu0 %1272 }
 0x107   :  { %v1499_v62 = vsel %vm1496_vm8, %v1482_v48, %v1335_v58  ;;  %v1483_v10 = vsel %vm1479_vm7, %v1466_v49, %v1273_v59  ;;  %v734_v59 = vld [vmem:[#allocation2 + $0x3e8] ss:$2 sm:$0xff] }
 0x108   :  { %1034 = vrot.lane.b32.xlu1 %v698_v56, %s3394_s28  ;;  %972 = vrot.lane.b32.xlu0 %v668_v57, %s3393_s19  ;;  %v1417_v56 = vsel %vm1411_vm3, %v1400_v32, %v4301_v53  ;;  %v736_v49 = vld [vmem:[#allocation2 + $0x428] ss:$2 sm:$0xff]  ;;  %v1819_v32 = vld [vmem:[#allocation3 + $0xf8] sm:$0xff] }
 0x109   :  { %3246 = vmatprep.mubr.msk.f32.mxu0 %vm1518_vm9, %v1499_v62  ;;  %v704_v62 = vld [vmem:[#allocation2 + $0x427] ss:$2 sm:$0xff] }
 0x10a   :  { %v4320_v4 = vpop.permute.xlu1 %1084  ;;  %v4322_v5 = vpop.permute.xlu0 %894 }
 0x10b   :  { %v1434_v28 = vsel %vm1428_vm4, %v1417_v56, %v4320_v4 }
 0x10c   :  { %1286 = vrot.lane.b32.xlu1 %v823_v3, %s3398_s13  ;;  %1224 = vrot.lane.b32.xlu0 %v793_v1, %s3397_s22  ;;  %v859_v1 = vld [vmem:[#allocation2 + $0x389] ss:$2 sm:$0xff] }
 0x10e   :  { %v1337_v61 = vpop.permute.xlu1 %1336  ;;  %v1147_v11 = vpop.permute.xlu0 %1146 }
 0x10f   :  { %v1500_v12 = vsel %vm1496_vm8, %v1483_v10, %v1337_v61  ;;  %v1450_v16 = vsel %vm1445_vm5, %v1433_v44, %v1147_v11  ;;  %v768_v10 = vld [vmem:[#allocation2 + $0x429] ss:$2 sm:$0xff] }
 0x110   :  { %1098 = vrot.lane.b32.xlu1 %v730_v8, %s3395_s11  ;;  %1036 = vrot.lane.b32.xlu0 %v700_v9, %s3394_s28  ;;  %v861_v61 = vld [vmem:[#allocation2 + $0x3c9] ss:$2 sm:$0xff] }
 0x111   :  { %3247 = vmatmul.mubr.msk.f32.gmra.mrb[2].mxu0 %vm1518_vm9, %v1500_v12 }
 0x112   :  { %v4335_v15 = vpop.permute.xlu1 %958  ;;  %v4337_v17 = vpop.permute.xlu0 %896 }
 0x114   :  { %1350 = vrot.lane.b32.xlu1 %v855_v13, %s3399_s27  ;;  %1288 = vrot.lane.b32.xlu0 %v825_v14, %s3398_s13  ;;  %v590_v13 = vld [vmem:[#allocation2 + $0x187] ss:$2 sm:$0xff] }
 0x115   :  { %v801_v14 = vld [vmem:[#allocation2 + $0x447] ss:$2 sm:$0xff] }
 0x116   :  { %v1211_v20 = vpop.permute.xlu1 %1210  ;;  %v1149_v21 = vpop.permute.xlu0 %1148 }
 0x117   :  { %v1467_v27 = vsel %vm1462_vm6, %v1450_v16, %v1211_v20  ;;  %v1451_v58 = vsel %vm1445_vm5, %v1434_v28, %v1149_v21  ;;  %v1384_v21 = vsel %vm33_vm0, %v590_v13, %v4322_v5  ;;  %v1811_v16 = vld [vmem:[#allocation3 + $0x8] sm:$0xff] }
 0x118   :  { %1100 = vrot.lane.b32.xlu1 %v732_v18, %s3395_s11  ;;  %910 = vrot.lane.b32.xlu0 %v638_v19, %s3392_s18  ;;  %v799_v18 = vld [vmem:[#allocation2 + $0x407] ss:$2 sm:$0xff] }
 0x11a   :  { %v4343_v23 = vpop.permute.xlu1 %1022  ;;  %v4345_v24 = vpop.permute.xlu0 %960 }
 0x11c   :  { %1352 = vrot.lane.b32.xlu1 %v857_v6, %s3399_s27  ;;  %1162 = vrot.lane.b32.xlu0 %v762_v22, %s3396_s16  ;;  %v1401_v6 = vsel %vm179_vm1, %v1384_v21, %v4335_v15  ;;  %v833_v22 = vld [vmem:[#allocation2 + $0x448] ss:$2 sm:$0xff] }
 0x11e   :  { %v1275_v30 = vpop.permute.xlu1 %1274  ;;  %v1213_v31 = vpop.permute.xlu0 %1212 }
 0x11f   :  { %v1484_v36 = vsel %vm1479_vm7, %v1467_v27, %v1275_v30  ;;  %v1468_v37 = vsel %vm1462_vm6, %v1451_v58, %v1213_v31 }
 0x120   :  { %974 = vrot.lane.b32.xlu1 %v670_v26, %s3393_s19  ;;  %912 = vrot.lane.b32.xlu0 %v640_v29, %s3392_s18  ;;  %v1418_v26 = vsel %vm1411_vm3, %v1401_v6, %v4343_v23  ;;  %v592_v23 = vld [vmem:[#allocation2 + $0x1c7] ss:$2 sm:$0xff] }
 0x121   :  { %v1385_v0 = vsel %vm33_vm0, %v592_v23, %v4337_v17  ;;  %v598_v23 = vld [vmem:[#allocation2 + $0x2c7] ss:$2 sm:$0xff] }
 0x122   :  { %v4357_v42 = vpop.permute.xlu1 %1086  ;;  %v4359_v43 = vpop.permute.xlu0 %1024  ;;  %v1402_v44 = vsel %vm179_vm1, %v1385_v0, %v4345_v24  ;;  %v1827_v24 = vld [vmem:[#allocation3 + $0x9] sm:$0xff] }
 0x123   :  { %v1435_v5 = vsel %vm1428_vm4, %v1418_v26, %v4357_v42  ;;  %v1419_v45 = vsel %vm1411_vm3, %v1402_v44, %v4359_v43 }
 0x124   :  { %1226 = vrot.lane.b32.xlu1 %v795_v35, %s3397_s22  ;;  %1164 = vrot.lane.b32.xlu0 %v764_v38, %s3396_s16 }
 0x126   :  { %v1339_v50 = vpop.permute.xlu1 %1338  ;;  %v1277_v51 = vpop.permute.xlu0 %1276 }
 0x127   :  { %v1501_v54 = vsel %vm1496_vm8, %v1484_v36, %v1339_v50  ;;  %v1485_v60 = vsel %vm1479_vm7, %v1468_v37, %v1277_v51  ;;  %v1835_v36 = vld [vmem:[#allocation3 + $0xf9] sm:$0xff]  ;;  %v594_v37 = vld [vmem:[#allocation2 + $0x247] ss:$2 sm:$0xff] }
 0x128   :  { %1038 = vrot.lane.b32.xlu1 %v702_v46, %s3394_s28  ;;  %976 = vrot.lane.b32.xlu0 %v672_v47, %s3393_s19 }
 0x129   :  { %3249 = vmatprep.mubr.msk.f32.mxu0 %vm1518_vm9, %v1501_v54 }
 0x12a   :  { %v4378_v57 = vpop.permute.xlu1 %1088  ;;  %v4380_v48 = vpop.permute.xlu0 %898 }
 0x12b   :  { %v1436_v47 = vsel %vm1428_vm4, %v1419_v45, %v4378_v57 }
 0x12c   :  { %1290 = vrot.lane.b32.xlu1 %v827_v55, %s3398_s13  ;;  %1228 = vrot.lane.b32.xlu0 %v797_v40, %s3397_s22 }
 0x12e   :  { %v1341_v53 = vpop.permute.xlu1 %1340  ;;  %v1151_v63 = vpop.permute.xlu0 %1150 }
 0x12f   :  { %v1502_v3 = vsel %vm1496_vm8, %v1485_v60, %v1341_v53  ;;  %v1452_v15 = vsel %vm1445_vm5, %v1435_v5, %v1151_v63  ;;  %v1386_v60 = vsel %vm33_vm0, %v594_v37, %v4380_v48 }
 0x130   :  { %1102 = vrot.lane.b32.xlu1 %v734_v59, %s3395_s11  ;;  %1040 = vrot.lane.b32.xlu0 %v704_v62, %s3394_s28 }
 0x131   :  { %3250 = vmatmul.mubr.msk.f32.gmra.mrb[4].mxu0 %vm1518_vm9, %v1502_v3 }
 0x132   :  { %v4393_v4 = vpop.permute.xlu1 %962  ;;  %v4395_v41 = vpop.permute.xlu0 %900 }
 0x133   :  { %v1403_v53 = vsel %vm179_vm1, %v1386_v60, %v4393_v4 }
 0x134   :  { %1354 = vrot.lane.b32.xlu1 %v859_v1, %s3399_s27  ;;  %1292 = vrot.lane.b32.xlu0 %v829_v2, %s3398_s13 }
 0x136   :  { %v1215_v8 = vpop.permute.xlu1 %1214  ;;  %v4399_v9 = vpop.permute.xlu0 %1152 }
 0x137   :  { %v1469_v31 = vsel %vm1462_vm6, %v1452_v15, %v1215_v8  ;;  %v1453_v17 = vsel %vm1445_vm5, %v1436_v47, %v4399_v9 }
 0x138   :  { %1166 = vrot.lane.b32.xlu1 %v766_v7, %s3396_s16  ;;  %1104 = vrot.lane.b32.xlu0 %v736_v49, %s3395_s11  ;;  %v596_v49 = vld [vmem:[#allocation2 + $0x287] ss:$2 sm:$0xff] }
 0x139   :  { %v1387_v4 = vsel %vm33_vm0, %v596_v49, %v4395_v41 }
 0x13a   :  { %v4403_v11 = vpop.permute.xlu1 %1026  ;;  %v4405_v12 = vpop.permute.xlu0 %964 }
 0x13b   :  { %v1420_v63 = vsel %vm1411_vm3, %v1403_v53, %v4403_v11  ;;  %v1404_v11 = vsel %vm179_vm1, %v1387_v4, %v4405_v12  ;;  %v602_v53 = vld [vmem:[#allocation2 + $0x347] ss:$2 sm:$0xff] }
 0x13c   :  { %1168 = vrot.lane.b32.xlu1 %v768_v10, %s3396_s16  ;;  %1356 = vrot.lane.b32.xlu0 %v861_v61, %s3399_s27  ;;  %s3400_s16 = smov 40  }
 0x13e   :  { %v1279_v19 = vpop.permute.xlu1 %1278  ;;  %v1217_v20 = vpop.permute.xlu0 %1216 }
 0x13f   :  { %v1486_v35 = vsel %vm1479_vm7, %v1469_v31, %v1279_v19  ;;  %v1470_v50 = vsel %vm1462_vm6, %v1453_v17, %v1217_v20 }
 0x140   :  { %1232 = vrot.lane.b32.xlu1 %v801_v14, %s3397_s22  ;;  %1230 = vrot.lane.b32.xlu0 %v799_v18, %s3397_s22 }
 0x142   :  { %v4417_v29 = vpop.permute.xlu1 %1090  ;;  %v4419_v30 = vpop.permute.xlu0 %1028 }
 0x143   :  { %v1437_v2 = vsel %vm1428_vm4, %v1420_v63, %v4417_v29  ;;  %v1421_v13 = vsel %vm1411_vm3, %v1404_v11, %v4419_v30 }
 0x144   :  { %1296 = vrot.lane.b32.xlu1 %v833_v22, %s3398_s13  ;;  %1294 = vrot.lane.b32.xlu0 %v831_v25, %s3398_s13  ;;  %s3402_s13 = smov 56  }
 0x146   :  { %v1343_v38 = vpop.permute.xlu1 %1342  ;;  %v1281_v39 = vpop.permute.xlu0 %1280 }
 0x147   :  { %v1503_v42 = vsel %vm1496_vm8, %v1486_v35, %v1343_v38  ;;  %v1487_v51 = vsel %vm1479_vm7, %v1470_v50, %v1281_v39 }
 0x148   :  { %1360 = vrot.lane.b32.xlu1 %v865_v33, %s3399_s27  ;;  %1358 = vrot.lane.b32.xlu0 %v863_v34, %s3399_s27 }
 0x149   :  { %3252 = vmatprep.mubr.msk.f32.mxu0 %vm1518_vm9, %v1503_v42 }
 0x14a   :  { %v1093_v27 = vpop.permute.xlu1 %1092  ;;  %v903_v46 = vpop.permute.xlu0 %902 }
 0x14b   :  { %v1438_v19 = vsel %vm1428_vm4, %v1421_v13, %v1093_v27  ;;  %v1388_v34 = vsel %vm33_vm0, %v598_v23, %v903_v46 }
 0x14c   :  { %1956 = vrot.lane.b32.xlu0 %v1811_v16, %s3393_s19  ;;  %2036 = vrot.lane.b32.xlu1 %v1835_v36, %s3395_s11  ;;  %v600_v16 = vld [vmem:[#allocation2 + $0x307] ss:$2 sm:$0xff] }
 0x14e   :  { %v1345_v54 = vpop.permute.xlu1 %1344  ;;  %v1155_v43 = vpop.permute.xlu0 %1154 }
 0x14f   :  { %v1504_v52 = vsel %vm1496_vm8, %v1487_v51, %v1345_v54  ;;  %v1454_v7 = vsel %vm1445_vm5, %v1437_v2, %v1155_v43 }
 0x150   :  { %3253 = vmatmul.mubr.msk.f32.gmra.mrb[6].mxu0 %vm1518_vm9, %v1504_v52  ;;  %2020 = vrot.lane.b32.xlu0 %v1827_v24, %s3395_s11 }
 0x152   :  { %v967_v55 = vpop.permute.xlu1 %966  ;;  %v905_v40 = vpop.permute.xlu0 %904 }
 0x153   :  { %v1405_v35 = vsel %vm179_vm1, %v1388_v34, %v967_v55  ;;  %v1389_v46 = vsel %vm33_vm0, %v600_v16, %v905_v40 }
 0x154   :  { %1972 = vrot.lane.b32.xlu0 %v1819_v32, %s3393_s19 }
 0x156   :  { %v1219_v56 = vpop.permute.xlu1 %1218  ;;  %v1157_v57 = vpop.permute.xlu0 %1156 }
 0x157   :  { %v1471_v8 = vsel %vm1462_vm6, %v1454_v7, %v1219_v56  ;;  %v1455_v20 = vsel %vm1445_vm5, %v1438_v19, %v1157_v57 }
 0x15a   :  { %v1031_v28 = vpop.permute.xlu1 %1030  ;;  %v969_v58 = vpop.permute.xlu0 %968 }
 0x15b   :  { %v1422_v38 = vsel %vm1411_vm3, %v1405_v35, %v1031_v28  ;;  %v1406_v50 = vsel %vm179_vm1, %v1389_v46, %v969_v58 }
 0x15e   :  { %v1283_v59 = vpop.permute.xlu1 %1282  ;;  %v1221_v62 = vpop.permute.xlu0 %1220 }
 0x15f   :  { %v1488_v9 = vsel %vm1479_vm7, %v1471_v8, %v1283_v59  ;;  %v1472_v21 = vsel %vm1462_vm6, %v1455_v20, %v1221_v62 }
 0x162   :  { %v1095_v3 = vpop.permute.xlu1 %1094  ;;  %v1033_v1 = vpop.permute.xlu0 %1032 }
 0x163   :  { %v1439_v0 = vsel %vm1428_vm4, %v1422_v38, %v1095_v3  ;;  %v1423_v24 = vsel %vm1411_vm3, %v1406_v50, %v1033_v1 }
 0x166   :  { %v1347_v10 = vpop.permute.xlu1 %1346  ;;  %v1285_v48 = vpop.permute.xlu0 %1284 }
 0x167   :  { %v1505_v61 = vsel %vm1496_vm8, %v1488_v9, %v1347_v10  ;;  %v1489_v6 = vsel %vm1479_vm7, %v1472_v21, %v1285_v48  ;;  %v604_v48 = vld [vmem:[#allocation2 + $0x387] ss:$2 sm:$0xff] }
 0x168   :  { %3255 = vmatprep.mubr.msk.f32.mxu0 %vm1518_vm9, %v1505_v61 }
 0x16a   :  { %v1097_v14 = vpop.permute.xlu1 %1096  ;;  %v907_v18 = vpop.permute.xlu0 %906 }
 0x16b   :  { %v1440_v43 = vsel %vm1428_vm4, %v1423_v24, %v1097_v14  ;;  %v1390_v1 = vsel %vm33_vm0, %v602_v53, %v907_v18  ;;  %v2599_v53 = vld [vmem:[#allocation2 + $0x1a8] ss:$2 sm:$0xff] }
 0x16c   :  { %3278 = vmatprep.mubr.msk.f32.mxu1 %vm33_vm0, %v2599_v53  ;;  %v2595_v53 = vld [vmem:[#allocation2 + $0xa8] ss:$2 sm:$0xff] }
 0x16e   :  { %v1349_v22 = vpop.permute.xlu1 %1348  ;;  %v1159_v41 = vpop.permute.xlu0 %1158 }
 0x16f   :  { %v1506_v25 = vsel %vm1496_vm8, %v1489_v6, %v1349_v22  ;;  %v1456_v44 = vsel %vm1445_vm5, %v1439_v0, %v1159_v41 }
 0x170   :  { %3256 = vmatmul.mubr.msk.f32.gmra.mrb[8].mxu0 %vm1518_vm9, %v1506_v25 }
 0x172   :  { %v971_v12 = vpop.permute.xlu1 %970  ;;  %v909_v26 = vpop.permute.xlu0 %908 }
 0x173   :  { %v1407_v2 = vsel %vm179_vm1, %v1390_v1, %v971_v12  ;;  %v1391_v18 = vsel %vm33_vm0, %v604_v48, %v909_v26  ;;  %v2600_v1 = vld [vmem:[#allocation2 + $0x1e8] ss:$2 sm:$0xff] }
 0x174   :  { %v2605_v48 = vld [vmem:[#allocation2 + $0x368] ss:$2 sm:$0xff] }
 0x176   :  { %v1223_v29 = vpop.permute.xlu1 %1222  ;;  %v1161_v30 = vpop.permute.xlu0 %1160 }
 0x177   :  { %v1473_v45 = vsel %vm1462_vm6, %v1456_v44, %v1223_v29  ;;  %v1457_v52 = vsel %vm1445_vm5, %v1440_v43, %v1161_v30 }
 0x17a   :  { %v1035_v5 = vpop.permute.xlu1 %1034  ;;  %v973_v15 = vpop.permute.xlu0 %972 }
 0x17b   :  { %v1424_v7 = vsel %vm1411_vm3, %v1407_v2, %v1035_v5  ;;  %v1408_v19 = vsel %vm179_vm1, %v1391_v18, %v973_v15  ;;  %v606_v5 = vld [vmem:[#allocation2 + $0x3c7] ss:$2 sm:$0xff]  ;;  %v2601_v2 = vld [vmem:[#allocation2 + $0x268] ss:$2 sm:$0xff] }
 0x17c   :  { %v608_v15 = vld [vmem:[#allocation2 + $0x407] ss:$2 sm:$0xff] }
 0x17e   :  { %v1287_v31 = vpop.permute.xlu1 %1286  ;;  %v1225_v33 = vpop.permute.xlu0 %1224 }
 0x17f   :  { %v1490_v27 = vsel %vm1479_vm7, %v1473_v45, %v1287_v31  ;;  %v1474_v32 = vsel %vm1462_vm6, %v1457_v52, %v1225_v33  ;;  %v4572_v52 = vld [vmem:[%s5171_s4] ss:$0 sm:$0xff] }
 0x182   :  { %v1099_v39 = vpop.permute.xlu1 %1098  ;;  %v1037_v42 = vpop.permute.xlu0 %1036 }
 0x183   :  { %v1441_v9 = vsel %vm1428_vm4, %v1424_v7, %v1099_v39  ;;  %v1425_v20 = vsel %vm1411_vm3, %v1408_v19, %v1037_v42  ;;  %v2607_v19 = vld [vmem:[#allocation2 + $0x3e8] ss:$2 sm:$0xff] }
 0x186   :  { %v1351_v47 = vpop.permute.xlu1 %1350  ;;  %v1289_v17 = vpop.permute.xlu0 %1288 }
 0x187   :  { %v1507_v36 = vsel %vm1496_vm8, %v1490_v27, %v1351_v47  ;;  %v1491_v55 = vsel %vm1479_vm7, %v1474_v32, %v1289_v17 }
 0x188   :  { %3258 = vmatprep.mubr.msk.f32.mxu0 %vm1518_vm9, %v1507_v36 }
 0x18a   :  { %v1101_v51 = vpop.permute.xlu1 %1100  ;;  %v911_v54 = vpop.permute.xlu0 %910 }
 0x18b   :  { %v1442_v22 = vsel %vm1428_vm4, %v1425_v20, %v1101_v51  ;;  %v1392_v33 = vsel %vm33_vm0, %v606_v5, %v911_v54  ;;  %v2586_v5 = vld [vmem:[%s5174_s6 + $0x10] sm:$0xff] }
 0x18e   :  { %v1353_v56 = vpop.permute.xlu1 %1352  ;;  %v1163_v57 = vpop.permute.xlu0 %1162 }
 0x18f   :  { %v1508_v40 = vsel %vm1496_vm8, %v1491_v55, %v1353_v56  ;;  %v1458_v10 = vsel %vm1445_vm5, %v1441_v9, %v1163_v57  ;;  %v4577_v55 = vld [vmem:[%s5172_s5] ss:$0 sm:$0xff]  ;;  %v2603_v9 = vld [vmem:[#allocation2 + $0x2e8] ss:$2 sm:$0xff] }
 0x190   :  { %3259 = vmatmul.mubr.msk.f32.gmra.mrb[10].mxu0 %vm1518_vm9, %v1508_v40 }
 0x192   :  { %v975_v28 = vpop.permute.xlu1 %974  ;;  %v913_v58 = vpop.permute.xlu0 %912 }
 0x193   :  { %v1393_v34 = vsel %vm33_vm0, %v608_v15, %v913_v58  ;;  %v1409_v35 = vsel %vm179_vm1, %v1392_v33, %v975_v28  ;;  %v2587_v15 = vld [vmem:[%s5174_s6 + $0x18] sm:$0xff]  ;;  %v2588_v33 = vld [vmem:[%s5174_s6 + $0x20] sm:$0xff] }
 0x196   :  { %v1227_v37 = vpop.permute.xlu1 %1226  ;;  %v1165_v59 = vpop.permute.xlu0 %1164 }
 0x197   :  { %v1475_v61 = vsel %vm1462_vm6, %v1458_v10, %v1227_v37  ;;  %v1459_v41 = vsel %vm1445_vm5, %v1442_v22, %v1165_v59  ;;  %v2604_v10 = vld [vmem:[#allocation2 + $0x328] ss:$2 sm:$0xff] }
 0x19a   :  { %v1039_v62 = vpop.permute.xlu1 %1038  ;;  %v977_v60 = vpop.permute.xlu0 %976 }
 0x19b   :  { %v1410_v38 = vsel %vm179_vm1, %v1393_v34, %v977_v60  ;;  %v1426_v39 = vsel %vm1411_vm3, %v1409_v35, %v1039_v62  ;;  %v2589_v34 = vld [vmem:[%s5174_s6 + $0x28] sm:$0xff] }
 0x19c   :  { %v3351_v35 = vpack.c.bf16 %v2589_v34, %v2588_v33 }
 0x19e   :  { %v1291_v63 = vpop.permute.xlu1 %1290  ;;  %v1229_v3 = vpop.permute.xlu0 %1228 }
 0x19f   :  { %v1492_v4 = vsel %vm1479_vm7, %v1475_v61, %v1291_v63  ;;  %v1476_v25 = vsel %vm1462_vm6, %v1459_v41, %v1229_v3  ;;  %v2609_v3 = vld [vmem:[%s5173_s7] sm:$0xf]  ;;  %s3401_s7 = smov 48  }
 0x1a0   :  { %3359 = vmatprep.subr.msk.mxu1 %vm1567_vm2, %v2609_v3  ;;  %3267 = vmatprep.subr.msk.mxu0 %vm1567_vm2, %v2609_v3 }
 0x1a1   :  { %3360 = vmatpush3.msk.msra.mxu1 %vm1567_vm2, %v2609_v3  ;;  %3268 = vmatpush3.msk.msra.mxu0 %vm1567_vm2, %v2609_v3 }
 0x1a2   :  { %v1103_v49 = vpop.permute.xlu1 %1102  ;;  %v1041_v8 = vpop.permute.xlu0 %1040  ;;  %3279 = vmatmul.mubr.msk.f32.vlgmr.msra.gmra.mrb[0].mxu1 %vm33_vm0, %v2600_v1  ;;  %v2596_v1 = vld [vmem:[#allocation2 + $0xe8] ss:$2 sm:$0xff] }
 0x1a3   :  { %v1427_v42 = vsel %vm1411_vm3, %v1410_v38, %v1041_v8  ;;  %v1443_v16 = vsel %vm1428_vm4, %v1426_v39, %v1103_v49  ;;  %v2602_v49 = vld [vmem:[#allocation2 + $0x2a8] ss:$2 sm:$0xff]  ;;  %3281 = vmatprep.mubr.msk.f32.mxu1 %vm33_vm0, %v2601_v2 }
 0x1a4   :  { %v2590_v39 = vld [vmem:[%s5174_s6 + $0x30] sm:$0xff] }
 0x1a6   :  { %v1355_v11 = vpop.permute.xlu1 %1354  ;;  %v1293_v13 = vpop.permute.xlu0 %1292  ;;  %3282 = vmatmul.mubr.msk.f32.gmra.mrb[2].mxu1 %vm33_vm0, %v2602_v49 }
 0x1a7   :  { %v1509_v14 = vsel %vm1496_vm8, %v1492_v4, %v1355_v11  ;;  %v1493_v12 = vsel %vm1479_vm7, %v1476_v25, %v1293_v13  ;;  %3284 = vmatprep.mubr.msk.f32.mxu1 %vm33_vm0, %v2603_v9  ;;  %v2606_v4 = vld [vmem:[#allocation2 + $0x3a8] ss:$2 sm:$0xff] }
 0x1a8   :  { %3261 = vmatprep.mubr.msk.f32.mxu0 %vm1518_vm9, %v1509_v14 }
 0x1aa   :  { %v1167_v21 = vpop.permute.xlu1 %1166  ;;  %v1105_v6 = vpop.permute.xlu0 %1104  ;;  %3285 = vmatmul.mubr.msk.f32.gmra.mrb[4].mxu1 %vm33_vm0, %v2604_v10 }
 0x1ab   :  { %v1444_v45 = vsel %vm1428_vm4, %v1427_v42, %v1105_v6  ;;  %v1460_v27 = vsel %vm1445_vm5, %v1443_v16, %v1167_v21  ;;  %3287 = vmatprep.mubr.msk.f32.mxu1 %vm33_vm0, %v2605_v48  ;;  %v2608_v21 = vld [vmem:[#allocation2 + $0x428] ss:$2 sm:$0xff]  ;;  %v2591_v42 = vld [vmem:[%s5174_s6 + $0x38] sm:$0xff] }
 0x1ae   :  { %v1169_v29 = vpop.permute.xlu1 %1168  ;;  %v1357_v30 = vpop.permute.xlu0 %1356  ;;  %3288 = vmatmul.mubr.msk.f32.gmra.mrb[6].mxu1 %vm33_vm0, %v2606_v4  ;;  %v2597_v4 = vld [vmem:[#allocation2 + $0x128] ss:$2 sm:$0xff] }
 0x1af   :  { %v1510_v26 = vsel %vm1496_vm8, %v1493_v12, %v1357_v30  ;;  %v1461_v47 = vsel %vm1445_vm5, %v1444_v45, %v1169_v29  ;;  %3290 = vmatprep.mubr.msk.f32.mxu1 %vm33_vm0, %v2607_v19  ;;  %v2584_v12 = vld [vmem:[%s5174_s6] sm:$0xff]  ;;  %v2585_v29 = vld [vmem:[%s5174_s6 + $0x8] sm:$0xff] }
 0x1b0   :  { %3262 = vmatmul.mubr.msk.f32.gmra.mrb[12].mxu0 %vm1518_vm9, %v1510_v26  ;;  %v3343_v30 = vpack.c.bf16 %v2585_v29, %v2584_v12  ;;  %v2592_v45 = vld [vmem:[%s5174_s6 + $0x40] sm:$0xff] }
 0x1b2   :  { %v1233_v23 = vpop.permute.xlu1 %1232  ;;  %v1231_v31 = vpop.permute.xlu0 %1230  ;;  %3291 = vmatmul.mubr.msk.f32.gmra.mrb[8].mxu1 %vm33_vm0, %v2608_v21  ;;  %3344 = vmatprep.subr.bf16.mxu1 %v3343_v30 }
 0x1b3   :  { %v1478_v17 = vsel %vm1462_vm6, %v1461_v47, %v1233_v23  ;;  %v1477_v36 = vsel %vm1462_vm6, %v1460_v27, %v1231_v31  ;;  %v3347_v23 = vpack.c.bf16 %v2587_v15, %v2586_v5  ;;  %3346 = vmatpush3.bf16.msra.mxu1 %v3343_v30 }
 0x1b5   :  { %3348 = vmatprep.subr.bf16.mxu1 %v3347_v23 }
 0x1b6   :  { %v1297_v0 = vpop.permute.xlu1 %1296  ;;  %v1295_v44 = vpop.permute.xlu0 %1294 }
 0x1b7   :  { %v1495_v46 = vsel %vm1479_vm7, %v1478_v17, %v1297_v0  ;;  %v1494_v50 = vsel %vm1479_vm7, %v1477_v36, %v1295_v44  ;;  %3350 = vmatpush3.bf16.msra.mxu1 %v3347_v23  ;;  %v3355_v0 = vpack.c.bf16 %v2591_v42, %v2590_v39  ;;  %v2593_v17 = vld [vmem:[#allocation2 + $0x28] ss:$2 sm:$0xff] }
 0x1b8   :  { %3352 = vmatprep.subr.bf16.mxu1 %v3351_v35 }
 0x1ba   :  { %v1361_v24 = vpop.permute.xlu1 %1360  ;;  %v1359_v51 = vpop.permute.xlu0 %1358 }
 0x1bb   :  { %v1512_v54 = vsel %vm1496_vm8, %v1495_v46, %v1361_v24  ;;  %v1511_v43 = vsel %vm1496_vm8, %v1494_v50, %v1359_v51  ;;  %3354 = vmatpush3.bf16.msra.mxu1 %v3351_v35  ;;  %v2594_v50 = vld [vmem:[#allocation2 + $0x68] ss:$2 sm:$0xff] }
 0x1bc   :  { %3264 = vmatprep.mubr.msk.f32.mxu0 %vm1518_vm9, %v1511_v43  ;;  %3356 = vmatprep.subr.bf16.mxu1 %v3355_v0 }
 0x1bd   :  { %3265 = vmatmul.mubr.msk.f32.gmra.mrb[14].mxu0 %vm1518_vm9, %v1512_v54 }
 0x1be   :  { %3269 = vmatprep.mubr.msk.f32.mxu0 %vm33_vm0, %v2593_v17  ;;  %v4731_v19 = vpop.permute.xlu1 %2036 }
 0x1bf   :  { %3358 = vmatpush3.bf16.msra.mxu1 %v3355_v0 }
 0x1c0   :  { %3309 = vmatprep.subr.mxu1 %v2592_v45 }
 0x1c1   :  { %3270 = vmatmul.mubr.msk.f32.vlgmr.msra.gmra.mrb[16].mxu0 %vm33_vm0, %v2594_v50  ;;  %v1915_v50 = vld [vmem:[#allocation3 + $0xe0] sm:$0xff] }
 0x1c2   :  { %3272 = vmatprep.mubr.msk.f32.mxu0 %vm33_vm0, %v2595_v53 }
 0x1c3   :  { %3310 = vmatpush3.msra.mxu1 %v2592_v45  ;;  %v1795_v45 = vld [vmem:[#allocation3 + $0x7] sm:$0xff] }
 0x1c4   :  { %v3245_v32 = vpop.f32.mrb[0].mxu0 }
 0x1c5   :  { %v1724_v56 = vmul.f32 %v3245_v32, %v4572_v52  ;;  %v1637_v57 = vpop.f32.mrb[1].mxu0  ;;  %3273 = vmatmul.mubr.msk.f32.gmra.mrb[18].mxu0 %vm33_vm0, %v2596_v1 }
 0x1c6   :  { %v1723_v40 = vmul.f32 %v4572_v52, %v1637_v57  ;;  %3275 = vmatprep.mubr.msk.f32.mxu0 %vm33_vm0, %v2597_v4 }
 0x1c7   :  { %v1747_v28 = vadd.f32 %v4577_v55, %v1724_v56 }
 0x1c8   :  { %v1746_v58 = vadd.f32 %v4577_v55, %v1723_v40 }
 0x1c9   :  { %v1763_v37 = vmax.f32 %v1747_v28, 0.0 }
 0x1ca   :  { %v1762_v59 = vmax.f32 %v1746_v58, 0.0 }
 0x1cb   :  { %1780 = vst.msk [vmem:[#allocation3 + $0x38] sm:$0xff] %vm179_vm1, %v1763_v37 }
 0x1cc   :  { %1779 = vst.msk [vmem:[#allocation3 + $0x20] sm:$0xff] %vm179_vm1, %v1762_v59 }
 0x1d2   :  { %v4585_v62 = vld [vmem:[#allocation3 + $0x37] sm:$0xff] }
 0x1d3   :  { %v1860_v60 = vld [vmem:[#allocation3 + $0x38] sm:$0xff]  ;;  %2086 = vrot.lane.b32.xlu1 %v4585_v62, %s3397_s22  ;;  %v1859_v8 = vld [vmem:[#allocation3 + $0x20] sm:$0xff] }
 0x1d4   :  { %2150 = vrot.lane.b32.xlu0 %v1860_v60, %s3399_s27  ;;  %v1876_v63 = vld [vmem:[#allocation3 + $0x39] sm:$0xff]  ;;  %v1828_v41 = vld [vmem:[#allocation3 + $0x21] sm:$0xff] }
 0x1d5   :  { %v4600_v7 = vld [vmem:[#allocation3 + $0x1f] sm:$0xff] }
 0x1d7   :  { %1960 = vrot.lane.b32.xlu1 %v1860_v60, %s3393_s19 }
 0x1d8   :  { %2214 = vrot.lane.b32.xlu0 %v1876_v63, %s3400_s16 }
 0x1db   :  { %2024 = vrot.lane.b32.xlu1 %v1876_v63, %s3395_s11 }
 0x1dc   :  { %2084 = vrot.lane.b32.xlu0 %v4600_v7, %s3397_s22 }
 0x1df   :  { %2276 = vrot.lane.b32.xlu1 %v4585_v62, %s3401_s7 }
 0x1e0   :  { %2148 = vrot.lane.b32.xlu0 %v1859_v8, %s3399_s27 }
 0x1e3   :  { %2340 = vrot.lane.b32.xlu1 %v1860_v60, %s3402_s13 }
 0x1e4   :  { %v3248_v61 = vpop.f32.mrb[2].mxu0 }
 0x1e5   :  { %v1726_v11 = vmul.f32 %v3248_v61, %v4572_v52  ;;  %v1647_v13 = vpop.f32.mrb[3].mxu0 }
 0x1e6   :  { %v1725_v14 = vmul.f32 %v4572_v52, %v1647_v13  ;;  %v1957_v13 = vpop.permute.xlu0 %1956 }
 0x1e7   :  { %v1749_v18 = vadd.f32 %v4577_v55, %v1726_v11  ;;  %2404 = vrot.lane.b32.xlu1 %v1876_v63, %s3403_s25  ;;  %v2598_v11 = vld [vmem:[#allocation2 + $0x168] ss:$2 sm:$0xff]  ;;  %v2452_v17 = vsel %vm179_vm1, %v1795_v45, %v1957_v13 }
 0x1e8   :  { %v1748_v20 = vadd.f32 %v4577_v55, %v1725_v14  ;;  %3276 = vmatmul.mubr.msk.f32.gmra.mrb[20].mxu0 %vm33_vm0, %v2598_v11 }
 0x1e9   :  { %v1765_v6 = vmax.f32 %v1749_v18, 0.0 }
 0x1ea   :  { %v1764_v22 = vmax.f32 %v1748_v20, 0.0  ;;  %v2021_v20 = vpop.permute.xlu0 %2020 }
 0x1eb   :  { %1782 = vst.msk [vmem:[#allocation3 + $0x68] sm:$0xff] %vm179_vm1, %v1765_v6  ;;  %1958 = vrot.lane.b32.xlu1 %v1859_v8, %s3393_s19 }
 0x1ec   :  { %1781 = vst.msk [vmem:[#allocation3 + $0x50] sm:$0xff] %vm179_vm1, %v1764_v22 }
 0x1ee   :  { %v4744_v5 = vpop.permute.xlu0 %1972 }
 0x1ef   :  { %2022 = vrot.lane.b32.xlu1 %v1828_v41, %s3395_s11 }
 0x1f2   :  { %v4627_v25 = vld [vmem:[#allocation3 + $0x67] sm:$0xff] }
 0x1f3   :  { %2212 = vrot.lane.b32.xlu1 %v1828_v41, %s3400_s16  ;;  %2090 = vrot.lane.b32.xlu0 %v4627_v25, %s3397_s22  ;;  %v1862_v26 = vld [vmem:[#allocation3 + $0x68] sm:$0xff]  ;;  %v1814_v38 = vld [vmem:[#allocation3 + $0x50] sm:$0xff] }
 0x1f4   :  { %v1831_v31 = vld [vmem:[#allocation3 + $0x69] sm:$0xff]  ;;  %v1830_v44 = vld [vmem:[#allocation3 + $0x51] sm:$0xff] }
 0x1f5   :  { %v4670_v46 = vld [vmem:[#allocation3 + $0x4f] sm:$0xff] }
 0x1f7   :  { %2154 = vrot.lane.b32.xlu1 %v1862_v26, %s3399_s27  ;;  %1964 = vrot.lane.b32.xlu0 %v1862_v26, %s3393_s19 }
 0x1fb   :  { %2028 = vrot.lane.b32.xlu1 %v1831_v31, %s3395_s11  ;;  %2218 = vrot.lane.b32.xlu0 %v1831_v31, %s3400_s16 }
 0x1ff   :  { %2280 = vrot.lane.b32.xlu1 %v4627_v25, %s3401_s7  ;;  %1962 = vrot.lane.b32.xlu0 %v1814_v38, %s3393_s19 }
 0x203   :  { %2344 = vrot.lane.b32.xlu1 %v1862_v26, %s3402_s13  ;;  %2026 = vrot.lane.b32.xlu0 %v1830_v44, %s3395_s11 }
 0x204   :  { %v3251_v16 = vpop.f32.mrb[4].mxu0 }
 0x205   :  { %v1728_v27 = vmul.f32 %v3251_v16, %v4572_v52  ;;  %v1657_v47 = vpop.f32.mrb[5].mxu0 }
 0x206   :  { %v1727_v36 = vmul.f32 %v4572_v52, %v1657_v47 }
 0x207   :  { %v1751_v24 = vadd.f32 %v4577_v55, %v1728_v27  ;;  %2408 = vrot.lane.b32.xlu1 %v1831_v31, %s3403_s25  ;;  %2278 = vrot.lane.b32.xlu0 %v4670_v46, %s3401_s7 }
 0x208   :  { %v1750_v51 = vadd.f32 %v4577_v55, %v1727_v36 }
 0x209   :  { %v1767_v54 = vmax.f32 %v1751_v24, 0.0  ;;  %v2468_v24 = vsel %vm1428_vm4, %v2452_v17, %v2021_v20 }
 0x20a   :  { %v1766_v43 = vmax.f32 %v1750_v51, 0.0 }
 0x20b   :  { %1784 = vst.msk [vmem:[#allocation3 + $0x98] sm:$0xff] %vm179_vm1, %v1767_v54  ;;  %2088 = vrot.lane.b32.xlu1 %v4670_v46, %s3397_s22  ;;  %2342 = vrot.lane.b32.xlu0 %v1814_v38, %s3402_s13 }
 0x20c   :  { %1783 = vst.msk [vmem:[#allocation3 + $0x80] sm:$0xff] %vm179_vm1, %v1766_v43 }
 0x20f   :  { %2152 = vrot.lane.b32.xlu1 %v1814_v38, %s3399_s27  ;;  %2216 = vrot.lane.b32.xlu0 %v1830_v44, %s3400_s16 }
 0x212   :  { %v4686_v32 = vld [vmem:[#allocation3 + $0x97] sm:$0xff] }
 0x213   :  { %2406 = vrot.lane.b32.xlu1 %v1830_v44, %s3403_s25  ;;  %2094 = vrot.lane.b32.xlu0 %v4686_v32, %s3397_s22  ;;  %v1864_v56 = vld [vmem:[#allocation3 + $0x98] sm:$0xff]  ;;  %v1816_v40 = vld [vmem:[#allocation3 + $0x80] sm:$0xff] }
 0x214   :  { %v1833_v57 = vld [vmem:[#allocation3 + $0x99] sm:$0xff]  ;;  %v1832_v28 = vld [vmem:[#allocation3 + $0x81] sm:$0xff] }
 0x215   :  { %v4703_v3 = vld [vmem:[#allocation3 + $0x7f] sm:$0xff] }
 0x216   :  { %v1899_v44 = vld [vmem:[#allocation3 + $0xdf] sm:$0xff] }
 0x217   :  { %2158 = vrot.lane.b32.xlu1 %v1864_v56, %s3399_s27  ;;  %1968 = vrot.lane.b32.xlu0 %v1864_v56, %s3393_s19 }
 0x21b   :  { %2032 = vrot.lane.b32.xlu1 %v1833_v57, %s3395_s11  ;;  %2222 = vrot.lane.b32.xlu0 %v1833_v57, %s3400_s16 }
 0x21f   :  { %2284 = vrot.lane.b32.xlu1 %v4686_v32, %s3401_s7  ;;  %1966 = vrot.lane.b32.xlu0 %v1816_v40, %s3393_s19 }
 0x223   :  { %2348 = vrot.lane.b32.xlu1 %v1864_v56, %s3402_s13  ;;  %2030 = vrot.lane.b32.xlu0 %v1832_v28, %s3395_s11  ;;  %v3254_v58 = vpop.f32.mrb[6].mxu0 }
 0x224   :  { %v1730_v37 = vmul.f32 %v3254_v58, %v4572_v52  ;;  %v1667_v59 = vpop.f32.mrb[7].mxu0  ;;  %v1931_v58 = vld [vmem:[#allocation3 + $0xe1] sm:$0xff] }
 0x225   :  { %v1729_v60 = vmul.f32 %v4572_v52, %v1667_v59 }
 0x226   :  { %v1753_v63 = vadd.f32 %v4577_v55, %v1730_v37 }
 0x227   :  { %v1752_v2 = vadd.f32 %v4577_v55, %v1729_v60  ;;  %2412 = vrot.lane.b32.xlu1 %v1833_v57, %s3403_s25  ;;  %2282 = vrot.lane.b32.xlu0 %v4703_v3, %s3401_s7 }
 0x228   :  { %v1769_v49 = vmax.f32 %v1753_v63, 0.0 }
 0x229   :  { %v1768_v8 = vmax.f32 %v1752_v2, 0.0 }
 0x22a   :  { %1786 = vst.msk [vmem:[#allocation3 + $0xc8] sm:$0xff] %vm179_vm1, %v1769_v49 }
 0x22b   :  { %1785 = vst.msk [vmem:[#allocation3 + $0xb0] sm:$0xff] %vm179_vm1, %v1768_v8  ;;  %2092 = vrot.lane.b32.xlu1 %v4703_v3, %s3397_s22  ;;  %2346 = vrot.lane.b32.xlu0 %v1816_v40, %s3402_s13 }
 0x22f   :  { %2156 = vrot.lane.b32.xlu1 %v1816_v40, %s3399_s27  ;;  %2220 = vrot.lane.b32.xlu0 %v1832_v28, %s3400_s16 }
 0x231   :  { %v1850_v9 = vld [vmem:[#allocation3 + $0xc7] sm:$0xff] }
 0x232   :  { %v1866_v10 = vld [vmem:[#allocation3 + $0xc8] sm:$0xff]  ;;  %v1818_v61 = vld [vmem:[#allocation3 + $0xb0] sm:$0xff] }
 0x233   :  { %2410 = vrot.lane.b32.xlu1 %v1832_v28, %s3403_s25  ;;  %2098 = vrot.lane.b32.xlu0 %v1850_v9, %s3397_s22  ;;  %v1882_v48 = vld [vmem:[#allocation3 + $0xc9] sm:$0xff]  ;;  %v1834_v18 = vld [vmem:[#allocation3 + $0xb1] sm:$0xff] }
 0x234   :  { %v4726_v14 = vld [vmem:[#allocation3 + $0xaf] sm:$0xff] }
 0x237   :  { %2162 = vrot.lane.b32.xlu1 %v1866_v10, %s3399_s27  ;;  %2226 = vrot.lane.b32.xlu0 %v1882_v48, %s3400_s16 }
 0x23b   :  { %2288 = vrot.lane.b32.xlu1 %v1850_v9, %s3401_s7  ;;  %1970 = vrot.lane.b32.xlu0 %v1818_v61, %s3393_s19 }
 0x23f   :  { %2096 = vrot.lane.b32.xlu1 %v4726_v14, %s3397_s22  ;;  %2034 = vrot.lane.b32.xlu0 %v1834_v18, %s3395_s11 }
 0x243   :  { %2160 = vrot.lane.b32.xlu1 %v1818_v61, %s3399_s27  ;;  %2286 = vrot.lane.b32.xlu0 %v4726_v14, %s3401_s7  ;;  %v3257_v21 = vpop.f32.mrb[8].mxu0 }
 0x244   :  { %v1732_v6 = vmul.f32 %v3257_v21, %v4572_v52  ;;  %v1677_v22 = vpop.f32.mrb[9].mxu0 }
 0x245   :  { %v4737_v41 = vpop.permute.xlu1 %2086  ;;  %v1731_v12 = vmul.f32 %v4572_v52, %v1677_v22 }
 0x246   :  { %v1755_v29 = vadd.f32 %v4577_v55, %v1732_v6  ;;  %v4753_v33 = vpop.permute.xlu0 %2150 }
 0x247   :  { %v1754_v30 = vadd.f32 %v4577_v55, %v1731_v12  ;;  %2414 = vrot.lane.b32.xlu1 %v1834_v18, %s3403_s25  ;;  %2350 = vrot.lane.b32.xlu0 %v1818_v61, %s3402_s13 }
 0x248   :  { %v1771_v26 = vmax.f32 %v1755_v29, 0.0 }
 0x249   :  { %v1770_v15 = vmax.f32 %v1754_v30, 0.0  ;;  %v4746_v23 = vpop.permute.xlu1 %1960 }
 0x24a   :  { %1788 = vst.msk [vmem:[#allocation3 + $0x128] sm:$0xff] %vm179_vm1, %v1771_v26  ;;  %v4760_v39 = vpop.permute.xlu0 %2214 }
 0x24b   :  { %1787 = vst.msk [vmem:[#allocation3 + $0x110] sm:$0xff] %vm179_vm1, %v1770_v15  ;;  %2224 = vrot.lane.b32.xlu0 %v1834_v18, %s3400_s16 }
 0x24d   :  { %v4751_v31 = vpop.permute.xlu1 %2024 }
 0x24e   :  { %v2085_v27 = vpop.permute.xlu0 %2084 }
 0x24f   :  { %v2484_v57 = vsel %vm1462_vm6, %v2468_v24, %v2085_v27 }
 0x251   :  { %v2277_v34 = vpop.permute.xlu1 %2276  ;;  %v4767_v36 = vld [vmem:[#allocation3 + $0x127] sm:$0xff] }
 0x252   :  { %v4755_v35 = vld [vmem:[#allocation3 + $0x10f] sm:$0xff]  ;;  %v2149_v51 = vpop.permute.xlu0 %2148 }
 0x253   :  { %v1820_v38 = vld [vmem:[#allocation3 + $0x110] sm:$0xff]  ;;  %2100 = vrot.lane.b32.xlu1 %v4755_v35, %s3397_s22  ;;  %v1868_v43 = vld [vmem:[#allocation3 + $0x128] sm:$0xff]  ;;  %v2500_v37 = vsel %vm1496_vm8, %v2484_v57, %v2149_v51 }
 0x254   :  { %1974 = vrot.lane.b32.xlu0 %v1820_v38, %s3393_s19  ;;  %v1836_v0 = vld [vmem:[#allocation3 + $0x111] sm:$0xff]  ;;  %v1837_v11 = vld [vmem:[#allocation3 + $0x129] sm:$0xff] }
 0x255   :  { %v2341_v42 = vpop.permute.xlu1 %2340 }
 0x257   :  { %2352 = vrot.lane.b32.xlu1 %v1866_v10, %s3402_s13 }
 0x258   :  { %2038 = vrot.lane.b32.xlu0 %v1836_v0, %s3395_s11 }
 0x259   :  { %v2405_v16 = vpop.permute.xlu1 %2404 }
 0x25b   :  { %2164 = vrot.lane.b32.xlu1 %v1820_v38, %s3399_s27 }
 0x25c   :  { %2290 = vrot.lane.b32.xlu0 %v1899_v44, %s3401_s7 }
 0x25d   :  { %v1959_v47 = vpop.permute.xlu1 %1958 }
 0x25e   :  { %v2453_v30 = vsel %vm179_vm1, %v4600_v7, %v1959_v47 }
 0x25f   :  { %2416 = vrot.lane.b32.xlu1 %v1882_v48, %s3403_s25 }
 0x260   :  { %2102 = vrot.lane.b32.xlu0 %v4767_v36, %s3397_s22 }
 0x261   :  { %v2023_v54 = vpop.permute.xlu1 %2022 }
 0x263   :  { %2166 = vrot.lane.b32.xlu1 %v1868_v43, %s3399_s27  ;;  %v3260_v56 = vpop.f32.mrb[10].mxu0 }
 0x264   :  { %2354 = vrot.lane.b32.xlu0 %v1915_v50, %s3402_s13  ;;  %v1734_v40 = vmul.f32 %v3260_v56, %v4572_v52  ;;  %v1687_v28 = vpop.f32.mrb[11].mxu0 }
 0x265   :  { %v2213_v59 = vpop.permute.xlu1 %2212  ;;  %v1733_v60 = vmul.f32 %v4572_v52, %v1687_v28  ;;  %v4779_v53 = vpop.permute.xlu0 %2090 }
 0x266   :  { %v1757_v63 = vadd.f32 %v4577_v55, %v1734_v40  ;;  %v2517_v1 = vsel %vm2516_vm11, %v2500_v37, %v2213_v59 }
 0x267   :  { %v2534_v2 = vsel %vm2533_vm12, %v2517_v1, %v2277_v34  ;;  %v1756_v49 = vadd.f32 %v4577_v55, %v1733_v60  ;;  %2418 = vrot.lane.b32.xlu1 %v1931_v58, %s3403_s25  ;;  %v2469_v34 = vsel %vm1428_vm4, %v2453_v30, %v2023_v54 }
 0x268   :  { %1976 = vrot.lane.b32.xlu0 %v1868_v43, %s3393_s19  ;;  %v1773_v8 = vmax.f32 %v1757_v63, 0.0  ;;  %v2551_v9 = vsel %vm2550_vm13, %v2534_v2, %v2341_v42  ;;  %v2485_v42 = vsel %vm1462_vm6, %v2469_v34, %v4737_v41 }
 0x269   :  { %v1772_v10 = vmax.f32 %v1756_v49, 0.0  ;;  %v4788_v48 = vpop.permute.xlu1 %2154  ;;  %v4790_v61 = vpop.permute.xlu0 %1964  ;;  %v2568_v4 = vsel %vm2567_vm14, %v2551_v9, %v2405_v16  ;;  %v2454_v16 = vsel %vm179_vm1, %v4585_v62, %v4746_v23  ;;  %v2501_v45 = vsel %vm1496_vm8, %v2485_v42, %v4753_v33 }
 0x26a   :  { %1790 = vst.msk [vmem:[#allocation3 + $0x158] sm:$0xff] %vm179_vm1, %v1773_v8  ;;  %3311 = vmatprep.mubr.msk.f32.mxu1 %vm2806_vm15, %v2568_v4  ;;  %v2470_v7 = vsel %vm1428_vm4, %v2454_v16, %v4751_v31  ;;  %v2518_v62 = vsel %vm2516_vm11, %v2501_v45, %v4760_v39 }
 0x26b   :  { %1789 = vst.msk [vmem:[#allocation3 + $0x140] sm:$0xff] %vm179_vm1, %v1772_v10  ;;  %2040 = vrot.lane.b32.xlu1 %v1837_v11, %s3395_s11 }
 0x26c   :  { %2228 = vrot.lane.b32.xlu0 %v1836_v0, %s3400_s16 }
 0x26d   :  { %v4798_v13 = vpop.permute.xlu1 %2028  ;;  %v4800_v18 = vpop.permute.xlu0 %2218 }
 0x26f   :  { %2292 = vrot.lane.b32.xlu1 %v4767_v36, %s3401_s7 }
 0x271   :  { %v2281_v20 = vpop.permute.xlu1 %2280  ;;  %v4804_v21 = vpop.permute.xlu0 %1962  ;;  %v1870_v50 = vld [vmem:[#allocation3 + $0x158] sm:$0xff] }
 0x272   :  { %v4806_v6 = vld [vmem:[#allocation3 + $0x13f] sm:$0xff]  ;;  %v4834_v24 = vld [vmem:[#allocation3 + $0x157] sm:$0xff] }
 0x273   :  { %v1822_v22 = vld [vmem:[#allocation3 + $0x140] sm:$0xff]  ;;  %2104 = vrot.lane.b32.xlu1 %v4806_v6, %s3397_s22 }
 0x274   :  { %1978 = vrot.lane.b32.xlu0 %v1822_v22, %s3393_s19  ;;  %v1838_v38 = vld [vmem:[#allocation3 + $0x141] sm:$0xff]  ;;  %v1839_v8 = vld [vmem:[#allocation3 + $0x159] sm:$0xff] }
 0x275   :  { %v2345_v12 = vpop.permute.xlu1 %2344  ;;  %v4811_v29 = vpop.permute.xlu0 %2026 }
 0x277   :  { %2356 = vrot.lane.b32.xlu1 %v1868_v43, %s3402_s13 }
 0x278   :  { %2230 = vrot.lane.b32.xlu0 %v1837_v11, %s3400_s16 }
 0x279   :  { %v2409_v26 = vpop.permute.xlu1 %2408  ;;  %v2279_v15 = vpop.permute.xlu0 %2278 }
 0x27a   :  { %v2535_v33 = vsel %vm2533_vm12, %v2518_v62, %v2279_v15 }
 0x27b   :  { %2168 = vrot.lane.b32.xlu1 %v1822_v22, %s3399_s27 }
 0x27c   :  { %2042 = vrot.lane.b32.xlu0 %v1838_v38, %s3395_s11 }
 0x27d   :  { %v2089_v0 = vpop.permute.xlu1 %2088  ;;  %v2343_v44 = vpop.permute.xlu0 %2342 }
 0x27e   :  { %v2486_v27 = vsel %vm1462_vm6, %v2470_v7, %v2089_v0  ;;  %v2552_v56 = vsel %vm2550_vm13, %v2535_v33, %v2343_v44 }
 0x27f   :  { %2420 = vrot.lane.b32.xlu1 %v1837_v11, %s3403_s25 }
 0x280   :  { %2294 = vrot.lane.b32.xlu0 %v4806_v6, %s3401_s7 }
 0x281   :  { %v2153_v41 = vpop.permute.xlu1 %2152  ;;  %v2217_v47 = vpop.permute.xlu0 %2216 }
 0x282   :  { %v2502_v17 = vsel %vm1496_vm8, %v2486_v27, %v2153_v41 }
 0x283   :  { %v2519_v23 = vsel %vm2516_vm11, %v2502_v17, %v2217_v47  ;;  %2170 = vrot.lane.b32.xlu1 %v1870_v50, %s3399_s27  ;;  %v3263_v31 = vpop.f32.mrb[12].mxu0 }
 0x284   :  { %2106 = vrot.lane.b32.xlu0 %v4834_v24, %s3397_s22  ;;  %v2536_v51 = vsel %vm2533_vm12, %v2519_v23, %v2281_v20  ;;  %v1736_v54 = vmul.f32 %v3263_v31, %v4572_v52  ;;  %v1697_v43 = vpop.f32.mrb[13].mxu0 }
 0x285   :  { %v2407_v57 = vpop.permute.xlu1 %2406  ;;  %v1735_v39 = vmul.f32 %v4572_v52, %v1697_v43  ;;  %v4847_v40 = vpop.permute.xlu0 %2094  ;;  %v2553_v28 = vsel %vm2550_vm13, %v2536_v51, %v2345_v12 }
 0x286   :  { %v1759_v58 = vadd.f32 %v4577_v55, %v1736_v54  ;;  %v2569_v37 = vsel %vm2567_vm14, %v2552_v56, %v2407_v57  ;;  %v2570_v59 = vsel %vm2567_vm14, %v2553_v28, %v2409_v26 }
 0x287   :  { %v1758_v60 = vadd.f32 %v4577_v55, %v1735_v39  ;;  %3312 = vmatmul.mubr.msk.f32.vlgmr.msra.gmra.mrb[10].mxu1 %vm2806_vm15, %v2569_v37  ;;  %2422 = vrot.lane.b32.xlu1 %v1838_v38, %s3403_s25 }
 0x288   :  { %v1775_v63 = vmax.f32 %v1759_v58, 0.0  ;;  %2358 = vrot.lane.b32.xlu0 %v1822_v22, %s3402_s13  ;;  %3314 = vmatprep.mubr.msk.f32.mxu1 %vm2806_vm15, %v2570_v59 }
 0x289   :  { %v1774_v1 = vmax.f32 %v1758_v60, 0.0  ;;  %v4858_v2 = vpop.permute.xlu1 %2158  ;;  %v4860_v49 = vpop.permute.xlu0 %1968 }
 0x28a   :  { %1792 = vst.msk [vmem:[#allocation3 + $0x188] sm:$0xff] %vm179_vm1, %v1775_v63 }
 0x28b   :  { %1791 = vst.msk [vmem:[#allocation3 + $0x170] sm:$0xff] %vm179_vm1, %v1774_v1  ;;  %2044 = vrot.lane.b32.xlu1 %v1839_v8, %s3395_s11 }
 0x28c   :  { %1980 = vrot.lane.b32.xlu0 %v1870_v50, %s3393_s19 }
 0x28d   :  { %v4866_v9 = vpop.permute.xlu1 %2032  ;;  %v4868_v10 = vpop.permute.xlu0 %2222 }
 0x28f   :  { %2296 = vrot.lane.b32.xlu1 %v4834_v24, %s3401_s7 }
 0x290   :  { %2232 = vrot.lane.b32.xlu0 %v1838_v38, %s3400_s16  ;;  %v3266_v4 = vpop.f32.mrb[14].mxu0 }
 0x291   :  { %v2285_v11 = vpop.permute.xlu1 %2284  ;;  %v1738_v20 = vmul.f32 %v3266_v4, %v4572_v52  ;;  %v1967_v22 = vpop.permute.xlu0 %1966  ;;  %v1872_v31 = vld [vmem:[#allocation3 + $0x188] sm:$0xff] }
 0x292   :  { %v1707_v12 = vpop.f32.mrb[15].mxu0  ;;  %v4874_v30 = vld [vmem:[#allocation3 + $0x16f] sm:$0xff]  ;;  %v2457_v60 = vsel %vm179_vm1, %v4703_v3, %v1967_v22 }
 0x293   :  { %v1824_v26 = vld [vmem:[#allocation3 + $0x170] sm:$0xff]  ;;  %v1761_v15 = vadd.f32 %v4577_v55, %v1738_v20  ;;  %v1737_v34 = vmul.f32 %v4572_v52, %v1707_v12  ;;  %2108 = vrot.lane.b32.xlu1 %v4874_v30, %s3397_s22  ;;  %v2455_v52 = vsel %vm179_vm1, %v4670_v46, %v4804_v21  ;;  %v2456_v46 = vsel %vm179_vm1, %v4627_v25, %v4790_v61 }
 0x294   :  { %1982 = vrot.lane.b32.xlu0 %v1824_v26, %s3393_s19  ;;  %v1840_v27 = vld [vmem:[#allocation3 + $0x171] sm:$0xff]  ;;  %v2472_v21 = vsel %vm1428_vm4, %v2456_v46, %v4798_v13  ;;  %v4911_v13 = vld [vmem:[#allocation3 + $0x187] sm:$0xff] }
 0x295   :  { %v1777_v42 = vmax.f32 %v1761_v15, 0.0  ;;  %v1760_v38 = vadd.f32 %v4577_v55, %v1737_v34  ;;  %v2349_v0 = vpop.permute.xlu1 %2348  ;;  %v2031_v44 = vpop.permute.xlu0 %2030  ;;  %v2471_v55 = vsel %vm1428_vm4, %v2455_v52, %v4811_v29  ;;  %v1841_v58 = vld [vmem:[#allocation3 + $0x189] sm:$0xff] }
 0x296   :  { %v2487_v41 = vsel %vm1462_vm6, %v2471_v55, %v4779_v53  ;;  %v2473_v63 = vsel %vm1428_vm4, %v2457_v60, %v2031_v44 }
 0x297   :  { %1794 = vst.msk [vmem:[#allocation3 + $0x1b8] sm:$0xff] %vm179_vm1, %v1777_v42  ;;  %v1776_v16 = vmax.f32 %v1760_v38, 0.0  ;;  %2360 = vrot.lane.b32.xlu1 %v1870_v50, %s3402_s13  ;;  %v2503_v29 = vsel %vm1496_vm8, %v2487_v41, %v4788_v48  ;;  %v2489_v4 = vsel %vm1462_vm6, %v2473_v63, %v4847_v40 }
 0x298   :  { %2234 = vrot.lane.b32.xlu0 %v1839_v8, %s3400_s16  ;;  %v2520_v25 = vsel %vm2516_vm11, %v2503_v29, %v4800_v18  ;;  %v2505_v22 = vsel %vm1496_vm8, %v2489_v4, %v4858_v2 }
 0x299   :  { %1793 = vst.msk [vmem:[#allocation3 + $0x1a0] sm:$0xff] %vm179_vm1, %v1776_v16  ;;  %v2413_v7 = vpop.permute.xlu1 %2412  ;;  %v2283_v45 = vpop.permute.xlu0 %2282 }
 0x29a   :  { %v2537_v48 = vsel %vm2533_vm12, %v2520_v25, %v2283_v45  ;;  %v2458_v45 = vsel %vm179_vm1, %v4686_v32, %v4860_v49 }
 0x29b   :  { %2172 = vrot.lane.b32.xlu1 %v1824_v26, %s3399_s27  ;;  %v2474_v41 = vsel %vm1428_vm4, %v2458_v45, %v4866_v9 }
 0x29c   :  { %2046 = vrot.lane.b32.xlu0 %v1840_v27, %s3395_s11 }
 0x29d   :  { %v2093_v47 = vpop.permute.xlu1 %2092  ;;  %v2347_v17 = vpop.permute.xlu0 %2346 }
 0x29e   :  { %v2488_v50 = vsel %vm1462_vm6, %v2472_v21, %v2093_v47  ;;  %v2554_v51 = vsel %vm2550_vm13, %v2537_v48, %v2347_v17  ;;  %v1890_v52 = vld [vmem:[#allocation3 + $0x1b9] sm:$0xff]  ;;  %v1923_v21 = vld [vmem:[#allocation3 + $0x1d0] sm:$0xff] }
 0x29f   :  { %2424 = vrot.lane.b32.xlu1 %v1839_v8, %s3403_s25  ;;  %v1874_v17 = vld [vmem:[#allocation3 + $0x1b8] sm:$0xff] }
 0x2a0   :  { %2298 = vrot.lane.b32.xlu0 %v4874_v30, %s3401_s7  ;;  %v1826_v20 = vld [vmem:[#allocation3 + $0x1a0] sm:$0xff] }
 0x2a1   :  { %v2157_v53 = vpop.permute.xlu1 %2156  ;;  %v2221_v62 = vpop.permute.xlu0 %2220  ;;  %v1842_v38 = vld [vmem:[#allocation3 + $0x1a1] sm:$0xff] }
 0x2a2   :  { %v2504_v23 = vsel %vm1496_vm8, %v2488_v50, %v2157_v53 }
 0x2a3   :  { %v2521_v61 = vsel %vm2516_vm11, %v2504_v23, %v2221_v62  ;;  %2174 = vrot.lane.b32.xlu1 %v1872_v31, %s3399_s27  ;;  %v1939_v62 = vld [vmem:[#allocation3 + $0x1d1] sm:$0xff] }
 0x2a4   :  { %v2538_v33 = vsel %vm2533_vm12, %v2521_v61, %v2285_v11  ;;  %2110 = vrot.lane.b32.xlu0 %v4911_v13, %s3397_s22  ;;  %v4941_v11 = vld [vmem:[#allocation3 + $0x19f] sm:$0xff] }
 0x2a5   :  { %v2411_v54 = vpop.permute.xlu1 %2410  ;;  %v4918_v43 = vpop.permute.xlu0 %2098  ;;  %v2555_v18 = vsel %vm2550_vm13, %v2538_v33, %v2349_v0 }
 0x2a6   :  { %v2571_v56 = vsel %vm2567_vm14, %v2554_v51, %v2411_v54  ;;  %v2572_v57 = vsel %vm2567_vm14, %v2555_v18, %v2413_v7  ;;  %v1907_v7 = vld [vmem:[#allocation3 + $0x1cf] sm:$0xff] }
 0x2a7   :  { %3315 = vmatmul.mubr.msk.f32.gmra.mrb[12].mxu1 %vm2806_vm15, %v2571_v56  ;;  %2426 = vrot.lane.b32.xlu1 %v1840_v27, %s3403_s25 }
 0x2a8   :  { %2362 = vrot.lane.b32.xlu0 %v1824_v26, %s3402_s13  ;;  %3317 = vmatprep.mubr.msk.f32.mxu1 %vm2806_vm15, %v2572_v57  ;;  %v2522_v26 = vsel %vm2516_vm11, %v2505_v22, %v4868_v10  ;;  %v1858_v10 = vld [vmem:[#allocation3 + $0x1b7] sm:$0xff] }
 0x2a9   :  { %v4927_v39 = vpop.permute.xlu1 %2162  ;;  %v4929_v28 = vpop.permute.xlu0 %2226 }
 0x2ab   :  { %2048 = vrot.lane.b32.xlu1 %v1841_v58, %s3395_s11 }
 0x2ac   :  { %1984 = vrot.lane.b32.xlu0 %v1872_v31, %s3393_s19 }
 0x2ad   :  { %v2289_v37 = vpop.permute.xlu1 %2288  ;;  %v1971_v59 = vpop.permute.xlu0 %1970 }
 0x2ae   :  { %v2459_v29 = vsel %vm179_vm1, %v4726_v14, %v1971_v59 }
 0x2af   :  { %2300 = vrot.lane.b32.xlu1 %v4911_v13, %s3401_s7 }
 0x2b0   :  { %2236 = vrot.lane.b32.xlu0 %v1840_v27, %s3400_s16 }
 0x2b1   :  { %v2097_v1 = vpop.permute.xlu1 %2096  ;;  %v2035_v8 = vpop.permute.xlu0 %2034 }
 0x2b2   :  { %v2490_v47 = vsel %vm1462_vm6, %v2474_v41, %v2097_v1  ;;  %v2475_v53 = vsel %vm1428_vm4, %v2459_v29, %v2035_v8  ;;  %v1803_v8 = vld [vmem:[#allocation3 + $0xf7] sm:$0xff] }
 0x2b3   :  { %2112 = vrot.lane.b32.xlu1 %v4941_v11, %s3397_s22  ;;  %v2491_v23 = vsel %vm1462_vm6, %v2475_v53, %v4918_v43  ;;  %v2460_v4 = vsel %vm179_vm1, %v1803_v8, %v4744_v5 }
 0x2b4   :  { %1986 = vrot.lane.b32.xlu0 %v1826_v20, %s3393_s19  ;;  %v2507_v48 = vsel %vm1496_vm8, %v2491_v23, %v4927_v39  ;;  %v5001_v39 = vpop.f32.mrb[16].mxu0  ;;  %v2476_v22 = vsel %vm1428_vm4, %v2460_v4, %v4731_v19 }
 0x2b5   :  { %v2161_v3 = vpop.permute.xlu1 %2160  ;;  %v2287_v12 = vpop.permute.xlu0 %2286  ;;  %v2524_v54 = vsel %vm2516_vm11, %v2507_v48, %v4929_v28 }
 0x2b6   :  { %v2539_v40 = vsel %vm2533_vm12, %v2522_v26, %v2287_v12  ;;  %v2506_v46 = vsel %vm1496_vm8, %v2490_v47, %v2161_v3 }
 0x2b7   :  { %2364 = vrot.lane.b32.xlu1 %v1872_v31, %s3402_s13 }
 0x2b8   :  { %2238 = vrot.lane.b32.xlu0 %v1841_v58, %s3400_s16 }
 0x2b9   :  { %v2415_v15 = vpop.permute.xlu1 %2414  ;;  %v2351_v34 = vpop.permute.xlu0 %2350 }
 0x2ba   :  { %v2556_v42 = vsel %vm2550_vm13, %v2539_v40, %v2351_v34 }
 0x2bb   :  { %2176 = vrot.lane.b32.xlu1 %v1826_v20, %s3399_s27  ;;  %v2573_v0 = vsel %vm2567_vm14, %v2556_v42, %v2415_v15 }
 0x2bc   :  { %2050 = vrot.lane.b32.xlu0 %v1842_v38, %s3395_s11  ;;  %3318 = vmatmul.mubr.msk.f32.gmra.mrb[14].mxu1 %vm2806_vm15, %v2573_v0 }
 0x2bd   :  { %v2225_v2 = vpop.permute.xlu0 %2224 }
 0x2be   :  { %v2523_v32 = vsel %vm2516_vm11, %v2506_v46, %v2225_v2 }
 0x2bf   :  { %2428 = vrot.lane.b32.xlu1 %v1841_v58, %s3403_s25  ;;  %v2540_v9 = vsel %vm2533_vm12, %v2523_v32, %v2289_v37  ;;  %v5004_v37 = vpop.f32.mrb[17].mxu0 }
 0x2c0   :  { %2302 = vrot.lane.b32.xlu0 %v4941_v11, %s3401_s7 }
 0x2c3   :  { %2240 = vrot.lane.b32.xlu1 %v1842_v38, %s3400_s16 }
 0x2c4   :  { %2114 = vrot.lane.b32.xlu0 %v1858_v10, %s3397_s22 }
 0x2c5   :  { %v2101_v44 = vpop.permute.xlu1 %2100 }
 0x2c6   :  { %v4963_v16 = vpop.permute.xlu0 %1974  ;;  %v2492_v12 = vsel %vm1462_vm6, %v2476_v22, %v2101_v44 }
 0x2c7   :  { %2242 = vrot.lane.b32.xlu1 %v1890_v52, %s3400_s16  ;;  %v2461_v19 = vsel %vm179_vm1, %v4755_v35, %v4963_v16 }
 0x2c8   :  { %2366 = vrot.lane.b32.xlu0 %v1826_v20, %s3402_s13 }
 0x2c9   :  { %v2353_v55 = vpop.permute.xlu1 %2352 }
 0x2ca   :  { %v4970_v27 = vpop.permute.xlu0 %2038  ;;  %v2557_v31 = vsel %vm2550_vm13, %v2540_v9, %v2353_v55 }
 0x2cb   :  { %2306 = vrot.lane.b32.xlu1 %v1907_v7, %s3401_s7 }
 0x2cc   :  { %2178 = vrot.lane.b32.xlu0 %v1874_v17, %s3399_s27 }
 0x2cd   :  { %v2165_v49 = vpop.permute.xlu1 %2164 }
 0x2ce   :  { %v2291_v50 = vpop.permute.xlu0 %2290  ;;  %v2508_v15 = vsel %vm1496_vm8, %v2492_v12, %v2165_v49 }
 0x2cf   :  { %2370 = vrot.lane.b32.xlu1 %v1923_v21, %s3402_s13  ;;  %v2541_v43 = vsel %vm2533_vm12, %v2524_v54, %v2291_v50  ;;  %v5027_v21 = vpop.f32.mrb[18].mxu0 }
 0x2d0   :  { %2430 = vrot.lane.b32.xlu0 %v1842_v38, %s3403_s25  ;;  %v5030_v16 = vpop.f32.mrb[19].mxu0 }
 0x2d1   :  { %v2417_v25 = vpop.permute.xlu1 %2416  ;;  %v5040_v54 = vpop.f32.mrb[20].mxu0 }
 0x2d2   :  { %v2103_v14 = vpop.permute.xlu0 %2102  ;;  %v2574_v61 = vsel %vm2567_vm14, %v2557_v31, %v2417_v25 }
 0x2d3   :  { %2434 = vrot.lane.b32.xlu1 %v1939_v62, %s3403_s25  ;;  %3320 = vmatprep.mubr.msk.f32.mxu1 %vm2806_vm15, %v2574_v61 }
 0x2d4   :  { %2304 = vrot.lane.b32.xlu0 %v1858_v10, %s3401_s7 }
 0x2d5   :  { %v2167_v33 = vpop.permute.xlu1 %2166 }
 0x2d6   :  { %v2355_v51 = vpop.permute.xlu0 %2354 }
 0x2d7   :  { %v2558_v18 = vsel %vm2550_vm13, %v2541_v43, %v2355_v51 }
 0x2d8   :  { %2368 = vrot.lane.b32.xlu0 %v1874_v17, %s3402_s13 }
 0x2d9   :  { %v2419_v56 = vpop.permute.xlu1 %2418 }
 0x2da   :  { %v2575_v57 = vsel %vm2567_vm14, %v2558_v18, %v2419_v56  ;;  %v1977_v58 = vpop.permute.xlu0 %1976 }
 0x2db   :  { %3321 = vmatmul.mubr.msk.f32.gmra.mrb[0].mxu1 %vm2806_vm15, %v2575_v57  ;;  %v2462_v9 = vsel %vm179_vm1, %v4767_v36, %v1977_v58  ;;  %v5043_v36 = vpop.f32.mrb[21].mxu0 }
 0x2dc   :  { %2432 = vrot.lane.b32.xlu0 %v1890_v52, %s3403_s25  ;;  %v2477_v52 = vsel %vm1428_vm4, %v2461_v19, %v4970_v27 }
 0x2dd   :  { %v2041_v59 = vpop.permute.xlu1 %2040  ;;  %v2493_v7 = vsel %vm1462_vm6, %v2477_v52, %v2103_v14 }
 0x2de   :  { %v2229_v28 = vpop.permute.xlu0 %2228  ;;  %v2509_v45 = vsel %vm1496_vm8, %v2493_v7, %v2167_v33  ;;  %v2478_v23 = vsel %vm1428_vm4, %v2462_v9, %v2041_v59 }
 0x2df   :  { %v2525_v34 = vsel %vm2516_vm11, %v2508_v15, %v2229_v28 }
 0x2e1   :  { %v2293_v60 = vpop.permute.xlu1 %2292 }
 0x2e2   :  { %v2542_v42 = vsel %vm2533_vm12, %v2525_v34, %v2293_v60 }
 0x2e5   :  { %v2105_v63 = vpop.permute.xlu1 %2104 }
 0x2e6   :  { %v1979_v1 = vpop.permute.xlu0 %1978  ;;  %v2494_v25 = vsel %vm1462_vm6, %v2478_v23, %v2105_v63 }
 0x2e7   :  { %v2463_v58 = vsel %vm179_vm1, %v4806_v6, %v1979_v1 }
 0x2e9   :  { %v2357_v20 = vpop.permute.xlu1 %2356 }
 0x2ea   :  { %v2231_v3 = vpop.permute.xlu0 %2230  ;;  %v2559_v38 = vsel %vm2550_vm13, %v2542_v42, %v2357_v20 }
 0x2eb   :  { %v2526_v55 = vsel %vm2516_vm11, %v2509_v45, %v2231_v3 }
 0x2ed   :  { %v2169_v26 = vpop.permute.xlu1 %2168 }
 0x2ee   :  { %v2043_v40 = vpop.permute.xlu0 %2042  ;;  %v2510_v14 = vsel %vm1496_vm8, %v2494_v25, %v2169_v26 }
 0x2ef   :  { %v2479_v59 = vsel %vm1428_vm4, %v2463_v58, %v2043_v40 }
 0x2f1   :  { %v2421_v0 = vpop.permute.xlu1 %2420 }
 0x2f2   :  { %v2295_v2 = vpop.permute.xlu0 %2294  ;;  %v2576_v5 = vsel %vm2567_vm14, %v2559_v38, %v2421_v0 }
 0x2f3   :  { %3323 = vmatprep.mubr.msk.f32.mxu1 %vm2806_vm15, %v2576_v5  ;;  %v2543_v47 = vsel %vm2533_vm12, %v2526_v55, %v2295_v2 }
 0x2f5   :  { %v2171_v10 = vpop.permute.xlu1 %2170 }
 0x2f6   :  { %v2107_v44 = vpop.permute.xlu0 %2106 }
 0x2f7   :  { %v2495_v28 = vsel %vm1462_vm6, %v2479_v59, %v2107_v44 }
 0x2f8   :  { %v2511_v8 = vsel %vm1496_vm8, %v2495_v28, %v2171_v10 }
 0x2f9   :  { %v2423_v41 = vpop.permute.xlu1 %2422 }
 0x2fa   :  { %v2359_v17 = vpop.permute.xlu0 %2358 }
 0x2fb   :  { %v2560_v46 = vsel %vm2550_vm13, %v2543_v47, %v2359_v17 }
 0x2fc   :  { %v2577_v35 = vsel %vm2567_vm14, %v2560_v46, %v2423_v41 }
 0x2fd   :  { %3324 = vmatmul.mubr.msk.f32.gmra.mrb[2].mxu1 %vm2806_vm15, %v2577_v35  ;;  %v2045_v27 = vpop.permute.xlu1 %2044 }
 0x2fe   :  { %v1981_v29 = vpop.permute.xlu0 %1980 }
 0x2ff   :  { %v2464_v38 = vsel %vm179_vm1, %v4834_v24, %v1981_v29 }
 0x300   :  { %v2480_v2 = vsel %vm1428_vm4, %v2464_v38, %v2045_v27 }
 0x301   :  { %v2297_v32 = vpop.permute.xlu1 %2296 }
 0x302   :  { %v2233_v49 = vpop.permute.xlu0 %2232 }
 0x303   :  { %v2527_v61 = vsel %vm2516_vm11, %v2510_v14, %v2233_v49 }
 0x304   :  { %v2544_v51 = vsel %vm2533_vm12, %v2527_v61, %v2297_v32 }
 0x305   :  { %v2109_v50 = vpop.permute.xlu1 %2108 }
 0x306   :  { %v1983_v53 = vpop.permute.xlu0 %1982  ;;  %v2496_v19 = vsel %vm1462_vm6, %v2480_v2, %v2109_v50 }
 0x307   :  { %v2465_v35 = vsel %vm179_vm1, %v4874_v30, %v1983_v53 }
 0x309   :  { %v2361_v62 = vpop.permute.xlu1 %2360 }
 0x30a   :  { %v2235_v31 = vpop.permute.xlu0 %2234  ;;  %v2561_v43 = vsel %vm2550_vm13, %v2544_v51, %v2361_v62 }
 0x30b   :  { %v2528_v4 = vsel %vm2516_vm11, %v2511_v8, %v2235_v31 }
 0x30d   :  { %v2173_v48 = vpop.permute.xlu1 %2172 }
 0x30e   :  { %v2047_v33 = vpop.permute.xlu0 %2046  ;;  %v2512_v10 = vsel %vm1496_vm8, %v2496_v19, %v2173_v48 }
 0x30f   :  { %v2481_v29 = vsel %vm1428_vm4, %v2465_v35, %v2047_v33 }
 0x311   :  { %v2425_v18 = vpop.permute.xlu1 %2424 }
 0x312   :  { %v2578_v56 = vsel %vm2567_vm14, %v2561_v43, %v2425_v18  ;;  %v2299_v57 = vpop.permute.xlu0 %2298 }
 0x313   :  { %3326 = vmatprep.mubr.msk.f32.mxu1 %vm2806_vm15, %v2578_v56  ;;  %v2545_v3 = vsel %vm2533_vm12, %v2528_v4, %v2299_v57 }
 0x315   :  { %v2175_v60 = vpop.permute.xlu1 %2174 }
 0x316   :  { %v2111_v63 = vpop.permute.xlu0 %2110 }
 0x317   :  { %v2497_v49 = vsel %vm1462_vm6, %v2481_v29, %v2111_v63 }
 0x318   :  { %v2513_v9 = vsel %vm1496_vm8, %v2497_v49, %v2175_v60 }
 0x319   :  { %v2427_v20 = vpop.permute.xlu1 %2426 }
 0x31a   :  { %v2363_v22 = vpop.permute.xlu0 %2362 }
 0x31b   :  { %v2562_v12 = vsel %vm2550_vm13, %v2545_v3, %v2363_v22 }
 0x31c   :  { %v2579_v6 = vsel %vm2567_vm14, %v2562_v12, %v2427_v20 }
 0x31d   :  { %3327 = vmatmul.mubr.msk.f32.gmra.mrb[4].mxu1 %vm2806_vm15, %v2579_v6  ;;  %v2049_v1 = vpop.permute.xlu1 %2048 }
 0x31e   :  { %v1985_v26 = vpop.permute.xlu0 %1984 }
 0x31f   :  { %v2466_v33 = vsel %vm179_vm1, %v4911_v13, %v1985_v26 }
 0x320   :  { %v2482_v56 = vsel %vm1428_vm4, %v2466_v33, %v2049_v1 }
 0x321   :  { %v2301_v40 = vpop.permute.xlu1 %2300 }
 0x322   :  { %v2237_v15 = vpop.permute.xlu0 %2236 }
 0x323   :  { %v2529_v44 = vsel %vm2516_vm11, %v2512_v10, %v2237_v15 }
 0x324   :  { %v2546_v45 = vsel %vm2533_vm12, %v2529_v44, %v2301_v40 }
 0x325   :  { %v2113_v34 = vpop.permute.xlu1 %2112 }
 0x326   :  { %v1987_v42 = vpop.permute.xlu0 %1986 }
 0x327   :  { %v2467_v30 = vsel %vm179_vm1, %v4941_v11, %v1987_v42  ;;  %v2498_v11 = vsel %vm1462_vm6, %v2482_v56, %v2113_v34 }
 0x329   :  { %v2365_v0 = vpop.permute.xlu1 %2364 }
 0x32a   :  { %v2239_v5 = vpop.permute.xlu0 %2238  ;;  %v2563_v55 = vsel %vm2550_vm13, %v2546_v45, %v2365_v0 }
 0x32b   :  { %v2530_v62 = vsel %vm2516_vm11, %v2513_v9, %v2239_v5 }
 0x32d   :  { %v2177_v52 = vpop.permute.xlu1 %2176 }
 0x32e   :  { %v2051_v7 = vpop.permute.xlu0 %2050  ;;  %v2514_v59 = vsel %vm1496_vm8, %v2498_v11, %v2177_v52 }
 0x32f   :  { %v2483_v61 = vsel %vm1428_vm4, %v2467_v30, %v2051_v7 }
 0x331   :  { %v2429_v41 = vpop.permute.xlu1 %2428 }
 0x332   :  { %v2580_v47 = vsel %vm2567_vm14, %v2563_v55, %v2429_v41  ;;  %v2303_v24 = vpop.permute.xlu0 %2302 }
 0x333   :  { %3329 = vmatprep.mubr.msk.f32.mxu1 %vm2806_vm15, %v2580_v47  ;;  %v2547_v23 = vsel %vm2533_vm12, %v2530_v62, %v2303_v24 }
 0x335   :  { %v2241_v17 = vpop.permute.xlu1 %2240 }
 0x336   :  { %v2115_v46 = vpop.permute.xlu0 %2114  ;;  %v2531_v28 = vsel %vm2516_vm11, %v2514_v59, %v2241_v17 }
 0x337   :  { %v2499_v48 = vsel %vm1462_vm6, %v2483_v61, %v2115_v46 }
 0x339   :  { %v2243_v32 = vpop.permute.xlu1 %2242 }
 0x33a   :  { %v2367_v27 = vpop.permute.xlu0 %2366 }
 0x33b   :  { %v2564_v25 = vsel %vm2550_vm13, %v2547_v23, %v2367_v27 }
 0x33d   :  { %v2307_v31 = vpop.permute.xlu1 %2306 }
 0x33e   :  { %v2179_v50 = vpop.permute.xlu0 %2178 }
 0x33f   :  { %v2515_v51 = vsel %vm1496_vm8, %v2499_v48, %v2179_v50 }
 0x340   :  { %v2532_v57 = vsel %vm2516_vm11, %v2515_v51, %v2243_v32 }
 0x341   :  { %v2371_v18 = vpop.permute.xlu1 %2370  ;;  %v2549_v60 = vsel %vm2533_vm12, %v2532_v57, %v2307_v31 }
 0x342   :  { %v2431_v14 = vpop.permute.xlu0 %2430  ;;  %v2566_v20 = vsel %vm2550_vm13, %v2549_v60, %v2371_v18 }
 0x343   :  { %v2581_v53 = vsel %vm2567_vm14, %v2564_v25, %v2431_v14 }
 0x344   :  { %3330 = vmatmul.mubr.msk.f32.gmra.mrb[6].mxu1 %vm2806_vm15, %v2581_v53 }
 0x345   :  { %v2435_v63 = vpop.permute.xlu1 %2434 }
 0x346   :  { %v2305_v43 = vpop.permute.xlu0 %2304  ;;  %v2583_v22 = vsel %vm2567_vm14, %v2566_v20, %v2435_v63 }
 0x347   :  { %v2548_v13 = vsel %vm2533_vm12, %v2531_v28, %v2305_v43 }
 0x34a   :  { %v2369_v58 = vpop.permute.xlu0 %2368 }
 0x34b   :  { %v2565_v8 = vsel %vm2550_vm13, %v2548_v13, %v2369_v58 }
 0x34e   :  { %v2433_v4 = vpop.permute.xlu0 %2432 }
 0x34f   :  { %v2582_v3 = vsel %vm2567_vm14, %v2565_v8, %v2433_v4 }
 0x350   :  { %3332 = vmatprep.mubr.msk.f32.mxu1 %vm2806_vm15, %v2582_v3 }
 0x351   :  { %3333 = vmatmul.mubr.msk.f32.gmra.mrb[8].mxu1 %vm2806_vm15, %v2583_v22 }
 0x35a   :  { %v3313_v12 = vpop.f32.mrb[10].mxu1 }
 0x35b   :  { %v2927_v6 = vadd.f32 %v3313_v12, %v5001_v39  ;;  %v2921_v1 = vpop.f32.mrb[11].mxu1 }
 0x35c   :  { %v2922_v26 = vadd.f32 %v2921_v1, %v5004_v37 }
 0x35d   :  { %3001 = vst.msk [vmem:[%s5175_s8 + $0x8] sm:$0xff] %vm179_vm1, %v2927_v6 }
 0x35e   :  { %3000 = vst.msk [vmem:[%s5175_s8] sm:$0xff] %vm179_vm1, %v2922_v26 }
 0x37a   :  { %v3316_v40 = vpop.f32.mrb[12].mxu1 }
 0x37b   :  { %v2937_v15 = vadd.f32 %v3316_v40, %v5027_v21  ;;  %v2931_v34 = vpop.f32.mrb[13].mxu1 }
 0x37c   :  { %v2932_v42 = vadd.f32 %v2931_v34, %v5030_v16 }
 0x37d   :  { %3003 = vst.msk [vmem:[%s5175_s8 + $0x18] sm:$0xff] %vm179_vm1, %v2937_v15 }
 0x37e   :  { %3002 = vst.msk [vmem:[%s5175_s8 + $0x10] sm:$0xff] %vm179_vm1, %v2932_v42 }
 0x38f   :  { %v3319_v39 = vpop.f32.mrb[14].mxu1 }
 0x390   :  { %v2947_v37 = vadd.f32 %v3319_v39, %v5040_v54  ;;  %v2941_v38 = vpop.f32.mrb[15].mxu1 }
 0x391   :  { %v2942_v0 = vadd.f32 %v2941_v38, %v5043_v36 }
 0x392   :  { %3005 = vst.msk [vmem:[%s5175_s8 + $0x28] sm:$0xff] %vm179_vm1, %v2947_v37 }
 0x393   :  { %3004 = vst.msk [vmem:[%s5175_s8 + $0x20] sm:$0xff] %vm179_vm1, %v2942_v0 }
 0x3ae   :  { %v3322_v21 = vpop.f32.mrb[0].mxu1 }
 0x3af   :  { %3007 = vst.msk [vmem:[%s5175_s8 + $0x38] sm:$0xff] %vm179_vm1, %v3322_v21  ;;  %v2951_v16 = vpop.f32.mrb[1].mxu1 }
 0x3b0   :  { %3006 = vst.msk [vmem:[%s5175_s8 + $0x30] sm:$0xff] %vm179_vm1, %v2951_v16 }
 0x3d0   :  { %v3325_v54 = vpop.f32.mrb[2].mxu1 }
 0x3d1   :  { %3009 = vst.msk [vmem:[%s5175_s8 + $0x48] sm:$0xff] %vm179_vm1, %v3325_v54  ;;  %v2961_v36 = vpop.f32.mrb[3].mxu1 }
 0x3d2   :  { %3008 = vst.msk [vmem:[%s5175_s8 + $0x40] sm:$0xff] %vm179_vm1, %v2961_v36 }
 0x3f0   :  { %v3328_v2 = vpop.f32.mrb[4].mxu1 }
 0x3f1   :  { %3011 = vst.msk [vmem:[%s5175_s8 + $0x58] sm:$0xff] %vm179_vm1, %v3328_v2  ;;  %v2971_v5 = vpop.f32.mrb[5].mxu1 }
 0x3f2   :  { %3010 = vst.msk [vmem:[%s5175_s8 + $0x50] sm:$0xff] %vm179_vm1, %v2971_v5 }
 0x417   :  { %v3331_v19 = vpop.f32.mrb[6].mxu1 }
 0x418   :  { %3013 = vst.msk [vmem:[%s5175_s8 + $0x68] sm:$0xff] %vm179_vm1, %v3331_v19  ;;  %v2981_v10 = vpop.f32.mrb[7].mxu1 }
 0x419   :  { %3012 = vst.msk [vmem:[%s5175_s8 + $0x60] sm:$0xff] %vm179_vm1, %v2981_v10 }
 0x424   :  { %v3334_v44 = vpop.f32.mrb[8].mxu1 }
 0x425   :  { %3015 = vst.msk [vmem:[%s5175_s8 + $0x78] sm:$0xff] %vm179_vm1, %v3334_v44  ;;  %v2991_v52 = vpop.f32.mrb[9].mxu1 }
 0x426   :  { %3014 = vst.msk [vmem:[%s5175_s8 + $0x70] sm:$0xff] %vm179_vm1, %v2991_v52 }

</bundles_post_ra>
